<compile_context>
chip_gen: v6e
topology: v6e:2x2x1
jax: 0.10.0
libtpu: 0.0.40
codegen_flags: <defaults>
</compile_context>

<pallas_src>
import functools
import math

import jax
import jax.numpy as jnp
import numpy as np
from jax.experimental import pallas as pl
from jax.experimental.pallas import tpu as pltpu

EPS = 1e-5                    # nn.InstanceNorm2d default eps (biased var, no affine)
DOT_DTYPE = jnp.bfloat16      # MXU matmul input dtype (f32 accumulation); set to
                              # jnp.float32 for bit-faithful (slower) matmuls.


# --------------------------- in-kernel building blocks ------------------------
def _column_taps(xh, dot_dtype):
    """xh: (Hp, W, C) f32 row-padded image.  Returns the 3 column taps
    (kx = 0, 1, 2) with reflection handling along W, cast to dot_dtype.

    The +/-1 column shifts are one pltpu.roll each on the flattened sublane
    axis (XLU; both shifts non-negative), plus a one-column reflect fix done
    with a (1, W, 1) iota and single-column operands (jnp.where broadcasts, so
    no full-size boundary temporaries are materialized)."""
    Hp, W, C = xh.shape
    flat = xh.reshape(Hp * W, C)
    # roll(+1): [h, w] <- [h, w-1];  roll(Hp*W - 1) == roll(-1): [h, w] <- [h, w+1]
    prv = pltpu.roll(flat, 1, axis=0).reshape(Hp, W, C)
    nxt = pltpu.roll(flat, Hp * W - 1, axis=0).reshape(Hp, W, C)
    w_idx = jax.lax.broadcasted_iota(jnp.int32, (1, W, 1), 1)
    kx0 = jnp.where(w_idx == 0, xh[:, 1:2, :], prv)           # col -1 -> col 1
    kx2 = jnp.where(w_idx == W - 1, xh[:, W - 2:W - 1, :], nxt)  # col W -> col W-2
    return (kx0.astype(dot_dtype), xh.astype(dot_dtype), kx2.astype(dot_dtype))


def _conv3x3_instance_norm(x_f32, w_ref, *, folded, dot_dtype):
    """ReflectionPad2d(1) + Conv2d(C, C, 3) + InstanceNorm2d(C, affine=False)
    on one (H, W, C) image held in VMEM.  The conv bias is intentionally
    omitted: it cancels exactly in the affine-free instance norm.

    folded=True  -> w_ref is (3, 3C, C); 3 MXU matmuls with K = 3C.
    folded=False -> w_ref is (9, C, C);  9 MXU matmuls with K = C.
    Returns (H, W, C) f32 (normalized, no affine)."""
    H, W, C = x_f32.shape
    # Reflection pad along H (major / untiled axis: cheap concat).
    xh = jnp.concatenate([x_f32[1:2], x_f32, x_f32[H - 2:H - 1]], axis=0)  # (H+2, W, C)
    taps = _column_taps(xh, dot_dtype)                    # 3 x (H+2, W, C) dot_dtype

    acc = None
    if folded:
        # Fold kx into the contraction dim: (H*W, 3C) x (3C, C), 3 matmuls.
        patches = jnp.concatenate(taps, axis=-1)          # (H+2, W, 3C), lane-aligned
        for ky in range(3):                               # static unroll
            p = patches[ky:ky + H].reshape(H * W, 3 * C)  # aligned major-axis slice
            d = jnp.dot(p, w_ref[ky], preferred_element_type=jnp.float32)
            acc = d if acc is None else acc + d
    else:
        # Unfolded 9-tap path for tiny / lane-unaligned C.
        for ky in range(3):                               # static unroll: 9 taps
            for kx in range(3):
                p = taps[kx][ky:ky + H].reshape(H * W, C)
                d = jnp.dot(p, w_ref[ky * 3 + kx],
                            preferred_element_type=jnp.float32)
                acc = d if acc is None else acc + d

    # Single-pass InstanceNorm statistics (sum & sum-of-squares together).
    inv_n = 1.0 / (H * W)
    s1 = jnp.sum(acc, axis=0, keepdims=True)              # (1, C)
    s2 = jnp.sum(acc * acc, axis=0, keepdims=True)        # (1, C)
    mean = s1 * inv_n
    var = jnp.maximum(s2 * inv_n - mean * mean, 0.0)
    y = (acc - mean) * jax.lax.rsqrt(var + EPS)
    return y.reshape(H, W, C)


def _resnet_block_kernel(x_ref, w1_ref, w2_ref, o_ref, *, folded, dot_dtype):
    """Fused ResnetBlock forward for ONE image:
       out = x + IN(conv2(pad(ReLU(IN(conv1(pad(x)))))))
    Everything between the x load and the out store stays in VMEM/vregs."""
    x = x_ref[...].astype(jnp.float32)                               # (H, W, C)
    y = _conv3x3_instance_norm(x, w1_ref, folded=folded, dot_dtype=dot_dtype)
    y = jnp.maximum(y, 0.0)                                          # ReLU(inplace=True)
    y = _conv3x3_instance_norm(y, w2_ref, folded=folded, dot_dtype=dot_dtype)
    # Residual: re-read x_ref (VMEM) so no f32 copy of x stays live across stages.
    o_ref[...] = (x_ref[...].astype(jnp.float32) + y).astype(o_ref.dtype)


# ------------------------------- host wrappers --------------------------------
def _vmem_limit_bytes(H, W, C):
    """Scoped-VMEM budget for one grid step (one image), derived from the block
    footprint, capped at physical VMEM minus headroom for Mosaic scratch."""
    img = H * W * C * 4                       # one f32 image
    wbytes = 2 * 9 * C * C * 2                # both conv weight tensors, bf16
    est = (4 * img                            # double-buffered x block + out block
           + 12 * img                         # in-kernel temporaries (pad/taps/patches/acc/stage out)
           + 2 * wbytes                       # weights, double-buffered
           + (2 << 20))                       # slack for Mosaic internals
    try:
        cap = pltpu.get_tpu_info().vmem_capacity_bytes - (12 << 20)
    except Exception:
        cap = 48 << 20                        # conservative: safe on v7x (64 MiB physical)
    return int(min(max(est, 4 << 20), cap))


def resnet_block_forward_nhwc(x_nhwc, params, *, alias_input=False,
                              dot_dtype=DOT_DTYPE):
    """Fused ResnetBlock forward, NHWC in / NHWC out (single pallas_call over batch).

    params = (w1, w2): each (9, Cin, Cout) with w[ky*3+kx, ci, co] ==
    torch_weight[co, ci, ky, kx].  Conv biases are not taken: they cancel
    exactly under the affine-free InstanceNorm.

    alias_input=True aliases the output with x (only worthwhile when the caller
    can actually donate the NHWC buffer; otherwise XLA inserts a copy)."""
    w1, w2 = params
    N, H, W, C = x_nhwc.shape
    folded = (C % 128 == 0)                   # lane-aligned -> fold kx taps into K=3C

    def prep(w):
        w = w.astype(dot_dtype)
        if folded:
            # (9, C, C)[ky*3+kx, ci, co] -> (3, 3C, C)[ky, kx*C+ci, co]
            w = w.reshape(3, 3, C, C).reshape(3, 3 * C, C)
        return w

    w1p, w2p = prep(w1), prep(w2)
    w_block = w1p.shape                       # (3, 3C, C) or (9, C, C)

    grid_spec = pltpu.PrefetchScalarGridSpec(
        num_scalar_prefetch=0,
        grid=(N,),
        in_specs=[
            pl.BlockSpec((None, H, W, C), lambda n: (n, 0, 0, 0)),   # x (also residual)
            pl.BlockSpec(w_block, lambda n: (0, 0, 0)),              # conv1 weights
            pl.BlockSpec(w_block, lambda n: (0, 0, 0)),              # conv2 weights
        ],
        out_specs=pl.BlockSpec((None, H, W, C), lambda n: (n, 0, 0, 0)),
    )
    kernel = functools.partial(_resnet_block_kernel, folded=folded,
                               dot_dtype=dot_dtype)
    return pl.pallas_call(
        kernel,
        out_shape=jax.ShapeDtypeStruct((N, H, W, C), x_nhwc.dtype),
        grid_spec=grid_spec,
        compiler_params=pltpu.CompilerParams(
            dimension_semantics=("parallel",),            # batch across TCs (v7x)
            vmem_limit_bytes=_vmem_limit_bytes(H, W, C),
        ),
        input_output_aliases={0: 0} if alias_input else {},
    )(x_nhwc, w1p, w2p)


def resnet_block_forward(x_nchw, params):
    """PyTorch-equivalent forward: out = x + conv_block(x). NCHW in / NCHW out.
    # TODO(synk): in an NHWC production graph call resnet_block_forward_nhwc
    # directly — each transpose here is a full HBM pass outside the kernel."""
    x = jnp.transpose(x_nchw, (0, 2, 3, 1))               # NCHW -> NHWC
    out = resnet_block_forward_nhwc(x, params)
    return jnp.transpose(out, (0, 3, 1, 2))               # NHWC -> NCHW


# ---------------- pure-JAX reference (for correctness check only) -------------
def reference_forward(x_nchw, w1, b1, w2, b2, compute_dtype=jnp.float32):
    """compute_dtype=f32: exact PyTorch semantics (with biases).  bf16: mirrors
    the kernel's bf16-matmul / f32-accumulation path."""
    x = jnp.transpose(x_nchw, (0, 2, 3, 1)).astype(jnp.float32)

    def stage(inp, w9, b, relu):
        p = jnp.pad(inp.astype(compute_dtype), ((0, 0), (1, 1), (1, 1), (0, 0)),
                    mode="reflect")
        w_hwio = w9.astype(compute_dtype).reshape(3, 3, w9.shape[1], w9.shape[2])
        y = jax.lax.conv_general_dilated(
            p, w_hwio, (1, 1), "VALID",
            dimension_numbers=("NHWC", "HWIO", "NHWC"),
            preferred_element_type=jnp.float32) + b.astype(jnp.float32)
        mean = jnp.mean(y, axis=(1, 2), keepdims=True)
        var = jnp.mean((y - mean) ** 2, axis=(1, 2), keepdims=True)
        y = (y - mean) * jax.lax.rsqrt(var + EPS)
        return jnp.maximum(y, 0.0) if relu else y

    y1 = stage(x, w1, b1, True)
    y2 = stage(y1, w2, b2, False)
    return jnp.transpose(x + y2, (0, 3, 1, 2))


if __name__ == "__main__":
    key = jax.random.PRNGKey(0)
    kx_, k1, k2, k3, k4 = jax.random.split(key, 5)

    N, C, H, W = 2, 4, 16, 16          # dim = 4
    x = jax.random.normal(kx_, (N, C, H, W), jnp.float32)

    # Deterministic synthetic Conv2d(dim, dim, 3, bias=True) parameters
    # (PyTorch-style uniform(-1/sqrt(fan_in), 1/sqrt(fan_in)) bound).
    fan_in = C * 3 * 3
    bound = 1.0 / math.sqrt(fan_in)
    w1 = jax.random.uniform(k1, (9, C, C), jnp.float32, -bound, bound)
    b1 = jax.random.uniform(k2, (C,), jnp.float32, -bound, bound)
    w2 = jax.random.uniform(k3, (9, C, C), jnp.float32, -bound, bound)
    b2 = jax.random.uniform(k4, (C,), jnp.float32, -bound, bound)

    # References include the biases; the kernel drops them because they cancel
    # exactly in the affine-free InstanceNorm — the asserts demonstrate that.
    ref_f32 = reference_forward(x, w1, b1, w2, b2, compute_dtype=jnp.float32)
    ref_bf16 = reference_forward(x, w1, b1, w2, b2, compute_dtype=jnp.bfloat16)
    jax.block_until_ready((ref_f32, ref_bf16))

    out = resnet_block_forward(x, (w1, w2))
    jax.block_until_ready(out)

    # Tight check vs. a reference mirroring the kernel's bf16 matmul path.
    np.testing.assert_allclose(np.asarray(out), np.asarray(ref_bf16),
                               rtol=2e-2, atol=2e-2)
    # Semantic check vs. the exact f32 (PyTorch-equivalent, bias-included) reference.
    np.testing.assert_allclose(np.asarray(out), np.asarray(ref_f32),
                               rtol=1e-1, atol=1e-1)
    print("KERNEL_OK")
</pallas_src>

<mosaic_0001>
module attributes {stable_mosaic.version = 11 : i64} {
  func.func @_resnet_block_kernel(%arg0: i32, %arg1: memref<1x16x16x4xf32, #tpu.memory_space<vmem>>, %arg2: memref<9x4x4xbf16, #tpu.memory_space<vmem>>, %arg3: memref<9x4x4xbf16, #tpu.memory_space<vmem>>, %arg4: memref<1x16x16x4xf32, #tpu.memory_space<vmem>>) attributes {dimension_semantics = [#tpu.dimension_semantics<parallel>], iteration_bounds = array<i64: 2>, scalar_prefetch = 0 : i64, scratch_operands = 0 : i64, tpu.core_type = #tpu.core_type<tc>, window_params = [{transform_indices = @transform_0, window_bounds = array<i64: 1, 16, 16, 4>}, {pipeline_mode = #tpu.pipeline_mode<synchronous>, transform_indices = @transform_1, window_bounds = array<i64: 9, 4, 4>}, {pipeline_mode = #tpu.pipeline_mode<synchronous>, transform_indices = @transform_2, window_bounds = array<i64: 9, 4, 4>}, {transform_indices = @transform_3, window_bounds = array<i64: 1, 16, 16, 4>}]} {
    %c0 = arith.constant 0 : index
    %c0_0 = arith.constant 0 : index
    %c0_1 = arith.constant 0 : index
    %c0_2 = arith.constant 0 : index
    %0 = vector.load %arg1[%c0, %c0_0, %c0_1, %c0_2] : memref<1x16x16x4xf32, #tpu.memory_space<vmem>>, vector<1x16x16x4xf32>
    %1 = vector.shape_cast %0 : vector<1x16x16x4xf32> to vector<16x16x4xf32>
    %2 = vector.extract_strided_slice %1 {offsets = [1, 0, 0], sizes = [1, 16, 4], strides = [1, 1, 1]} : vector<16x16x4xf32> to vector<1x16x4xf32>
    %3 = vector.extract_strided_slice %1 {offsets = [14, 0, 0], sizes = [1, 16, 4], strides = [1, 1, 1]} : vector<16x16x4xf32> to vector<1x16x4xf32>
    %4 = tpu.concatenate %2, %1, %3 in 0 : vector<1x16x4xf32>, vector<16x16x4xf32>, vector<1x16x4xf32> -> vector<18x16x4xf32>
    %5 = vector.shape_cast %4 : vector<18x16x4xf32> to vector<288x4xf32>
    %c1_i32 = arith.constant 1 : i32
    %6 = tpu.dynamic_rotate %5 by %c1_i32 dim 0 : vector<288x4xf32>, i32 -> vector<288x4xf32>
    %7 = vector.shape_cast %6 : vector<288x4xf32> to vector<18x16x4xf32>
    %c287_i32 = arith.constant 287 : i32
    %8 = tpu.dynamic_rotate %5 by %c287_i32 dim 0 : vector<288x4xf32>, i32 -> vector<288x4xf32>
    %9 = vector.shape_cast %8 : vector<288x4xf32> to vector<18x16x4xf32>
    %10 = tpu.iota {dimensions = array<i32: 1>} : vector<1x16x1xi32>
    %c0_i32 = arith.constant 0 : i32
    %11 = vector.broadcast %c0_i32 : i32 to vector<1x16x1xi32>
    %12 = arith.cmpi eq, %10, %11 : vector<1x16x1xi32>
    %13 = vector.extract_strided_slice %4 {offsets = [0, 1, 0], sizes = [18, 1, 4], strides = [1, 1, 1]} : vector<18x16x4xf32> to vector<18x1x4xf32>
    %14 = vector.shape_cast %12 : vector<1x16x1xi1> to vector<1x16x1xi1>
    %15 = vector.broadcast %14 : vector<1x16x1xi1> to vector<18x16x4xi1>
    %16 = vector.shape_cast %13 : vector<18x1x4xf32> to vector<18x1x4xf32>
    %17 = vector.broadcast %16 : vector<18x1x4xf32> to vector<18x16x4xf32>
    %18 = arith.select %15, %17, %7 : vector<18x16x4xi1>, vector<18x16x4xf32>
    %c15_i32 = arith.constant 15 : i32
    %19 = vector.broadcast %c15_i32 : i32 to vector<1x16x1xi32>
    %20 = arith.cmpi eq, %10, %19 : vector<1x16x1xi32>
    %21 = vector.extract_strided_slice %4 {offsets = [0, 14, 0], sizes = [18, 1, 4], strides = [1, 1, 1]} : vector<18x16x4xf32> to vector<18x1x4xf32>
    %22 = vector.shape_cast %20 : vector<1x16x1xi1> to vector<1x16x1xi1>
    %23 = vector.broadcast %22 : vector<1x16x1xi1> to vector<18x16x4xi1>
    %24 = vector.shape_cast %21 : vector<18x1x4xf32> to vector<18x1x4xf32>
    %25 = vector.broadcast %24 : vector<18x1x4xf32> to vector<18x16x4xf32>
    %26 = arith.select %23, %25, %9 : vector<18x16x4xi1>, vector<18x16x4xf32>
    %27 = arith.truncf %18 : vector<18x16x4xf32> to vector<18x16x4xbf16>
    %28 = arith.truncf %4 : vector<18x16x4xf32> to vector<18x16x4xbf16>
    %29 = arith.truncf %26 : vector<18x16x4xf32> to vector<18x16x4xbf16>
    %30 = vector.extract_strided_slice %27 {offsets = [0, 0, 0], sizes = [16, 16, 4], strides = [1, 1, 1]} : vector<18x16x4xbf16> to vector<16x16x4xbf16>
    %31 = vector.shape_cast %30 : vector<16x16x4xbf16> to vector<256x4xbf16>
    %c0_3 = arith.constant 0 : index
    %c0_4 = arith.constant 0 : index
    %c0_5 = arith.constant 0 : index
    %32 = vector.load %arg2[%c0_3, %c0_4, %c0_5] : memref<9x4x4xbf16, #tpu.memory_space<vmem>>, vector<1x4x4xbf16>
    %33 = vector.shape_cast %32 : vector<1x4x4xbf16> to vector<4x4xbf16>
    %cst = arith.constant dense<0.000000e+00> : vector<256x4xf32>
    %34 = tpu.matmul %31, %33, %cst {dimension_numbers = #tpu.dot_dimension_numbers<[1], [0], [0], [1], [0, 0, 1, 1], [], []>} : vector<256x4xbf16>, vector<4x4xbf16>, vector<256x4xf32> -> vector<256x4xf32>
    %35 = vector.extract_strided_slice %28 {offsets = [0, 0, 0], sizes = [16, 16, 4], strides = [1, 1, 1]} : vector<18x16x4xbf16> to vector<16x16x4xbf16>
    %36 = vector.shape_cast %35 : vector<16x16x4xbf16> to vector<256x4xbf16>
    %c1 = arith.constant 1 : index
    %c0_6 = arith.constant 0 : index
    %c0_7 = arith.constant 0 : index
    %37 = vector.load %arg2[%c1, %c0_6, %c0_7] : memref<9x4x4xbf16, #tpu.memory_space<vmem>>, vector<1x4x4xbf16>
    %38 = vector.shape_cast %37 : vector<1x4x4xbf16> to vector<4x4xbf16>
    %cst_8 = arith.constant dense<0.000000e+00> : vector<256x4xf32>
    %39 = tpu.matmul %36, %38, %cst_8 {dimension_numbers = #tpu.dot_dimension_numbers<[1], [0], [0], [1], [0, 0, 1, 1], [], []>} : vector<256x4xbf16>, vector<4x4xbf16>, vector<256x4xf32> -> vector<256x4xf32>
    %40 = arith.addf %34, %39 : vector<256x4xf32>
    %41 = vector.extract_strided_slice %29 {offsets = [0, 0, 0], sizes = [16, 16, 4], strides = [1, 1, 1]} : vector<18x16x4xbf16> to vector<16x16x4xbf16>
    %42 = vector.shape_cast %41 : vector<16x16x4xbf16> to vector<256x4xbf16>
    %c2 = arith.constant 2 : index
    %c0_9 = arith.constant 0 : index
    %c0_10 = arith.constant 0 : index
    %43 = vector.load %arg2[%c2, %c0_9, %c0_10] : memref<9x4x4xbf16, #tpu.memory_space<vmem>>, vector<1x4x4xbf16>
    %44 = vector.shape_cast %43 : vector<1x4x4xbf16> to vector<4x4xbf16>
    %cst_11 = arith.constant dense<0.000000e+00> : vector<256x4xf32>
    %45 = tpu.matmul %42, %44, %cst_11 {dimension_numbers = #tpu.dot_dimension_numbers<[1], [0], [0], [1], [0, 0, 1, 1], [], []>} : vector<256x4xbf16>, vector<4x4xbf16>, vector<256x4xf32> -> vector<256x4xf32>
    %46 = arith.addf %40, %45 : vector<256x4xf32>
    %47 = vector.extract_strided_slice %27 {offsets = [1, 0, 0], sizes = [16, 16, 4], strides = [1, 1, 1]} : vector<18x16x4xbf16> to vector<16x16x4xbf16>
    %48 = vector.shape_cast %47 : vector<16x16x4xbf16> to vector<256x4xbf16>
    %c3 = arith.constant 3 : index
    %c0_12 = arith.constant 0 : index
    %c0_13 = arith.constant 0 : index
    %49 = vector.load %arg2[%c3, %c0_12, %c0_13] : memref<9x4x4xbf16, #tpu.memory_space<vmem>>, vector<1x4x4xbf16>
    %50 = vector.shape_cast %49 : vector<1x4x4xbf16> to vector<4x4xbf16>
    %cst_14 = arith.constant dense<0.000000e+00> : vector<256x4xf32>
    %51 = tpu.matmul %48, %50, %cst_14 {dimension_numbers = #tpu.dot_dimension_numbers<[1], [0], [0], [1], [0, 0, 1, 1], [], []>} : vector<256x4xbf16>, vector<4x4xbf16>, vector<256x4xf32> -> vector<256x4xf32>
    %52 = arith.addf %46, %51 : vector<256x4xf32>
    %53 = vector.extract_strided_slice %28 {offsets = [1, 0, 0], sizes = [16, 16, 4], strides = [1, 1, 1]} : vector<18x16x4xbf16> to vector<16x16x4xbf16>
    %54 = vector.shape_cast %53 : vector<16x16x4xbf16> to vector<256x4xbf16>
    %c4 = arith.constant 4 : index
    %c0_15 = arith.constant 0 : index
    %c0_16 = arith.constant 0 : index
    %55 = vector.load %arg2[%c4, %c0_15, %c0_16] : memref<9x4x4xbf16, #tpu.memory_space<vmem>>, vector<1x4x4xbf16>
    %56 = vector.shape_cast %55 : vector<1x4x4xbf16> to vector<4x4xbf16>
    %cst_17 = arith.constant dense<0.000000e+00> : vector<256x4xf32>
    %57 = tpu.matmul %54, %56, %cst_17 {dimension_numbers = #tpu.dot_dimension_numbers<[1], [0], [0], [1], [0, 0, 1, 1], [], []>} : vector<256x4xbf16>, vector<4x4xbf16>, vector<256x4xf32> -> vector<256x4xf32>
    %58 = arith.addf %52, %57 : vector<256x4xf32>
    %59 = vector.extract_strided_slice %29 {offsets = [1, 0, 0], sizes = [16, 16, 4], strides = [1, 1, 1]} : vector<18x16x4xbf16> to vector<16x16x4xbf16>
    %60 = vector.shape_cast %59 : vector<16x16x4xbf16> to vector<256x4xbf16>
    %c5 = arith.constant 5 : index
    %c0_18 = arith.constant 0 : index
    %c0_19 = arith.constant 0 : index
    %61 = vector.load %arg2[%c5, %c0_18, %c0_19] : memref<9x4x4xbf16, #tpu.memory_space<vmem>>, vector<1x4x4xbf16>
    %62 = vector.shape_cast %61 : vector<1x4x4xbf16> to vector<4x4xbf16>
    %cst_20 = arith.constant dense<0.000000e+00> : vector<256x4xf32>
    %63 = tpu.matmul %60, %62, %cst_20 {dimension_numbers = #tpu.dot_dimension_numbers<[1], [0], [0], [1], [0, 0, 1, 1], [], []>} : vector<256x4xbf16>, vector<4x4xbf16>, vector<256x4xf32> -> vector<256x4xf32>
    %64 = arith.addf %58, %63 : vector<256x4xf32>
    %65 = vector.extract_strided_slice %27 {offsets = [2, 0, 0], sizes = [16, 16, 4], strides = [1, 1, 1]} : vector<18x16x4xbf16> to vector<16x16x4xbf16>
    %66 = vector.shape_cast %65 : vector<16x16x4xbf16> to vector<256x4xbf16>
    %c6 = arith.constant 6 : index
    %c0_21 = arith.constant 0 : index
    %c0_22 = arith.constant 0 : index
    %67 = vector.load %arg2[%c6, %c0_21, %c0_22] : memref<9x4x4xbf16, #tpu.memory_space<vmem>>, vector<1x4x4xbf16>
    %68 = vector.shape_cast %67 : vector<1x4x4xbf16> to vector<4x4xbf16>
    %cst_23 = arith.constant dense<0.000000e+00> : vector<256x4xf32>
    %69 = tpu.matmul %66, %68, %cst_23 {dimension_numbers = #tpu.dot_dimension_numbers<[1], [0], [0], [1], [0, 0, 1, 1], [], []>} : vector<256x4xbf16>, vector<4x4xbf16>, vector<256x4xf32> -> vector<256x4xf32>
    %70 = arith.addf %64, %69 : vector<256x4xf32>
    %71 = vector.extract_strided_slice %28 {offsets = [2, 0, 0], sizes = [16, 16, 4], strides = [1, 1, 1]} : vector<18x16x4xbf16> to vector<16x16x4xbf16>
    %72 = vector.shape_cast %71 : vector<16x16x4xbf16> to vector<256x4xbf16>
    %c7 = arith.constant 7 : index
    %c0_24 = arith.constant 0 : index
    %c0_25 = arith.constant 0 : index
    %73 = vector.load %arg2[%c7, %c0_24, %c0_25] : memref<9x4x4xbf16, #tpu.memory_space<vmem>>, vector<1x4x4xbf16>
    %74 = vector.shape_cast %73 : vector<1x4x4xbf16> to vector<4x4xbf16>
    %cst_26 = arith.constant dense<0.000000e+00> : vector<256x4xf32>
    %75 = tpu.matmul %72, %74, %cst_26 {dimension_numbers = #tpu.dot_dimension_numbers<[1], [0], [0], [1], [0, 0, 1, 1], [], []>} : vector<256x4xbf16>, vector<4x4xbf16>, vector<256x4xf32> -> vector<256x4xf32>
    %76 = arith.addf %70, %75 : vector<256x4xf32>
    %77 = vector.extract_strided_slice %29 {offsets = [2, 0, 0], sizes = [16, 16, 4], strides = [1, 1, 1]} : vector<18x16x4xbf16> to vector<16x16x4xbf16>
    %78 = vector.shape_cast %77 : vector<16x16x4xbf16> to vector<256x4xbf16>
    %c8 = arith.constant 8 : index
    %c0_27 = arith.constant 0 : index
    %c0_28 = arith.constant 0 : index
    %79 = vector.load %arg2[%c8, %c0_27, %c0_28] : memref<9x4x4xbf16, #tpu.memory_space<vmem>>, vector<1x4x4xbf16>
    %80 = vector.shape_cast %79 : vector<1x4x4xbf16> to vector<4x4xbf16>
    %cst_29 = arith.constant dense<0.000000e+00> : vector<256x4xf32>
    %81 = tpu.matmul %78, %80, %cst_29 {dimension_numbers = #tpu.dot_dimension_numbers<[1], [0], [0], [1], [0, 0, 1, 1], [], []>} : vector<256x4xbf16>, vector<4x4xbf16>, vector<256x4xf32> -> vector<256x4xf32>
    %82 = arith.addf %76, %81 : vector<256x4xf32>
    %cst_30 = arith.constant dense<0.000000e+00> : vector<4xf32>
    %83 = vector.multi_reduction <add>, %82, %cst_30 [0] : vector<256x4xf32> to vector<4xf32>
    %84 = vector.shape_cast %83 : vector<4xf32> to vector<1x4xf32>
    %85 = arith.mulf %82, %82 : vector<256x4xf32>
    %cst_31 = arith.constant dense<0.000000e+00> : vector<4xf32>
    %86 = vector.multi_reduction <add>, %85, %cst_31 [0] : vector<256x4xf32> to vector<4xf32>
    %87 = vector.shape_cast %86 : vector<4xf32> to vector<1x4xf32>
    %cst_32 = arith.constant 3.906250e-03 : f32
    %88 = vector.broadcast %cst_32 : f32 to vector<1x4xf32>
    %89 = arith.mulf %84, %88 : vector<1x4xf32>
    %cst_33 = arith.constant 3.906250e-03 : f32
    %90 = vector.broadcast %cst_33 : f32 to vector<1x4xf32>
    %91 = arith.mulf %87, %90 : vector<1x4xf32>
    %92 = arith.mulf %89, %89 : vector<1x4xf32>
    %93 = arith.subf %91, %92 : vector<1x4xf32>
    %cst_34 = arith.constant 0.000000e+00 : f32
    %94 = vector.broadcast %cst_34 : f32 to vector<1x4xf32>
    %95 = arith.maximumf %93, %94 : vector<1x4xf32>
    %96 = vector.broadcast %89 : vector<1x4xf32> to vector<256x4xf32>
    %97 = arith.subf %82, %96 : vector<256x4xf32>
    %cst_35 = arith.constant 9.99999974E-6 : f32
    %98 = vector.broadcast %cst_35 : f32 to vector<1x4xf32>
    %99 = arith.addf %95, %98 : vector<1x4xf32>
    %100 = math.rsqrt %99 : vector<1x4xf32>
    %101 = vector.broadcast %100 : vector<1x4xf32> to vector<256x4xf32>
    %102 = arith.mulf %97, %101 : vector<256x4xf32>
    %103 = vector.shape_cast %102 : vector<256x4xf32> to vector<16x16x4xf32>
    %cst_36 = arith.constant 0.000000e+00 : f32
    %104 = vector.broadcast %cst_36 : f32 to vector<16x16x4xf32>
    %105 = arith.maximumf %103, %104 : vector<16x16x4xf32>
    %106 = vector.extract_strided_slice %105 {offsets = [1, 0, 0], sizes = [1, 16, 4], strides = [1, 1, 1]} : vector<16x16x4xf32> to vector<1x16x4xf32>
    %107 = vector.extract_strided_slice %105 {offsets = [14, 0, 0], sizes = [1, 16, 4], strides = [1, 1, 1]} : vector<16x16x4xf32> to vector<1x16x4xf32>
    %108 = tpu.concatenate %106, %105, %107 in 0 : vector<1x16x4xf32>, vector<16x16x4xf32>, vector<1x16x4xf32> -> vector<18x16x4xf32>
    %109 = vector.shape_cast %108 : vector<18x16x4xf32> to vector<288x4xf32>
    %c1_i32_37 = arith.constant 1 : i32
    %110 = tpu.dynamic_rotate %109 by %c1_i32_37 dim 0 : vector<288x4xf32>, i32 -> vector<288x4xf32>
    %111 = vector.shape_cast %110 : vector<288x4xf32> to vector<18x16x4xf32>
    %c287_i32_38 = arith.constant 287 : i32
    %112 = tpu.dynamic_rotate %109 by %c287_i32_38 dim 0 : vector<288x4xf32>, i32 -> vector<288x4xf32>
    %113 = vector.shape_cast %112 : vector<288x4xf32> to vector<18x16x4xf32>
    %114 = tpu.iota {dimensions = array<i32: 1>} : vector<1x16x1xi32>
    %c0_i32_39 = arith.constant 0 : i32
    %115 = vector.broadcast %c0_i32_39 : i32 to vector<1x16x1xi32>
    %116 = arith.cmpi eq, %114, %115 : vector<1x16x1xi32>
    %117 = vector.extract_strided_slice %108 {offsets = [0, 1, 0], sizes = [18, 1, 4], strides = [1, 1, 1]} : vector<18x16x4xf32> to vector<18x1x4xf32>
    %118 = vector.shape_cast %116 : vector<1x16x1xi1> to vector<1x16x1xi1>
    %119 = vector.broadcast %118 : vector<1x16x1xi1> to vector<18x16x4xi1>
    %120 = vector.shape_cast %117 : vector<18x1x4xf32> to vector<18x1x4xf32>
    %121 = vector.broadcast %120 : vector<18x1x4xf32> to vector<18x16x4xf32>
    %122 = arith.select %119, %121, %111 : vector<18x16x4xi1>, vector<18x16x4xf32>
    %c15_i32_40 = arith.constant 15 : i32
    %123 = vector.broadcast %c15_i32_40 : i32 to vector<1x16x1xi32>
    %124 = arith.cmpi eq, %114, %123 : vector<1x16x1xi32>
    %125 = vector.extract_strided_slice %108 {offsets = [0, 14, 0], sizes = [18, 1, 4], strides = [1, 1, 1]} : vector<18x16x4xf32> to vector<18x1x4xf32>
    %126 = vector.shape_cast %124 : vector<1x16x1xi1> to vector<1x16x1xi1>
    %127 = vector.broadcast %126 : vector<1x16x1xi1> to vector<18x16x4xi1>
    %128 = vector.shape_cast %125 : vector<18x1x4xf32> to vector<18x1x4xf32>
    %129 = vector.broadcast %128 : vector<18x1x4xf32> to vector<18x16x4xf32>
    %130 = arith.select %127, %129, %113 : vector<18x16x4xi1>, vector<18x16x4xf32>
    %131 = arith.truncf %122 : vector<18x16x4xf32> to vector<18x16x4xbf16>
    %132 = arith.truncf %108 : vector<18x16x4xf32> to vector<18x16x4xbf16>
    %133 = arith.truncf %130 : vector<18x16x4xf32> to vector<18x16x4xbf16>
    %134 = vector.extract_strided_slice %131 {offsets = [0, 0, 0], sizes = [16, 16, 4], strides = [1, 1, 1]} : vector<18x16x4xbf16> to vector<16x16x4xbf16>
    %135 = vector.shape_cast %134 : vector<16x16x4xbf16> to vector<256x4xbf16>
    %c0_41 = arith.constant 0 : index
    %c0_42 = arith.constant 0 : index
    %c0_43 = arith.constant 0 : index
    %136 = vector.load %arg3[%c0_41, %c0_42, %c0_43] : memref<9x4x4xbf16, #tpu.memory_space<vmem>>, vector<1x4x4xbf16>
    %137 = vector.shape_cast %136 : vector<1x4x4xbf16> to vector<4x4xbf16>
    %cst_44 = arith.constant dense<0.000000e+00> : vector<256x4xf32>
    %138 = tpu.matmul %135, %137, %cst_44 {dimension_numbers = #tpu.dot_dimension_numbers<[1], [0], [0], [1], [0, 0, 1, 1], [], []>} : vector<256x4xbf16>, vector<4x4xbf16>, vector<256x4xf32> -> vector<256x4xf32>
    %139 = vector.extract_strided_slice %132 {offsets = [0, 0, 0], sizes = [16, 16, 4], strides = [1, 1, 1]} : vector<18x16x4xbf16> to vector<16x16x4xbf16>
    %140 = vector.shape_cast %139 : vector<16x16x4xbf16> to vector<256x4xbf16>
    %c1_45 = arith.constant 1 : index
    %c0_46 = arith.constant 0 : index
    %c0_47 = arith.constant 0 : index
    %141 = vector.load %arg3[%c1_45, %c0_46, %c0_47] : memref<9x4x4xbf16, #tpu.memory_space<vmem>>, vector<1x4x4xbf16>
    %142 = vector.shape_cast %141 : vector<1x4x4xbf16> to vector<4x4xbf16>
    %cst_48 = arith.constant dense<0.000000e+00> : vector<256x4xf32>
    %143 = tpu.matmul %140, %142, %cst_48 {dimension_numbers = #tpu.dot_dimension_numbers<[1], [0], [0], [1], [0, 0, 1, 1], [], []>} : vector<256x4xbf16>, vector<4x4xbf16>, vector<256x4xf32> -> vector<256x4xf32>
    %144 = arith.addf %138, %143 : vector<256x4xf32>
    %145 = vector.extract_strided_slice %133 {offsets = [0, 0, 0], sizes = [16, 16, 4], strides = [1, 1, 1]} : vector<18x16x4xbf16> to vector<16x16x4xbf16>
    %146 = vector.shape_cast %145 : vector<16x16x4xbf16> to vector<256x4xbf16>
    %c2_49 = arith.constant 2 : index
    %c0_50 = arith.constant 0 : index
    %c0_51 = arith.constant 0 : index
    %147 = vector.load %arg3[%c2_49, %c0_50, %c0_51] : memref<9x4x4xbf16, #tpu.memory_space<vmem>>, vector<1x4x4xbf16>
    %148 = vector.shape_cast %147 : vector<1x4x4xbf16> to vector<4x4xbf16>
    %cst_52 = arith.constant dense<0.000000e+00> : vector<256x4xf32>
    %149 = tpu.matmul %146, %148, %cst_52 {dimension_numbers = #tpu.dot_dimension_numbers<[1], [0], [0], [1], [0, 0, 1, 1], [], []>} : vector<256x4xbf16>, vector<4x4xbf16>, vector<256x4xf32> -> vector<256x4xf32>
    %150 = arith.addf %144, %149 : vector<256x4xf32>
    %151 = vector.extract_strided_slice %131 {offsets = [1, 0, 0], sizes = [16, 16, 4], strides = [1, 1, 1]} : vector<18x16x4xbf16> to vector<16x16x4xbf16>
    %152 = vector.shape_cast %151 : vector<16x16x4xbf16> to vector<256x4xbf16>
    %c3_53 = arith.constant 3 : index
    %c0_54 = arith.constant 0 : index
    %c0_55 = arith.constant 0 : index
    %153 = vector.load %arg3[%c3_53, %c0_54, %c0_55] : memref<9x4x4xbf16, #tpu.memory_space<vmem>>, vector<1x4x4xbf16>
    %154 = vector.shape_cast %153 : vector<1x4x4xbf16> to vector<4x4xbf16>
    %cst_56 = arith.constant dense<0.000000e+00> : vector<256x4xf32>
    %155 = tpu.matmul %152, %154, %cst_56 {dimension_numbers = #tpu.dot_dimension_numbers<[1], [0], [0], [1], [0, 0, 1, 1], [], []>} : vector<256x4xbf16>, vector<4x4xbf16>, vector<256x4xf32> -> vector<256x4xf32>
    %156 = arith.addf %150, %155 : vector<256x4xf32>
    %157 = vector.extract_strided_slice %132 {offsets = [1, 0, 0], sizes = [16, 16, 4], strides = [1, 1, 1]} : vector<18x16x4xbf16> to vector<16x16x4xbf16>
    %158 = vector.shape_cast %157 : vector<16x16x4xbf16> to vector<256x4xbf16>
    %c4_57 = arith.constant 4 : index
    %c0_58 = arith.constant 0 : index
    %c0_59 = arith.constant 0 : index
    %159 = vector.load %arg3[%c4_57, %c0_58, %c0_59] : memref<9x4x4xbf16, #tpu.memory_space<vmem>>, vector<1x4x4xbf16>
    %160 = vector.shape_cast %159 : vector<1x4x4xbf16> to vector<4x4xbf16>
    %cst_60 = arith.constant dense<0.000000e+00> : vector<256x4xf32>
    %161 = tpu.matmul %158, %160, %cst_60 {dimension_numbers = #tpu.dot_dimension_numbers<[1], [0], [0], [1], [0, 0, 1, 1], [], []>} : vector<256x4xbf16>, vector<4x4xbf16>, vector<256x4xf32> -> vector<256x4xf32>
    %162 = arith.addf %156, %161 : vector<256x4xf32>
    %163 = vector.extract_strided_slice %133 {offsets = [1, 0, 0], sizes = [16, 16, 4], strides = [1, 1, 1]} : vector<18x16x4xbf16> to vector<16x16x4xbf16>
    %164 = vector.shape_cast %163 : vector<16x16x4xbf16> to vector<256x4xbf16>
    %c5_61 = arith.constant 5 : index
    %c0_62 = arith.constant 0 : index
    %c0_63 = arith.constant 0 : index
    %165 = vector.load %arg3[%c5_61, %c0_62, %c0_63] : memref<9x4x4xbf16, #tpu.memory_space<vmem>>, vector<1x4x4xbf16>
    %166 = vector.shape_cast %165 : vector<1x4x4xbf16> to vector<4x4xbf16>
    %cst_64 = arith.constant dense<0.000000e+00> : vector<256x4xf32>
    %167 = tpu.matmul %164, %166, %cst_64 {dimension_numbers = #tpu.dot_dimension_numbers<[1], [0], [0], [1], [0, 0, 1, 1], [], []>} : vector<256x4xbf16>, vector<4x4xbf16>, vector<256x4xf32> -> vector<256x4xf32>
    %168 = arith.addf %162, %167 : vector<256x4xf32>
    %169 = vector.extract_strided_slice %131 {offsets = [2, 0, 0], sizes = [16, 16, 4], strides = [1, 1, 1]} : vector<18x16x4xbf16> to vector<16x16x4xbf16>
    %170 = vector.shape_cast %169 : vector<16x16x4xbf16> to vector<256x4xbf16>
    %c6_65 = arith.constant 6 : index
    %c0_66 = arith.constant 0 : index
    %c0_67 = arith.constant 0 : index
    %171 = vector.load %arg3[%c6_65, %c0_66, %c0_67] : memref<9x4x4xbf16, #tpu.memory_space<vmem>>, vector<1x4x4xbf16>
    %172 = vector.shape_cast %171 : vector<1x4x4xbf16> to vector<4x4xbf16>
    %cst_68 = arith.constant dense<0.000000e+00> : vector<256x4xf32>
    %173 = tpu.matmul %170, %172, %cst_68 {dimension_numbers = #tpu.dot_dimension_numbers<[1], [0], [0], [1], [0, 0, 1, 1], [], []>} : vector<256x4xbf16>, vector<4x4xbf16>, vector<256x4xf32> -> vector<256x4xf32>
    %174 = arith.addf %168, %173 : vector<256x4xf32>
    %175 = vector.extract_strided_slice %132 {offsets = [2, 0, 0], sizes = [16, 16, 4], strides = [1, 1, 1]} : vector<18x16x4xbf16> to vector<16x16x4xbf16>
    %176 = vector.shape_cast %175 : vector<16x16x4xbf16> to vector<256x4xbf16>
    %c7_69 = arith.constant 7 : index
    %c0_70 = arith.constant 0 : index
    %c0_71 = arith.constant 0 : index
    %177 = vector.load %arg3[%c7_69, %c0_70, %c0_71] : memref<9x4x4xbf16, #tpu.memory_space<vmem>>, vector<1x4x4xbf16>
    %178 = vector.shape_cast %177 : vector<1x4x4xbf16> to vector<4x4xbf16>
    %cst_72 = arith.constant dense<0.000000e+00> : vector<256x4xf32>
    %179 = tpu.matmul %176, %178, %cst_72 {dimension_numbers = #tpu.dot_dimension_numbers<[1], [0], [0], [1], [0, 0, 1, 1], [], []>} : vector<256x4xbf16>, vector<4x4xbf16>, vector<256x4xf32> -> vector<256x4xf32>
    %180 = arith.addf %174, %179 : vector<256x4xf32>
    %181 = vector.extract_strided_slice %133 {offsets = [2, 0, 0], sizes = [16, 16, 4], strides = [1, 1, 1]} : vector<18x16x4xbf16> to vector<16x16x4xbf16>
    %182 = vector.shape_cast %181 : vector<16x16x4xbf16> to vector<256x4xbf16>
    %c8_73 = arith.constant 8 : index
    %c0_74 = arith.constant 0 : index
    %c0_75 = arith.constant 0 : index
    %183 = vector.load %arg3[%c8_73, %c0_74, %c0_75] : memref<9x4x4xbf16, #tpu.memory_space<vmem>>, vector<1x4x4xbf16>
    %184 = vector.shape_cast %183 : vector<1x4x4xbf16> to vector<4x4xbf16>
    %cst_76 = arith.constant dense<0.000000e+00> : vector<256x4xf32>
    %185 = tpu.matmul %182, %184, %cst_76 {dimension_numbers = #tpu.dot_dimension_numbers<[1], [0], [0], [1], [0, 0, 1, 1], [], []>} : vector<256x4xbf16>, vector<4x4xbf16>, vector<256x4xf32> -> vector<256x4xf32>
    %186 = arith.addf %180, %185 : vector<256x4xf32>
    %cst_77 = arith.constant dense<0.000000e+00> : vector<4xf32>
    %187 = vector.multi_reduction <add>, %186, %cst_77 [0] : vector<256x4xf32> to vector<4xf32>
    %188 = vector.shape_cast %187 : vector<4xf32> to vector<1x4xf32>
    %189 = arith.mulf %186, %186 : vector<256x4xf32>
    %cst_78 = arith.constant dense<0.000000e+00> : vector<4xf32>
    %190 = vector.multi_reduction <add>, %189, %cst_78 [0] : vector<256x4xf32> to vector<4xf32>
    %191 = vector.shape_cast %190 : vector<4xf32> to vector<1x4xf32>
    %cst_79 = arith.constant 3.906250e-03 : f32
    %192 = vector.broadcast %cst_79 : f32 to vector<1x4xf32>
    %193 = arith.mulf %188, %192 : vector<1x4xf32>
    %cst_80 = arith.constant 3.906250e-03 : f32
    %194 = vector.broadcast %cst_80 : f32 to vector<1x4xf32>
    %195 = arith.mulf %191, %194 : vector<1x4xf32>
    %196 = arith.mulf %193, %193 : vector<1x4xf32>
    %197 = arith.subf %195, %196 : vector<1x4xf32>
    %cst_81 = arith.constant 0.000000e+00 : f32
    %198 = vector.broadcast %cst_81 : f32 to vector<1x4xf32>
    %199 = arith.maximumf %197, %198 : vector<1x4xf32>
    %200 = vector.broadcast %193 : vector<1x4xf32> to vector<256x4xf32>
    %201 = arith.subf %186, %200 : vector<256x4xf32>
    %cst_82 = arith.constant 9.99999974E-6 : f32
    %202 = vector.broadcast %cst_82 : f32 to vector<1x4xf32>
    %203 = arith.addf %199, %202 : vector<1x4xf32>
    %204 = math.rsqrt %203 : vector<1x4xf32>
    %205 = vector.broadcast %204 : vector<1x4xf32> to vector<256x4xf32>
    %206 = arith.mulf %201, %205 : vector<256x4xf32>
    %207 = vector.shape_cast %206 : vector<256x4xf32> to vector<16x16x4xf32>
    %c0_83 = arith.constant 0 : index
    %c0_84 = arith.constant 0 : index
    %c0_85 = arith.constant 0 : index
    %c0_86 = arith.constant 0 : index
    %208 = vector.load %arg1[%c0_83, %c0_84, %c0_85, %c0_86] : memref<1x16x16x4xf32, #tpu.memory_space<vmem>>, vector<1x16x16x4xf32>
    %209 = vector.shape_cast %208 : vector<1x16x16x4xf32> to vector<16x16x4xf32>
    %210 = arith.addf %209, %207 : vector<16x16x4xf32>
    %c0_87 = arith.constant 0 : index
    %c0_88 = arith.constant 0 : index
    %c0_89 = arith.constant 0 : index
    %c0_90 = arith.constant 0 : index
    %211 = vector.load %arg4[%c0_87, %c0_88, %c0_89, %c0_90] : memref<1x16x16x4xf32, #tpu.memory_space<vmem>>, vector<1x16x16x4xf32>
    %212 = vector.shape_cast %211 : vector<1x16x16x4xf32> to vector<16x16x4xf32>
    %213 = vector.shape_cast %210 : vector<16x16x4xf32> to vector<1x16x16x4xf32>
    tpu.vector_store %arg4[%c0_87, %c0_88, %c0_89, %c0_90], %213 {strides = array<i32>} : memref<1x16x16x4xf32, #tpu.memory_space<vmem>>, vector<1x16x16x4xf32>,
    return
  }
  func.func @transform_0(%arg0: i32) -> (i32, i32, i32, i32) {
    %c0_i32 = arith.constant 0 : i32
    %c0_i32_0 = arith.constant 0 : i32
    %c0_i32_1 = arith.constant 0 : i32
    %c0_i32_2 = arith.constant 0 : i32
    return %arg0, %c0_i32, %c0_i32_0, %c0_i32_1 : i32, i32, i32, i32
  }
  func.func @transform_1(%arg0: i32) -> (i32, i32, i32) {
    %c0_i32 = arith.constant 0 : i32
    %c0_i32_0 = arith.constant 0 : i32
    %c0_i32_1 = arith.constant 0 : i32
    %c0_i32_2 = arith.constant 0 : i32
    return %c0_i32, %c0_i32_0, %c0_i32_1 : i32, i32, i32
  }
  func.func @transform_2(%arg0: i32) -> (i32, i32, i32) {
    %c0_i32 = arith.constant 0 : i32
    %c0_i32_0 = arith.constant 0 : i32
    %c0_i32_1 = arith.constant 0 : i32
    %c0_i32_2 = arith.constant 0 : i32
    return %c0_i32, %c0_i32_0, %c0_i32_1 : i32, i32, i32
  }
  func.func @transform_3(%arg0: i32) -> (i32, i32, i32, i32) {
    %c0_i32 = arith.constant 0 : i32
    %c0_i32_0 = arith.constant 0 : i32
    %c0_i32_1 = arith.constant 0 : i32
    %c0_i32_2 = arith.constant 0 : i32
    return %arg0, %c0_i32, %c0_i32_0, %c0_i32_1 : i32, i32, i32, i32
  }
}

</mosaic_0001>

<bundles_post_ra>
// kernel: tpu_custom_call.1
= control target key start
LH: loop header
LB: loop body
LE: loop exit
PB: predicated region body
PF: predicated region fallthrough
CT: control target
= control target key end

     0   :  { %s6687_s12 = smov 0   ;;  %s10566_s0 = inlined_call_operand.vmem [shape: f32[2,16,16,4], index: 0, kind: input, shape index: {}]   ;;  %s10567_s1 = inlined_call_operand.vmem [shape: bf16[9,4,4], index: 1, kind: input, shape index: {}]   ;;  %s10568_s2 = inlined_call_operand.vmem [shape: bf16[9,4,4], index: 2, kind: input, shape index: {}]   ;;  %s10569_s3 = inlined_call_operand.vmem [shape: f32[2,16,16,4], index: 3, kind: output, shape index: {}]  }
   0x1 LB: > { %s5362_s13 = sadd.s32 4294967295, %s6665_s12   ;;  %p5366_p0 = scmp.ge.s32.totalorder %s6665_s12, 1  ;;  %s6665_s12 = sphi %s6687_s12, %s13_s12  }
   0x2   : > { %p137_p1 = scmp.lt.s32.totalorder %s6665_s12, 3 }
   0x4   : > { %p138_p2 = pnand %p5366_p0, %p137_p1 }
   0x6   : > { %141 = sbr.rel (%p138_p2) target bundleno = 1198 (0x4ae), region = 32 }
   0xb   : > { %v5371_v0 = vld [vmem:[%s10567_s1 + $0x2] sm:$0x3]  ;;  %vm650_vm0 = vcmask 1041408   ;;  %p161_p3 = scmp.lt.s32.totalorder %s5362_s13, 1  ;;  %v236_v1 = vlaneseq  ;;  %v5404_v3 = vld [vmem:[%s10567_s1 + $0x4] sm:$0x3] }
   0xc   : > { %6597 = vmatprep.subr.msk.bf16.mxu0 %vm650_vm0, %v5371_v0  ;;  %v652_v2 = vsel %vm650_vm0, %v5371_v0, 0  ;;  %v601_v4 = vld [vmem:[%s10567_s1] sm:$0x3]  ;;  %v5421_v7 = vld [vmem:[%s10567_s1 + $0x6] sm:$0x3]  ;;  %vm604_vm1 = vcmask 31744  }
   0xd   : > { %5986 = vmatpush3.bf16.msra.mxu0 %v652_v2  ;;  %s10960_s13 = smov (!%p161_p3, %s5362_s13), 1  ;;  %v6708_v5 = vshrl.u32 %v236_v1, 7  ;;  %6598 = vmatprep.subr.msk.bf16.mxu1 %vm650_vm0, %v601_v4  ;;  %v864_v6 = vsel %vm650_vm0, %v601_v4, 0  ;;  %v1078_v19 = vsel %vm650_vm0, %v5404_v3, 0  ;;  %v6783_v29 = vld [vmem:[%s10567_s1 + $0x8] sm:$0x3] }
   0xe   : > { %6599 = vmatprep.subr.msk.bf16.mxu0 %vm650_vm0, %v5404_v3  ;;  %6020 = vmatpush3.bf16.msra.mxu1 %v864_v6  ;;  %s5677_s22 = sshll.u32 %s10960_s13, 8  ;;  %v1279_v50 = vsel %vm650_vm0, %v5421_v7, 0  ;;  %v6844_v53 = vld [vmem:[%s10567_s1 + $0xa] sm:$0x3] }
   0xf   : > { %10650 = vst [vmem:[#allocation2_spill] sm:$0xff] %v6708_v5  ;;  %6600 = vmatprep.subr.msk.bf16.mxu1 %vm650_vm0, %v5421_v7  ;;  %s6723_s25 = scalar_lea.vmem %s10566_s0, %s5677_s22  ;;  %v6726_v8 = vsub.s32 1, %v6708_v5  ;;  %vm238_vm2 = vcmp.lt.s32.totalorder %v6708_v5, 1  ;;  %vm341_vm3 = vcmp.eq.s32.totalorder %v6708_v5, 0  ;;  %vm305_vm4 = vcmp.lt.s32.totalorder %v6708_v5, 7  ;;  %s10445_s6 = scalar_lea.vmem %s10569_s3, %s5677_s22 }
  0x10   : > { %v6729_v9 = vld [vmem:[%s6723_s25 + $0x10] sm:$0xff]  ;;  %v6732_v10 = vld [vmem:[%s6723_s25 + $0x18] sm:$0xff]  ;;  %v6735_v11 = vld [vmem:[%s6723_s25] sm:$0xff] }
  0x11   : > { %10651 = vst [vmem:[#allocation3_spill] sm:$0xff] %v6726_v8  ;;  %v6739_v12 = vpack.c.bf16 %v6732_v10, %v6729_v9  ;;  %v6742_v13 = vld [vmem:[%s6723_s25 + $0x8] sm:$0xff]  ;;  %v204_v15 = vrot.slane %v6729_v9, 7  ;;  %v205_v16 = vrot.slane %v6732_v10, 7  ;;  %v6751_v17 = vld [vmem:[%s6723_s25 + $0x20] sm:$0xff]  ;;  %v350_v21 = vrot.slane %v6729_v9, %v6726_v8  ;;  %v6795_v34 = vld [vmem:[%s6723_s25 + $0x30] sm:$0xff] }
  0x12   : > { %v6745_v14 = vld [vmem:[%s6723_s25 + $0xe8] sm:$0xff]  ;;  %v6755_v18 = vpack.c.bf16 %v6742_v13, %v6735_v11  ;;  %v207_v20 = vrot.slane %v6742_v13, 7  ;;  %v206_v23 = vrot.slane %v6735_v11, 7  ;;  %v354_v24 = vrot.slane %v6735_v11, %v6726_v8  ;;  %v6798_v35 = vld [vmem:[%s6723_s25 + $0x38] sm:$0xff]  ;;  %v6829_v48 = vld [vmem:[%s6723_s25 + $0x40] sm:$0xff] }
  0x13   : > { %10652 = vst [vmem:[#allocation4_spill] sm:$0xff] %v6739_v12  ;;  %5987 = vmatprep.mubr.msk.bf16.mxu0 %vm604_vm1, %v6739_v12  ;;  %v6764_v22 = vrot.slane %v6745_v14, 7  ;;  %v6771_v25 = vld [vmem:[%s6723_s25 + $0x28] sm:$0xff]  ;;  %v268_v26 = vsel %vm238_vm2, %v204_v15, %v205_v16  ;;  %v208_v28 = vrot.slane %v6751_v17, 7  ;;  %v358_v42 = vrot.slane %v6751_v17, %v6726_v8  ;;  %v6839_v52 = vld [vmem:[%s6723_s25 + $0x50] sm:$0xff]  ;;  %v6865_v60 = vld [vmem:[%s6723_s25 + $0x58] sm:$0xff] }
  0x14   : > { %10653 = vst [vmem:[#allocation5_spill] sm:$0xff] %v6755_v18  ;;  %5988 = vmatmul.mubr.msk.bf16.vlgmr.msra.gmra.mxu0 %vm604_vm1, %v6755_v18  ;;  %v269_v27 = vsel %vm238_vm2, %v207_v20, %v204_v15  ;;  %v270_v32 = vsel %vm238_vm2, %v206_v23, %v207_v20  ;;  %v271_v33 = vsel %vm238_vm2, %v205_v16, %v206_v23  ;;  %v209_v38 = vrot.slane %v6771_v25, 7  ;;  %v6855_v56 = vld [vmem:[%s6723_s25 + $0x48] sm:$0xff] }
  0x15   : > { %10654 = vst [vmem:[#allocation6_spill] sm:$0xff] %v6764_v22  ;;  %6054 = vmatpush3.bf16.msra.mxu0 %v1078_v19  ;;  %v272_v30 = vsel %vm238_vm2, %v6764_v22, %v204_v15  ;;  %v415_v31 = vsel %vm341_vm3, %v350_v21, %v269_v27  ;;  %v413_v37 = vsel %vm341_vm3, %v354_v24, %v271_v33  ;;  %v210_v45 = vrot.slane %v6795_v34, 7  ;;  %v6891_v15 = vld [vmem:[%s6723_s25 + $0x60] sm:$0xff]  ;;  %v6898_v19 = vld [vmem:[%s6723_s25 + $0x70] sm:$0xff]  ;;  %v6909_v23 = vld [vmem:[%s6723_s25 + $0x68] sm:$0xff] }
  0x16   : > { %v411_v36 = vsel %vm341_vm3, %v350_v21, %v272_v30  ;;  %5991 = vmatprep.mubr.msk.bf16.mxu0 %vm604_vm1, %v6739_v12  ;;  %v6807_v40 = vpack.c.bf16 %v268_v26, %v415_v31  ;;  %v6809_v41 = vpack.c.bf16 %v270_v32, %v413_v37  ;;  %6601 = vmatprep.subr.msk.bf16.mxu0 %vm650_vm0, %v6783_v29  ;;  %v211_v46 = vrot.slane %v6798_v35, 7 }
  0x17   : > { %v549_v39 = vpack.c.bf16 %v268_v26, %v411_v36  ;;  %v6817_v43 = vpack.c.bf16 %v6771_v25, %v6751_v17  ;;  %v267_v44 = vsel %vm238_vm2, %v205_v16, %v208_v28  ;;  %v6826_v47 = vpack.c.bf16 %v6798_v35, %v6795_v34 }
  0x18   : > { %v362_v49 = vrot.slane %v6795_v34, %v6726_v8  ;;  %v265_v51 = vsel %vm238_vm2, %v209_v38, %v210_v45  ;;  %v266_v54 = vsel %vm238_vm2, %v208_v28, %v209_v38  ;;  %v416_v55 = vsel %vm341_vm3, %v358_v42, %v267_v44  ;;  %v6919_v28 = vld [vmem:[%s6723_s25 + $0x78] sm:$0xff] }
  0x19   : > { %10655 = vst [vmem:[#allocation7_spill] sm:$0xff] %v6817_v43  ;;  %6021 = vmatprep.mubr.msk.bf16.mxu1 %vm604_vm1, %v549_v39  ;;  %10656 = vst [vmem:[#allocation8_spill] sm:$0xff] %v6826_v47  ;;  %v264_v57 = vsel %vm238_vm2, %v210_v45, %v211_v46  ;;  %v212_v59 = vrot.slane %v6829_v48, 7  ;;  %v214_v61 = vrot.slane %v6839_v52, 7  ;;  %v6870_v62 = vpack.c.bf16 %v266_v54, %v416_v55  ;;  %v6943_v45 = vld [vmem:[%s6723_s25 + $0x80] sm:$0xff]  ;;  %v6962_v55 = vld [vmem:[%s6723_s25 + $0x88] sm:$0xff] }
  0x1a   : > { %6022 = vmatmul.mubr.msk.bf16.vlgmr.msra.gmra.mxu1 %vm604_vm1, %v6809_v41  ;;  %v418_v58 = vsel %vm341_vm3, %v362_v49, %v265_v51  ;;  %v213_v0 = vrot.slane %v6855_v56, 7  ;;  %v366_v1 = vrot.slane %v6829_v48, %v6726_v8  ;;  %v6879_v2 = vpack.c.bf16 %v6855_v56, %v6829_v48  ;;  %v6950_v49 = vld [vmem:[%s6723_s25 + $0x90] sm:$0xff] }
  0x1b   : > { %6025 = vmatprep.mubr.msk.bf16.mxu1 %vm604_vm1, %v6807_v40  ;;  %6088 = vmatpush3.bf16.msra.mxu1 %v1279_v50  ;;  %v6872_v63 = vpack.c.bf16 %v264_v57, %v418_v58  ;;  %v263_v3 = vsel %vm238_vm2, %v211_v46, %v212_v59  ;;  %v215_v4 = vrot.slane %v6865_v60, 7  ;;  %v370_v6 = vrot.slane %v6839_v52, %v6726_v8  ;;  %v6953_v50 = vld [vmem:[%s6723_s25 + $0xe0] sm:$0xff]  ;;  %v6965_v57 = vld [vmem:[%s6723_s25 + $0xf8] sm:$0xff] }
  0x1c   : > { %5992 = vmatmul.mubr.msk.bf16.gmra.mxu0 %vm604_vm1, %v6817_v43  ;;  %6602 = vmatprep.subr.msk.bf16.mxu1 %vm650_vm0, %v6844_v53  ;;  %10657 = vst [vmem:[#allocation9_spill] sm:$0xff] %v6879_v2  ;;  %v6888_v7 = vpack.c.bf16 %v6865_v60, %v6839_v52  ;;  %v261_v16 = vsel %vm238_vm2, %v213_v0, %v214_v61  ;;  %v216_v27 = vrot.slane %v6891_v15, 7  ;;  %v218_v30 = vrot.slane %v6898_v19, 7 }
  0x1d   : > { %5995 = vmatprep.mubr.msk.bf16.mxu0 %vm604_vm1, %v6826_v47  ;;  %v262_v20 = vsel %vm238_vm2, %v212_v59, %v213_v0  ;;  %v420_v21 = vsel %vm341_vm3, %v366_v1, %v263_v3  ;;  %v260_v24 = vsel %vm238_vm2, %v214_v61, %v215_v4  ;;  %v422_v26 = vsel %vm341_vm3, %v370_v6, %v261_v16  ;;  %v6977_v0 = vld [vmem:[%s6723_s25 + $0x98] sm:$0xff] }
  0x1e   : > { %10658 = vst [vmem:[#allocation10_spill] sm:$0xff] %v6888_v7  ;;  %v6922_v31 = vpack.c.bf16 %v262_v20, %v420_v21  ;;  %v6924_v32 = vpack.c.bf16 %v260_v24, %v422_v26  ;;  %v217_v33 = vrot.slane %v6909_v23, 7  ;;  %v374_v36 = vrot.slane %v6891_v15, %v6726_v8 }
  0x1f   : > { %v6931_v37 = vpack.c.bf16 %v6909_v23, %v6891_v15  ;;  %v259_v38 = vsel %vm238_vm2, %v215_v4, %v216_v27  ;;  %v219_v39 = vrot.slane %v6919_v28, 7  ;;  %v378_v42 = vrot.slane %v6898_v19, %v6726_v8 }
  0x20   : > { %v6940_v44 = vpack.c.bf16 %v6919_v28, %v6898_v19  ;;  %v257_v46 = vsel %vm238_vm2, %v217_v33, %v218_v30  ;;  %v258_v51 = vsel %vm238_vm2, %v216_v27, %v217_v33  ;;  %v424_v54 = vsel %vm341_vm3, %v374_v36, %v259_v38 }
  0x21   : > { %10659 = vst [vmem:[#allocation11_spill] sm:$0xff] %v6931_v37  ;;  %v256_v58 = vsel %vm238_vm2, %v218_v30, %v219_v39  ;;  %v426_v59 = vsel %vm341_vm3, %v378_v42, %v257_v46  ;;  %v220_v61 = vrot.slane %v6943_v45, 7  ;;  %v222_v1 = vrot.slane %v6950_v49, 7  ;;  %v7014_v42 = vld [vmem:[%s6723_s25 + $0xa0] sm:$0xff] }
  0x22   : > { %6026 = vmatmul.mubr.msk.bf16.gmra.mxu1 %vm604_vm1, %v6870_v62  ;;  %10660 = vst [vmem:[#allocation12_spill] sm:$0xff] %v6940_v44  ;;  %v6981_v3 = vrot.slane %v6953_v50, 7  ;;  %v6983_v4 = vpack.c.bf16 %v258_v51, %v424_v54  ;;  %v6987_v6 = vpack.c.bf16 %v6962_v55, %v6943_v45  ;;  %v10570_v16 = vrot.slane %v6965_v57, 7  ;;  %v7032_v54 = vld [vmem:[%s6723_s25 + $0xb0] sm:$0xff] }
  0x23   : > { %6029 = vmatprep.mubr.msk.bf16.mxu1 %vm604_vm1, %v6872_v63  ;;  %v6990_v20 = vpack.c.bf16 %v256_v58, %v426_v59  ;;  %v221_v21 = vrot.slane %v6962_v55, 7  ;;  %v382_v24 = vrot.slane %v6943_v45, %v6726_v8  ;;  %v6997_v26 = vrot.slane %v6953_v50, %v6726_v8 }
  0x24   : > { %5996 = vmatmul.mubr.msk.bf16.gmra.mxu0 %vm604_vm1, %v6879_v2  ;;  %10661 = vst [vmem:[#allocation13_spill] sm:$0xff] %v6987_v6  ;;  %v255_v27 = vsel %vm238_vm2, %v219_v39, %v220_v61  ;;  %v223_v30 = vrot.slane %v6977_v0, 7  ;;  %v386_v33 = vrot.slane %v6950_v49, %v6726_v8  ;;  %v240_v36 = vsel %vm238_vm2, %v10570_v16, %v6981_v3  ;;  %v7095_v2 = vld [vmem:[%s6723_s25 + $0xc8] sm:$0xff] }
  0x25   : > { %5999 = vmatprep.mubr.msk.bf16.mxu0 %vm604_vm1, %v6888_v7  ;;  %v7011_v38 = vpack.c.bf16 %v6977_v0, %v6950_v49  ;;  %v253_v39 = vsel %vm238_vm2, %v221_v21, %v222_v1  ;;  %v7022_v46 = vsel %vm238_vm2, %v6981_v3, %v6764_v22  ;;  %v7027_v51 = vsel %vm341_vm3, %v6997_v26, %v240_v36  ;;  %v7045_v36 = vld [vmem:[%s6723_s25 + $0xa8] sm:$0xff] }
  0x26   : > { %10663 = vst [vmem:[#allocation15_spill] sm:$0xff] %v7022_v46  ;;  %10664 = vst [vmem:[#allocation16_spill] sm:$0xff] %v7027_v51  ;;  %v254_v59 = vsel %vm238_vm2, %v220_v61, %v221_v21  ;;  %v428_v16 = vsel %vm341_vm3, %v382_v24, %v255_v27  ;;  %v430_v58 = vsel %vm341_vm3, %v386_v33, %v253_v39  ;;  %v224_v51 = vrot.slane %v7014_v42, 7  ;;  %v7055_v61 = vld [vmem:[%s6723_s25 + $0xb8] sm:$0xff] }
  0x27   : > { %10662 = vst [vmem:[#allocation14_spill] sm:$0xff] %v7011_v38  ;;  %v226_v21 = vrot.slane %v7032_v54, 7  ;;  %v7058_v24 = vpack.c.bf16 %v254_v59, %v428_v16  ;;  %v390_v33 = vrot.slane %v7014_v42, %v6726_v8  ;;  %v7067_v39 = vpack.c.bf16 %v7045_v36, %v7014_v42 }
  0x28   : > { %v394_v16 = vrot.slane %v7032_v54, %v6726_v8  ;;  %v7105_v18 = vsub.s32 6, %v6708_v5 }
  0x29   : > { %10666 = vst [vmem:[#allocation18_spill] sm:$0xff] %v7067_v39 }
  0x2a   : > { %6030 = vmatmul.mubr.msk.bf16.gmra.mxu1 %vm604_vm1, %v6922_v31  ;;  %10669 = vst [vmem:[#allocation21_spill] sm:$0xff] %v7105_v18 }
  0x2b   : > { %6033 = vmatprep.mubr.msk.bf16.mxu1 %vm604_vm1, %v6924_v32 }
  0x2c   : > { %6000 = vmatmul.mubr.msk.bf16.gmra.mxu0 %vm604_vm1, %v6931_v37  ;;  %v7086_v37 = vld [vmem:[%s6723_s25 + $0xd0] sm:$0xff] }
  0x2d   : > { %6003 = vmatprep.mubr.msk.bf16.mxu0 %vm604_vm1, %v6940_v44  ;;  %v252_v44 = vsel %vm238_vm2, %v222_v1, %v223_v30  ;;  %v225_v1 = vrot.slane %v7045_v36, 7  ;;  %10668 = vst [vmem:[#allocation20_spill] sm:$0xff] %v7086_v37 }
  0x2e   : > { %v7060_v27 = vpack.c.bf16 %v252_v44, %v430_v58  ;;  %v7076_v44 = vpack.c.bf16 %v7055_v61, %v7032_v54  ;;  %v7079_v58 = vld [vmem:[%s6723_s25 + $0xc0] sm:$0xff] }
  0x2f   : > { %v249_v59 = vsel %vm238_vm2, %v225_v1, %v226_v21  ;;  %v228_v12 = vrot.slane %v7079_v58, 7  ;;  %v7128_v22 = vpack.c.bf16 %v7095_v2, %v7079_v58 }
  0x30   : > { %10665 = vst [vmem:[#allocation17_spill] sm:$0xff] %v7060_v27  ;;  %10667 = vst [vmem:[#allocation19_spill] sm:$0xff] %v7076_v44  ;;  %v434_v43 = vsel %vm341_vm3, %v394_v16, %v249_v59  ;;  %v398_v59 = vrot.slane %v7079_v58, %v6726_v8 }
  0x31   : > { %10672 = vst [vmem:[#allocation24_spill] sm:$0xff] %v7128_v22 }
  0x32   : > { %6034 = vmatmul.mubr.msk.bf16.gmra.mxu1 %vm604_vm1, %v6983_v4 }
  0x33   : > { %6037 = vmatprep.mubr.msk.bf16.mxu1 %vm604_vm1, %v6990_v20 }
  0x34   : > { %6004 = vmatmul.mubr.msk.bf16.gmra.mxu0 %vm604_vm1, %v6987_v6  ;;  %v227_v6 = vrot.slane %v7055_v61, 7 }
  0x35   : > { %6007 = vmatprep.mubr.msk.bf16.mxu0 %vm604_vm1, %v7011_v38  ;;  %v251_v38 = vsel %vm238_vm2, %v223_v30, %v224_v51  ;;  %v250_v30 = vsel %vm238_vm2, %v224_v51, %v225_v1  ;;  %v230_v51 = vrot.slane %v7086_v37, 7 }
  0x36   : > { %v432_v7 = vsel %vm341_vm3, %v390_v33, %v251_v38  ;;  %v248_v47 = vsel %vm238_vm2, %v226_v21, %v227_v6  ;;  %v7110_v38 = vld [vmem:[%s6723_s25 + $0xd8] sm:$0xff]  ;;  %v229_v21 = vrot.slane %v7095_v2, 7  ;;  %v7118_v33 = vadd.s32 8, %v6708_v5 }
  0x37   : > { %10670 = vst [vmem:[#allocation22_spill] sm:$0xff] %v7110_v38  ;;  %v7114_v1 = vpack.c.bf16 %v250_v30, %v432_v7  ;;  %v7120_v16 = vpack.c.bf16 %v248_v47, %v434_v43  ;;  %v247_v7 = vsel %vm238_vm2, %v227_v6, %v228_v12  ;;  %v231_v30 = vrot.slane %v7110_v38, 7 }
  0x38   : > { %10671 = vst [vmem:[#allocation23_spill] sm:$0xff] %v7118_v33  ;;  %v402_v43 = vrot.slane %v7086_v37, %v6726_v8  ;;  %v7137_v47 = vpack.c.bf16 %v7110_v38, %v7086_v37  ;;  %v454_v6 = vrot.slane %v6732_v10, %v7105_v18  ;;  %v246_v8 = vsel %vm238_vm2, %v228_v12, %v229_v21 }
  0x39   : > { %v436_v38 = vsel %vm341_vm3, %v398_v59, %v247_v7  ;;  %vm446_vm5 = vcmp.eq.s32.totalorder %v7118_v33, 15  ;;  %v276_v12 = vrot.slane %v6742_v13, 1 }
  0x3a   : > { %6038 = vmatmul.mubr.msk.bf16.gmra.mxu1 %vm604_vm1, %v7058_v24  ;;  %10673 = vst [vmem:[#allocation25_spill] sm:$0xff] %v7137_v47 }
  0x3b   : > { %6041 = vmatprep.mubr.msk.bf16.mxu1 %vm604_vm1, %v7060_v27  ;;  %v245_v27 = vsel %vm238_vm2, %v229_v21, %v230_v51  ;;  %v7164_v21 = vpack.c.bf16 %v246_v8, %v436_v38  ;;  %v458_v8 = vrot.slane %v6742_v13, %v7105_v18  ;;  %v7197_v13 = vrot.slane %v6745_v14, %v7105_v18 }
  0x3c   : > { %6008 = vmatmul.mubr.msk.bf16.gmra.mxu0 %vm604_vm1, %v7067_v39  ;;  %v275_v39 = vrot.slane %v6735_v11, 1  ;;  %v273_v11 = vrot.slane %v6729_v9, 1  ;;  %v244_v9 = vsel %vm238_vm2, %v230_v51, %v231_v30  ;;  %v277_v51 = vrot.slane %v6751_v17, 1 }
  0x3d   : > { %6011 = vmatprep.mubr.msk.bf16.mxu0 %vm604_vm1, %v7076_v44  ;;  %v274_v44 = vrot.slane %v6732_v10, 1  ;;  %v438_v10 = vsel %vm341_vm3, %v402_v43, %v245_v27  ;;  %v243_v27 = vsel %vm238_vm2, %v231_v30, %v6981_v3  ;;  %v7178_v43 = vpack.c.bf16 %v6745_v14, %v6953_v50 }
  0x3e   : > { %v336_v17 = vsel %vm305_vm4, %v276_v12, %v273_v11  ;;  %v7193_v3 = vrot.slane %v6953_v50, 1 }
  0x3f   : > { %v338_v37 = vsel %vm305_vm4, %v274_v44, %v275_v39  ;;  %v335_v59 = vsel %vm305_vm4, %v273_v11, %v274_v44  ;;  %10674 = vst [vmem:[#allocation26_spill] sm:$0xff] %v7178_v43  ;;  %v334_v30 = vsel %vm305_vm4, %v274_v44, %v277_v51 }
  0x40   : > { %v516_v7 = vsel %vm446_vm5, %v454_v6, %v338_v37  ;;  %v440_v37 = vsel %vm341_vm3, %v6997_v26, %v243_v27  ;;  %v519_v27 = vsel %vm446_vm5, %v454_v6, %v334_v30  ;;  %v462_v6 = vrot.slane %v6771_v25, %v7105_v18 }
  0x41   : > { %v583_v38 = vpack.c.bf16 %v516_v7, %v335_v59  ;;  %v7223_v44 = vpack.c.bf16 %v7022_v46, %v440_v37  ;;  %v280_v37 = vrot.slane %v6798_v35, 1  ;;  %v1480_v30 = vsel %vm650_vm0, %v6783_v29, 0 }
  0x42   : > { %6042 = vmatmul.mubr.msk.bf16.gmra.mxu1 %vm604_vm1, %v7114_v1 }
  0x43   : > { %6045 = vmatprep.mubr.msk.bf16.mxu1 %vm604_vm1, %v7120_v16 }
  0x44   : > { %6012 = vmatmul.mubr.msk.bf16.gmra.mxu0 %vm604_vm1, %v7128_v22  ;;  %v7170_v22 = vpack.c.bf16 %v244_v9, %v438_v10  ;;  %v7209_v9 = vld [vmem:[%s6723_s25 + $0xf0] sm:$0xff]  ;;  %v518_v10 = vsel %vm446_vm5, %v458_v8, %v336_v17  ;;  %v7244_v17 = vpack.c.bf16 %v519_v27, %v335_v59  ;;  %v7272_v27 = vld [vmem:[%s10567_s1 + $0xc] sm:$0x3] }
  0x45   : > { %6015 = vmatprep.mubr.msk.bf16.mxu0 %vm604_vm1, %v7137_v47  ;;  %v7183_v47 = vrot.slane %v6745_v14, 1  ;;  %v303_v46 = vrot.slane %v7209_v9, 1 }
  0x47   : > { %v339_v26 = vsel %vm305_vm4, %v7183_v47, %v273_v11  ;;  %v7215_v14 = vsel %vm305_vm4, %v7193_v3, %v7183_v47  ;;  %v337_v11 = vsel %vm305_vm4, %v275_v39, %v276_v12  ;;  %v304_v39 = vrot.slane %v6965_v57, 1 }
  0x48   : > { %v7220_v50 = vsel %vm446_vm5, %v7197_v13, %v339_v26  ;;  %v278_v26 = vrot.slane %v6771_v25, 1  ;;  %v514_v12 = vrot.slane %v6965_v57, %v7105_v18  ;;  %v7242_v8 = vpack.c.bf16 %v518_v10, %v337_v11 }
  0x49   : > { %v466_v25 = vrot.slane %v6798_v35, %v7105_v18 }
  0x4a   : > { %6046 = vmatmul.mubr.msk.bf16.gmra.mxu1 %vm604_vm1, %v7164_v21  ;;  %v333_v35 = vsel %vm305_vm4, %v277_v51, %v278_v26  ;;  %v285_v51 = vrot.slane %v6891_v15, 1 }
  0x4b   : > { %6049 = vmatprep.mubr.msk.bf16.mxu1 %vm604_vm1, %v7170_v22 }
  0x4c   : > { %6016 = vmatmul.mubr.msk.bf16.gmra.mxu0 %vm604_vm1, %v7178_v43  ;;  %v279_v43 = vrot.slane %v6795_v34, 1  ;;  %v307_v34 = vsel %vm305_vm4, %v304_v39, %v7193_v3 }
  0x4d   : > { %6055 = vmatprep.mubr.msk.bf16.mxu0 %vm604_vm1, %v583_v38  ;;  %v281_v38 = vrot.slane %v6829_v48, 1  ;;  %v308_v48 = vsel %vm305_vm4, %v303_v46, %v304_v39  ;;  %v547_v11 = vsel %vm446_vm5, %v514_v12, %v307_v34  ;;  %v282_v34 = vrot.slane %v6855_v56, 1 }
  0x4e   : > { %v332_v59 = vsel %vm305_vm4, %v278_v26, %v279_v43  ;;  %v7274_v29 = vpack.c.bf16 %v547_v11, %v308_v48  ;;  %v331_v39 = vsel %vm305_vm4, %v279_v43, %v280_v37  ;;  %v283_v48 = vrot.slane %v6839_v52, 1  ;;  %v7305_v52 = vld [vmem:[%s10567_s1 + $0xe] sm:$0x3] }
  0x4f   : > { %v330_v10 = vsel %vm305_vm4, %v280_v37, %v281_v38  ;;  %v470_v37 = vrot.slane %v6855_v56, %v7105_v18  ;;  %v329_v56 = vsel %vm305_vm4, %v281_v38, %v282_v34 }
  0x50   : > { %v523_v12 = vsel %vm446_vm5, %v466_v25, %v330_v10  ;;  %v328_v15 = vsel %vm305_vm4, %v282_v34, %v283_v48  ;;  %v286_v10 = vrot.slane %v6909_v23, 1  ;;  %v478_v34 = vrot.slane %v6909_v23, %v7105_v18 }
  0x51   : > { %v7298_v43 = vpack.c.bf16 %v523_v12, %v331_v39  ;;  %v289_v39 = vrot.slane %v6943_v45, 1 }
  0x52   : > { %6050 = vmatmul.mubr.msk.bf16.gmra.mxu1 %vm604_vm1, %v7223_v44  ;;  %v325_v23 = vsel %vm305_vm4, %v285_v51, %v286_v10 }
  0x53   : > { %6089 = vmatprep.mubr.msk.bf16.mxu1 %vm604_vm1, %v6809_v41  ;;  %v521_v41 = vsel %vm446_vm5, %v462_v6, %v332_v59  ;;  %v1681_v6 = vsel %vm650_vm0, %v6844_v53, 0  ;;  %v474_v59 = vrot.slane %v6865_v60, %v7105_v18 }
  0x54   : > { %6056 = vmatmul.mubr.msk.bf16.vlgmr.msra.gmra.mxu0 %vm604_vm1, %v7242_v8  ;;  %v7294_v26 = vpack.c.bf16 %v521_v41, %v333_v35  ;;  %v287_v35 = vrot.slane %v6898_v19, 1  ;;  %v288_v41 = vrot.slane %v6919_v28, 1  ;;  %v482_v19 = vrot.slane %v6919_v28, %v7105_v18 }
  0x55   : > { %6122 = vmatpush3.bf16.msra.mxu0 %v1480_v30  ;;  %6059 = vmatprep.mubr.msk.bf16.mxu0 %vm604_vm1, %v7244_v17  ;;  %v284_v30 = vrot.slane %v6865_v60, 1  ;;  %v525_v60 = vsel %vm446_vm5, %v470_v37, %v328_v15  ;;  %v290_v37 = vrot.slane %v6962_v55, 1  ;;  %v291_v15 = vrot.slane %v6950_v49, 1 }
  0x56   : > { %6603 = vmatprep.subr.msk.bf16.mxu0 %vm650_vm0, %v7272_v27  ;;  %v7335_v12 = vpack.c.bf16 %v525_v60, %v329_v56  ;;  %v322_v45 = vsel %vm305_vm4, %v288_v41, %v289_v39  ;;  %v323_v28 = vsel %vm305_vm4, %v287_v35, %v288_v41  ;;  %v486_v60 = vrot.slane %v6962_v55, %v7105_v18 }
  0x57   : > { %v326_v53 = vsel %vm305_vm4, %v284_v30, %v285_v51  ;;  %v327_v25 = vsel %vm305_vm4, %v283_v48, %v284_v30  ;;  %v324_v48 = vsel %vm305_vm4, %v286_v10, %v287_v35  ;;  %v490_v49 = vrot.slane %v6977_v0, %v7105_v18 }
  0x58   : > { %v527_v11 = vsel %vm446_vm5, %v474_v59, %v326_v53  ;;  %v529_v30 = vsel %vm446_vm5, %v478_v34, %v324_v48  ;;  %v292_v59 = vrot.slane %v6977_v0, 1  ;;  %v293_v53 = vrot.slane %v7014_v42, 1 }
  0x59   : > { %v7337_v38 = vpack.c.bf16 %v527_v11, %v327_v25  ;;  %v7367_v56 = vpack.c.bf16 %v529_v30, %v325_v23  ;;  %v320_v25 = vsel %vm305_vm4, %v290_v37, %v291_v15  ;;  %v321_v55 = vsel %vm305_vm4, %v289_v39, %v290_v37  ;;  %v10675_v37 = vld [vmem:[#allocation20_spill] sm:$0xff] }
  0x5a   : > { %6090 = vmatmul.mubr.msk.bf16.vlgmr.msra.gmra.mxu1 %vm604_vm1, %v6807_v40  ;;  %v318_v42 = vsel %vm305_vm4, %v292_v59, %v293_v53  ;;  %v533_v11 = vsel %vm446_vm5, %v486_v60, %v320_v25  ;;  %v319_v0 = vsel %vm305_vm4, %v291_v15, %v292_v59  ;;  %v294_v35 = vrot.slane %v7045_v36, 1  ;;  %v10676_v59 = vld [vmem:[#allocation22_spill] sm:$0xff] }
  0x5b   : > { %6093 = vmatprep.mubr.msk.bf16.mxu1 %vm604_vm1, %v6870_v62  ;;  %6156 = vmatpush3.bf16.msra.mxu1 %v1681_v6  ;;  %v531_v6 = vsel %vm446_vm5, %v482_v19, %v322_v45  ;;  %v535_v10 = vsel %vm446_vm5, %v490_v49, %v318_v42  ;;  %v295_v41 = vrot.slane %v7032_v54, 1  ;;  %v296_v34 = vrot.slane %v7055_v61, 1  ;;  %v10677_v42 = vld [vmem:[#allocation17_spill] sm:$0xff] }
  0x5c   : > { %6060 = vmatmul.mubr.msk.bf16.gmra.mxu0 %vm604_vm1, %v7294_v26  ;;  %6604 = vmatprep.subr.msk.bf16.mxu1 %vm650_vm0, %v7305_v52  ;;  %v7369_v51 = vpack.c.bf16 %v531_v6, %v323_v28  ;;  %v297_v48 = vrot.slane %v7079_v58, 1  ;;  %v7399_v19 = vpack.c.bf16 %v533_v11, %v321_v55  ;;  %v7401_v39 = vpack.c.bf16 %v535_v10, %v319_v0 }
  0x5d   : > { %6063 = vmatprep.mubr.msk.bf16.mxu0 %vm604_vm1, %v7298_v43  ;;  %v494_v45 = vrot.slane %v7045_v36, %v7105_v18  ;;  %v316_v23 = vsel %vm305_vm4, %v294_v35, %v295_v41  ;;  %v498_v54 = vrot.slane %v7055_v61, %v7105_v18  ;;  %v317_v36 = vsel %vm305_vm4, %v293_v53, %v294_v35 }
  0x5e   : > { %v314_v58 = vsel %vm305_vm4, %v296_v34, %v297_v48  ;;  %v315_v61 = vsel %vm305_vm4, %v295_v41, %v296_v34  ;;  %v298_v6 = vrot.slane %v7095_v2, 1  ;;  %v299_v15 = vrot.slane %v10675_v37, 1 }
  0x5f   : > { %v537_v30 = vsel %vm446_vm5, %v494_v45, %v316_v23  ;;  %v539_v28 = vsel %vm446_vm5, %v498_v54, %v314_v58  ;;  %v300_v60 = vrot.slane %v10676_v59, 1  ;;  %v502_v53 = vrot.slane %v7095_v2, %v7105_v18  ;;  %v10678_v54 = vld [vmem:[#allocation3_spill] sm:$0xff] }
  0x60   : > { %v7430_v25 = vpack.c.bf16 %v537_v30, %v317_v36  ;;  %v7432_v49 = vpack.c.bf16 %v539_v28, %v315_v61  ;;  %v312_v55 = vsel %vm305_vm4, %v298_v6, %v299_v15  ;;  %v506_v11 = vrot.slane %v10676_v59, %v7105_v18  ;;  %v10681_v28 = vld [vmem:[#allocation5_spill] sm:$0xff]  ;;  %v10682_v59 = vld [vmem:[#allocation4_spill] sm:$0xff] }
  0x61   : > { %v310_v0 = vsel %vm305_vm4, %v300_v60, %v7193_v3  ;;  %v313_v2 = vsel %vm305_vm4, %v297_v48, %v298_v6  ;;  %v541_v10 = vsel %vm446_vm5, %v502_v53, %v312_v55  ;;  %v311_v35 = vsel %vm305_vm4, %v299_v15, %v300_v60  ;;  %v5506_v15 = vld [vmem:[%s10567_s1 + $0x10] sm:$0x3]  ;;  %v10683_v60 = vld [vmem:[#allocation7_spill] sm:$0xff] }
  0x62   : > { %6094 = vmatmul.mubr.msk.bf16.gmra.mxu1 %vm604_vm1, %v6872_v63  ;;  %v543_v41 = vsel %vm446_vm5, %v506_v11, %v310_v0  ;;  %v7459_v34 = vpack.c.bf16 %v541_v10, %v313_v2  ;;  %v309_v48 = vsel %vm305_vm4, %v7183_v47, %v303_v46  ;;  %v234_v45 = vrot.slane %v7209_v9, 7  ;;  %v10679_v47 = vld [vmem:[#allocation6_spill] sm:$0xff]  ;;  %v10687_v55 = vld [vmem:[#allocation11_spill] sm:$0xff]  ;;  %v10688_v11 = vld [vmem:[#allocation12_spill] sm:$0xff] }
  0x63   : > { %6097 = vmatprep.mubr.msk.bf16.mxu1 %vm604_vm1, %v6922_v31  ;;  %v7461_v3 = vpack.c.bf16 %v543_v41, %v311_v35  ;;  %v545_v23 = vsel %vm446_vm5, %v7197_v13, %v309_v48  ;;  %v410_v58 = vrot.slane %v7209_v9, %v10678_v54  ;;  %v10680_v30 = vrot.slane %v6965_v57, 7  ;;  %v10689_v0 = vld [vmem:[#allocation13_spill] sm:$0xff]  ;;  %v10690_v2 = vld [vmem:[#allocation14_spill] sm:$0xff]  ;;  %v10692_v35 = vld [vmem:[#allocation19_spill] sm:$0xff] }
  0x64   : > { %6064 = vmatmul.mubr.msk.bf16.gmra.mxu0 %vm604_vm1, %v7335_v12  ;;  %v7483_v46 = vpack.c.bf16 %v545_v23, %v7215_v14  ;;  %v242_v36 = vsel %vm238_vm2, %v10679_v47, %v234_v45  ;;  %v1882_v37 = vsel %vm650_vm0, %v7272_v27, 0  ;;  %v2080_v53 = vsel %vm650_vm0, %v7305_v52, 0  ;;  %v10685_v27 = vld [vmem:[#allocation9_spill] sm:$0xff]  ;;  %v10686_v52 = vld [vmem:[#allocation10_spill] sm:$0xff]  ;;  %v10693_v41 = vld [vmem:[#allocation24_spill] sm:$0xff] }
  0x65   : > { %6067 = vmatprep.mubr.msk.bf16.mxu0 %vm604_vm1, %v7337_v38  ;;  %v241_v13 = vsel %vm238_vm2, %v234_v45, %v10680_v30  ;;  %v442_v61 = vsel %vm341_vm3, %v410_v58, %v242_v36  ;;  %v10691_v10 = vld [vmem:[#allocation18_spill] sm:$0xff]  ;;  %v10694_v48 = vld [vmem:[#allocation25_spill] sm:$0xff]  ;;  %v7570_v23 = vpack.c.bf16 %v6965_v57, %v7209_v9  ;;  %v2281_v58 = vsel %vm650_vm0, %v5506_v15, 0 }
  0x66   : > { %v7502_v6 = vpack.c.bf16 %v241_v13, %v442_v61  ;;  %v10695_v45 = vld [vmem:[#allocation26_spill] sm:$0xff] }
  0x6a   : > { %6098 = vmatmul.mubr.msk.bf16.gmra.mxu1 %vm604_vm1, %v6924_v32 }
  0x6b   : > { %6101 = vmatprep.mubr.msk.bf16.mxu1 %vm604_vm1, %v6983_v4 }
  0x6c   : > { %6068 = vmatmul.mubr.msk.bf16.gmra.mxu0 %vm604_vm1, %v7367_v56 }
  0x6d   : > { %6071 = vmatprep.mubr.msk.bf16.mxu0 %vm604_vm1, %v7369_v51 }
  0x72   : > { %6102 = vmatmul.mubr.msk.bf16.gmra.mxu1 %vm604_vm1, %v6990_v20 }
  0x73   : > { %6105 = vmatprep.mubr.msk.bf16.mxu1 %vm604_vm1, %v7058_v24 }
  0x74   : > { %6072 = vmatmul.mubr.msk.bf16.gmra.mxu0 %vm604_vm1, %v7399_v19 }
  0x75   : > { %6075 = vmatprep.mubr.msk.bf16.mxu0 %vm604_vm1, %v7401_v39 }
  0x7a   : > { %6106 = vmatmul.mubr.msk.bf16.gmra.mxu1 %vm604_vm1, %v10677_v42 }
  0x7b   : > { %6109 = vmatprep.mubr.msk.bf16.mxu1 %vm604_vm1, %v7114_v1 }
  0x7c   : > { %6076 = vmatmul.mubr.msk.bf16.gmra.mxu0 %vm604_vm1, %v7430_v25 }
  0x7d   : > { %6079 = vmatprep.mubr.msk.bf16.mxu0 %vm604_vm1, %v7432_v49 }
  0x82   : > { %6110 = vmatmul.mubr.msk.bf16.gmra.mxu1 %vm604_vm1, %v7120_v16 }
  0x83   : > { %6113 = vmatprep.mubr.msk.bf16.mxu1 %vm604_vm1, %v7164_v21 }
  0x84   : > { %6080 = vmatmul.mubr.msk.bf16.gmra.mxu0 %vm604_vm1, %v7459_v34 }
  0x85   : > { %6083 = vmatprep.mubr.msk.bf16.mxu0 %vm604_vm1, %v7461_v3 }
  0x8a   : > { %6114 = vmatmul.mubr.msk.bf16.gmra.mxu1 %vm604_vm1, %v7170_v22 }
  0x8b   : > { %6117 = vmatprep.mubr.msk.bf16.mxu1 %vm604_vm1, %v7223_v44 }
  0x8c   : > { %6084 = vmatmul.mubr.msk.bf16.gmra.mxu0 %vm604_vm1, %v7483_v46 }
  0x8d   : > { %6123 = vmatprep.mubr.msk.bf16.mxu0 %vm604_vm1, %v10681_v28 }
  0x92   : > { %6118 = vmatmul.mubr.msk.bf16.gmra.mxu1 %vm604_vm1, %v7502_v6 }
  0x93   : > { %6157 = vmatprep.mubr.msk.bf16.mxu1 %vm604_vm1, %v7242_v8  ;;  %v10684_v8 = vld [vmem:[#allocation8_spill] sm:$0xff] }
  0x94   : > { %6124 = vmatmul.mubr.msk.bf16.vlgmr.msra.gmra.mxu0 %vm604_vm1, %v10682_v59 }
  0x95   : > { %6190 = vmatpush3.bf16.msra.mxu0 %v1882_v37  ;;  %6127 = vmatprep.mubr.msk.bf16.mxu0 %vm604_vm1, %v10683_v60 }
  0x96   : > { %6605 = vmatprep.subr.msk.bf16.mxu0 %vm650_vm0, %v5506_v15 }
  0x9a   : > { %6158 = vmatmul.mubr.msk.bf16.vlgmr.msra.gmra.mxu1 %vm604_vm1, %v7244_v17 }
  0x9b   : > { %6161 = vmatprep.mubr.msk.bf16.mxu1 %vm604_vm1, %v7294_v26  ;;  %6224 = vmatpush3.bf16.msra.mxu1 %v2080_v53 }
  0x9c   : > { %6128 = vmatmul.mubr.msk.bf16.gmra.mxu0 %vm604_vm1, %v10684_v8 }
  0x9d   : > { %6131 = vmatprep.mubr.msk.bf16.mxu0 %vm604_vm1, %v10685_v27 }
  0xa2   : > { %6162 = vmatmul.mubr.msk.bf16.gmra.mxu1 %vm604_vm1, %v7298_v43 }
  0xa3   : > { %6165 = vmatprep.mubr.msk.bf16.mxu1 %vm604_vm1, %v7335_v12 }
  0xa4   : > { %6132 = vmatmul.mubr.msk.bf16.gmra.mxu0 %vm604_vm1, %v10686_v52 }
  0xa5   : > { %6135 = vmatprep.mubr.msk.bf16.mxu0 %vm604_vm1, %v10687_v55 }
  0xaa   : > { %6166 = vmatmul.mubr.msk.bf16.gmra.mxu1 %vm604_vm1, %v7337_v38 }
  0xab   : > { %6169 = vmatprep.mubr.msk.bf16.mxu1 %vm604_vm1, %v7367_v56 }
  0xac   : > { %6136 = vmatmul.mubr.msk.bf16.gmra.mxu0 %vm604_vm1, %v10688_v11 }
  0xad   : > { %6139 = vmatprep.mubr.msk.bf16.mxu0 %vm604_vm1, %v10689_v0 }
  0xb2   : > { %6170 = vmatmul.mubr.msk.bf16.gmra.mxu1 %vm604_vm1, %v7369_v51 }
  0xb3   : > { %6173 = vmatprep.mubr.msk.bf16.mxu1 %vm604_vm1, %v7399_v19 }
  0xb4   : > { %6140 = vmatmul.mubr.msk.bf16.gmra.mxu0 %vm604_vm1, %v10690_v2 }
  0xb5   : > { %6143 = vmatprep.mubr.msk.bf16.mxu0 %vm604_vm1, %v10691_v10 }
  0xba   : > { %6174 = vmatmul.mubr.msk.bf16.gmra.mxu1 %vm604_vm1, %v7401_v39 }
  0xbb   : > { %6177 = vmatprep.mubr.msk.bf16.mxu1 %vm604_vm1, %v7430_v25 }
  0xbc   : > { %6144 = vmatmul.mubr.msk.bf16.gmra.mxu0 %vm604_vm1, %v10692_v35 }
  0xbd   : > { %6147 = vmatprep.mubr.msk.bf16.mxu0 %vm604_vm1, %v10693_v41 }
  0xc2   : > { %6178 = vmatmul.mubr.msk.bf16.gmra.mxu1 %vm604_vm1, %v7432_v49 }
  0xc3   : > { %6181 = vmatprep.mubr.msk.bf16.mxu1 %vm604_vm1, %v7459_v34 }
  0xc4   : > { %6148 = vmatmul.mubr.msk.bf16.gmra.mxu0 %vm604_vm1, %v10694_v48 }
  0xc5   : > { %6151 = vmatprep.mubr.msk.bf16.mxu0 %vm604_vm1, %v10695_v45 }
  0xca   : > { %6182 = vmatmul.mubr.msk.bf16.gmra.mxu1 %vm604_vm1, %v7461_v3 }
  0xcb   : > { %6185 = vmatprep.mubr.msk.bf16.mxu1 %vm604_vm1, %v7483_v46 }
  0xcc   : > { %6152 = vmatmul.mubr.msk.bf16.gmra.mxu0 %vm604_vm1, %v7570_v23 }
  0xcd   : > { %6191 = vmatprep.mubr.msk.bf16.mxu0 %vm604_vm1, %v6807_v40 }
  0xd2   : > { %6186 = vmatmul.mubr.msk.bf16.gmra.mxu1 %vm604_vm1, %v7274_v29 }
  0xd3   : > { %6225 = vmatprep.mubr.msk.bf16.mxu1 %vm604_vm1, %v10682_v59 }
  0xd4   : > { %v5989_v57 = vpop.f32.mrf.mxu0  ;;  %6192 = vmatmul.mubr.msk.bf16.vlgmr.msra.gmra.mxu0 %vm604_vm1, %v6870_v62 }
  0xd5   : > { %6258 = vmatpush3.bf16.msra.mxu0 %v2281_v58  ;;  %6195 = vmatprep.mubr.msk.bf16.mxu0 %vm604_vm1, %v6872_v63 }
  0xd6   : > { %v688_v9 = vpop.f32.mrf.mxu0 }
  0xd8   : > { %v5990_v47 = vpop.f32.mrf.mxu0 }
  0xda   : > { %v6023_v36 = vpop.f32.mrf.mxu1  ;;  %6226 = vmatmul.mubr.msk.bf16.vlgmr.msra.gmra.mxu1 %vm604_vm1, %v10683_v60  ;;  %v691_v40 = vpop.f32.mrf.mxu0 }
  0xdb   : > { %v7591_v30 = vadd.f32 %v6023_v36, %v5989_v57  ;;  %6229 = vmatprep.mubr.msk.bf16.mxu1 %vm604_vm1, %v10684_v8 }
  0xdc   : > { %v900_v13 = vpop.f32.mrf.mxu1  ;;  %v5993_v61 = vpop.f32.mrf.mxu0  ;;  %6196 = vmatmul.mubr.msk.bf16.gmra.mxu0 %vm604_vm1, %v6922_v31 }
  0xdd   : > { %v7597_v62 = vadd.f32 %v900_v13, %v688_v9  ;;  %6199 = vmatprep.mubr.msk.bf16.mxu0 %vm604_vm1, %v6924_v32 }
  0xde   : > { %v6024_v63 = vpop.f32.mrf.mxu1  ;;  %v704_v28 = vpop.f32.mrf.mxu0 }
  0xdf   : > { %v7601_v37 = vadd.f32 %v6024_v63, %v5990_v47 }
  0xe0   : > { %v903_v15 = vpop.f32.mrf.mxu1  ;;  %v5994_v59 = vpop.f32.mrf.mxu0 }
  0xe1   : > { %v7603_v60 = vadd.f32 %v903_v15, %v691_v40 }
  0xe2   : > { %v6027_v53 = vpop.f32.mrf.mxu1  ;;  %6230 = vmatmul.mubr.msk.bf16.gmra.mxu1 %vm604_vm1, %v10685_v27  ;;  %v707_v8 = vpop.f32.mrf.mxu0 }
  0xe3   : > { %v7607_v58 = vadd.f32 %v6027_v53, %v5993_v61  ;;  %6233 = vmatprep.mubr.msk.bf16.mxu1 %vm604_vm1, %v10686_v52 }
  0xe4   : > { %v916_v31 = vpop.f32.mrf.mxu1  ;;  %v5997_v32 = vpop.f32.mrf.mxu0  ;;  %6200 = vmatmul.mubr.msk.bf16.gmra.mxu0 %vm604_vm1, %v6983_v4 }
  0xe5   : > { %v7613_v57 = vadd.f32 %v916_v31, %v704_v28  ;;  %6203 = vmatprep.mubr.msk.bf16.mxu0 %vm604_vm1, %v6990_v20 }
  0xe6   : > { %v6028_v9 = vpop.f32.mrf.mxu1  ;;  %v720_v47 = vpop.f32.mrf.mxu0 }
  0xe7   : > { %v7617_v36 = vadd.f32 %v6028_v9, %v5994_v59 }
  0xe8   : > { %v919_v27 = vpop.f32.mrf.mxu1  ;;  %v5998_v40 = vpop.f32.mrf.mxu0 }
  0xe9   : > { %v7619_v13 = vadd.f32 %v919_v27, %v707_v8 }
  0xea   : > { %v6031_v61 = vpop.f32.mrf.mxu1  ;;  %6234 = vmatmul.mubr.msk.bf16.gmra.mxu1 %vm604_vm1, %v10687_v55  ;;  %v723_v52 = vpop.f32.mrf.mxu0 }
  0xeb   : > { %v7623_v63 = vadd.f32 %v6031_v61, %v5997_v32  ;;  %6237 = vmatprep.mubr.msk.bf16.mxu1 %vm604_vm1, %v10688_v11 }
  0xec   : > { %v932_v4 = vpop.f32.mrf.mxu1  ;;  %v6001_v20 = vpop.f32.mrf.mxu0  ;;  %6204 = vmatmul.mubr.msk.bf16.gmra.mxu0 %vm604_vm1, %v7058_v24 }
  0xed   : > { %v7629_v28 = vadd.f32 %v932_v4, %v720_v47  ;;  %6207 = vmatprep.mubr.msk.bf16.mxu0 %vm604_vm1, %v10677_v42 }
  0xee   : > { %v6032_v15 = vpop.f32.mrf.mxu1  ;;  %v736_v59 = vpop.f32.mrf.mxu0 }
  0xef   : > { %v7633_v53 = vadd.f32 %v6032_v15, %v5998_v40 }
  0xf0   : > { %v935_v55 = vpop.f32.mrf.mxu1  ;;  %v6002_v8 = vpop.f32.mrf.mxu0 }
  0xf1   : > { %v7635_v31 = vadd.f32 %v935_v55, %v723_v52 }
  0xf2   : > { %v6035_v32 = vpop.f32.mrf.mxu1  ;;  %6238 = vmatmul.mubr.msk.bf16.gmra.mxu1 %vm604_vm1, %v10689_v0  ;;  %v739_v11 = vpop.f32.mrf.mxu0 }
  0xf3   : > { %v7639_v9 = vadd.f32 %v6035_v32, %v6001_v20  ;;  %6241 = vmatprep.mubr.msk.bf16.mxu1 %vm604_vm1, %v10690_v2 }
  0xf4   : > { %v948_v24 = vpop.f32.mrf.mxu1  ;;  %v6005_v42 = vpop.f32.mrf.mxu0  ;;  %6208 = vmatmul.mubr.msk.bf16.gmra.mxu0 %vm604_vm1, %v7114_v1 }
  0xf5   : > { %v7645_v47 = vadd.f32 %v948_v24, %v736_v59  ;;  %6211 = vmatprep.mubr.msk.bf16.mxu0 %vm604_vm1, %v7120_v16 }
  0xf6   : > { %v6036_v27 = vpop.f32.mrf.mxu1  ;;  %v752_v40 = vpop.f32.mrf.mxu0 }
  0xf7   : > { %v7649_v61 = vadd.f32 %v6036_v27, %v6002_v8 }
  0xf8   : > { %v951_v0 = vpop.f32.mrf.mxu1  ;;  %v6006_v52 = vpop.f32.mrf.mxu0 }
  0xf9   : > { %v7651_v4 = vadd.f32 %v951_v0, %v739_v11 }
  0xfa   : > { %v6039_v20 = vpop.f32.mrf.mxu1  ;;  %6242 = vmatmul.mubr.msk.bf16.gmra.mxu1 %vm604_vm1, %v10691_v10  ;;  %v7655_v2 = vpop.f32.mrf.mxu0 }
  0xfb   : > { %v7657_v1 = vadd.f32 %v6039_v20, %v6005_v42  ;;  %6245 = vmatprep.mubr.msk.bf16.mxu1 %vm604_vm1, %v10692_v35 }
  0xfc   : > { %v964_v16 = vpop.f32.mrf.mxu1  ;;  %v6009_v15 = vpop.f32.mrf.mxu0  ;;  %6212 = vmatmul.mubr.msk.bf16.gmra.mxu0 %vm604_vm1, %v7164_v21 }
  0xfd   : > { %v7663_v59 = vadd.f32 %v964_v16, %v752_v40  ;;  %6215 = vmatprep.mubr.msk.bf16.mxu0 %vm604_vm1, %v7170_v22 }
  0xfe   : > { %v6040_v55 = vpop.f32.mrf.mxu1  ;;  %v768_v8 = vpop.f32.mrf.mxu0 }
  0xff   : > { %v7667_v10 = vadd.f32 %v6040_v55, %v6006_v52  ;;  %v10696_v55 = vld [vmem:[#allocation15_spill] sm:$0xff] }
 0x100   : > { %v7669_v32 = vpop.f32.mrf.mxu1  ;;  %v6010_v11 = vpop.f32.mrf.mxu0 }
 0x102   : > { %v6043_v24 = vpop.f32.mrf.mxu1  ;;  %6246 = vmatmul.mubr.msk.bf16.gmra.mxu1 %vm604_vm1, %v10693_v41  ;;  %v7673_v35 = vpop.f32.mrf.mxu0 }
 0x103   : > { %v7675_v42 = vadd.f32 %v6043_v24, %v6009_v15  ;;  %6249 = vmatprep.mubr.msk.bf16.mxu1 %vm604_vm1, %v10694_v48 }
 0x104   : > { %v980_v21 = vpop.f32.mrf.mxu1  ;;  %v6013_v22 = vpop.f32.mrf.mxu0  ;;  %6216 = vmatmul.mubr.msk.bf16.gmra.mxu0 %vm604_vm1, %v7223_v44 }
 0x105   : > { %v7681_v27 = vadd.f32 %v980_v21, %v768_v8  ;;  %6219 = vmatprep.mubr.msk.bf16.mxu0 %vm604_vm1, %v7502_v6  ;;  %v10697_v8 = vld [vmem:[#allocation16_spill] sm:$0xff] }
 0x106   : > { %v6044_v40 = vpop.f32.mrf.mxu1  ;;  %v784_v0 = vpop.f32.mrf.mxu0 }
 0x107   : > { %v7685_v41 = vadd.f32 %v6044_v40, %v6010_v11  ;;  %v10698_v11 = vpack.c.bf16 %v10696_v55, %v10697_v8 }
 0x108   : > { %v7687_v52 = vpop.f32.mrf.mxu1  ;;  %v6014_v20 = vpop.f32.mrf.mxu0 }
 0x10a   : > { %v6047_v16 = vpop.f32.mrf.mxu1  ;;  %6250 = vmatmul.mubr.msk.bf16.gmra.mxu1 %vm604_vm1, %v10695_v45  ;;  %v7691_v48 = vpop.f32.mrf.mxu0 }
 0x10b   : > { %v7693_v15 = vadd.f32 %v6047_v16, %v6013_v22  ;;  %6253 = vmatprep.mubr.msk.bf16.mxu1 %vm604_vm1, %v7570_v23 }
 0x10c   : > { %v996_v44 = vpop.f32.mrf.mxu1  ;;  %v6017_v6 = vpop.f32.mrf.mxu0  ;;  %6220 = vmatmul.mubr.msk.bf16.gmra.mxu0 %vm604_vm1, %v10698_v11 }
 0x10d   : > { %v7701_v24 = vadd.f32 %v996_v44, %v784_v0  ;;  %6259 = vmatprep.mubr.msk.bf16.mxu0 %vm604_vm1, %v7244_v17 }
 0x10e   : > { %v6048_v21 = vpop.f32.mrf.mxu1  ;;  %v800_v40 = vpop.f32.mrf.mxu0 }
 0x10f   : > { %v7705_v7 = vadd.f32 %v6048_v21, %v6014_v20 }
 0x110   : > { %v7707_v22 = vpop.f32.mrf.mxu1  ;;  %v6018_v16 = vpop.f32.mrf.mxu0 }
 0x112   : > { %v6051_v23 = vpop.f32.mrf.mxu1  ;;  %6254 = vmatmul.mubr.msk.bf16.gmra.mxu1 %vm604_vm1, %v10695_v45  ;;  %v7711_v33 = vpop.f32.mrf.mxu0 }
 0x113   : > { %v7713_v55 = vadd.f32 %v6051_v23, %v6017_v6 }
 0x114   : > { %v1012_v0 = vpop.f32.mrf.mxu1  ;;  %v6057_v44 = vpop.f32.mrf.mxu0  ;;  %6260 = vmatmul.mubr.msk.bf16.vlgmr.msra.gmra.mxu0 %vm604_vm1, %v7294_v26 }
 0x115   : > { %v7717_v17 = vadd.f32 %v1012_v0, %v800_v40  ;;  %v1243_v20 = vadd.f32 %v6057_v44, %v7591_v30  ;;  %6263 = vmatprep.mubr.msk.bf16.mxu0 %vm604_vm1, %v7298_v43 }
 0x116   : > { %v6052_v8 = vpop.f32.mrf.mxu1  ;;  %v1114_v11 = vpop.f32.mrf.mxu0 }
 0x117   : > { %v7722_v21 = vadd.f32 %v6052_v8, %v6018_v16  ;;  %v1241_v45 = vadd.f32 %v1114_v11, %v7597_v62 }
 0x118   : > { %v7725_v6 = vpop.f32.mrf.mxu1  ;;  %v6058_v23 = vpop.f32.mrf.mxu0 }
 0x119   : > { %v1244_v54 = vadd.f32 %v6058_v23, %v7601_v37 }
 0x11a   : > { %v6091_v5 = vpop.f32.mrf.mxu1  ;;  %v1117_v26 = vpop.f32.mrf.mxu0 }
 0x11b   : > { %v7728_v40 = vadd.f32 %v6091_v5, %v1243_v20  ;;  %v7731_v30 = vadd.f32 %v1117_v26, %v7603_v60 }
 0x11c   : > { %v1315_v0 = vpop.f32.mrf.mxu1  ;;  %v6061_v43 = vpop.f32.mrf.mxu0  ;;  %6264 = vmatmul.mubr.msk.bf16.gmra.mxu0 %vm604_vm1, %v7335_v12 }
 0x11d   : > { %v7735_v16 = vadd.f32 %v1315_v0, %v1241_v45  ;;  %v1247_v62 = vadd.f32 %v6061_v43, %v7607_v58  ;;  %6267 = vmatprep.mubr.msk.bf16.mxu0 %vm604_vm1, %v7337_v38 }
 0x11e   : > { %v6092_v37 = vpop.f32.mrf.mxu1  ;;  %v1130_v44 = vpop.f32.mrf.mxu0 }
 0x11f   : > { %v7740_v8 = vadd.f32 %v6092_v37, %v1244_v54  ;;  %v1245_v5 = vadd.f32 %v1130_v44, %v7613_v57 }
 0x120   : > { %v7743_v60 = vpop.f32.mrf.mxu1  ;;  %v6062_v20 = vpop.f32.mrf.mxu0 }
 0x121   : > { %v1248_v11 = vadd.f32 %v6062_v20, %v7617_v36 }
 0x122   : > { %v6095_v23 = vpop.f32.mrf.mxu1  ;;  %v1133_v12 = vpop.f32.mrf.mxu0 }
 0x123   : > { %v7746_v45 = vadd.f32 %v6095_v23, %v1247_v62  ;;  %v7749_v58 = vadd.f32 %v1133_v12, %v7619_v13 }
 0x124   : > { %v1331_v26 = vpop.f32.mrf.mxu1  ;;  %v6065_v38 = vpop.f32.mrf.mxu0  ;;  %6268 = vmatmul.mubr.msk.bf16.gmra.mxu0 %vm604_vm1, %v7367_v56 }
 0x125   : > { %v7753_v54 = vadd.f32 %v1331_v26, %v1245_v5  ;;  %v1251_v57 = vadd.f32 %v6065_v38, %v7623_v63  ;;  %6271 = vmatprep.mubr.msk.bf16.mxu0 %vm604_vm1, %v7369_v51 }
 0x126   : > { %v6096_v36 = vpop.f32.mrf.mxu1  ;;  %v1146_v0 = vpop.f32.mrf.mxu0 }
 0x127   : > { %v7758_v43 = vadd.f32 %v6096_v36, %v1248_v11  ;;  %v1249_v62 = vadd.f32 %v1146_v0, %v7629_v28 }
 0x128   : > { %v7761_v13 = vpop.f32.mrf.mxu1  ;;  %v6066_v37 = vpop.f32.mrf.mxu0 }
 0x129   : > { %v1252_v44 = vadd.f32 %v6066_v37, %v7633_v53 }
 0x12a   : > { %v6099_v20 = vpop.f32.mrf.mxu1  ;;  %v1149_v56 = vpop.f32.mrf.mxu0 }
 0x12b   : > { %v7764_v5 = vadd.f32 %v6099_v20, %v1251_v57  ;;  %v7767_v63 = vadd.f32 %v1149_v56, %v7635_v31 }
 0x12c   : > { %v1347_v23 = vpop.f32.mrf.mxu1  ;;  %v6069_v51 = vpop.f32.mrf.mxu0  ;;  %6272 = vmatmul.mubr.msk.bf16.gmra.mxu0 %vm604_vm1, %v7399_v19 }
 0x12d   : > { %v7771_v11 = vadd.f32 %v1347_v23, %v1249_v62  ;;  %v1255_v28 = vadd.f32 %v6069_v51, %v7639_v9  ;;  %6275 = vmatprep.mubr.msk.bf16.mxu0 %vm604_vm1, %v7401_v39 }
 0x12e   : > { %v6100_v53 = vpop.f32.mrf.mxu1  ;;  %v1162_v12 = vpop.f32.mrf.mxu0 }
 0x12f   : > { %v7776_v26 = vadd.f32 %v6100_v53, %v1252_v44  ;;  %v1253_v38 = vadd.f32 %v1162_v12, %v7645_v47 }
 0x130   : > { %v7779_v31 = vpop.f32.mrf.mxu1  ;;  %v6070_v57 = vpop.f32.mrf.mxu0 }
 0x131   : > { %v1256_v36 = vadd.f32 %v6070_v57, %v7649_v61 }
 0x132   : > { %v6103_v0 = vpop.f32.mrf.mxu1  ;;  %v1165_v19 = vpop.f32.mrf.mxu0 }
 0x133   : > { %v7782_v62 = vadd.f32 %v6103_v0, %v1255_v28  ;;  %v7785_v9 = vadd.f32 %v1165_v19, %v7651_v4 }
 0x134   : > { %v1363_v37 = vpop.f32.mrf.mxu1  ;;  %v6073_v39 = vpop.f32.mrf.mxu0  ;;  %6276 = vmatmul.mubr.msk.bf16.gmra.mxu0 %vm604_vm1, %v7430_v25 }
 0x135   : > { %v7789_v44 = vadd.f32 %v1363_v37, %v1253_v38  ;;  %v1259_v47 = vadd.f32 %v6073_v39, %v7657_v1  ;;  %6279 = vmatprep.mubr.msk.bf16.mxu0 %vm604_vm1, %v7432_v49 }
 0x136   : > { %v6104_v61 = vpop.f32.mrf.mxu1  ;;  %v1178_v20 = vpop.f32.mrf.mxu0 }
 0x137   : > { %v7794_v56 = vadd.f32 %v6104_v61, %v1256_v36  ;;  %v1257_v23 = vadd.f32 %v1178_v20, %v7663_v59 }
 0x138   : > { %v7797_v4 = vpop.f32.mrf.mxu1  ;;  %v6074_v51 = vpop.f32.mrf.mxu0 }
 0x139   : > { %v1260_v28 = vadd.f32 %v6074_v51, %v7667_v10 }
 0x13a   : > { %v6107_v53 = vpop.f32.mrf.mxu1  ;;  %v7800_v25 = vpop.f32.mrf.mxu0 }
 0x13b   : > { %v7802_v12 = vadd.f32 %v6107_v53, %v1259_v47 }
 0x13c   : > { %v1379_v1 = vpop.f32.mrf.mxu1  ;;  %v6077_v38 = vpop.f32.mrf.mxu0  ;;  %6280 = vmatmul.mubr.msk.bf16.gmra.mxu0 %vm604_vm1, %v7459_v34 }
 0x13d   : > { %v7806_v49 = vadd.f32 %v1379_v1, %v1257_v23  ;;  %v1263_v57 = vadd.f32 %v6077_v38, %v7675_v42  ;;  %6283 = vmatprep.mubr.msk.bf16.mxu0 %vm604_vm1, %v7461_v3 }
 0x13e   : > { %v6108_v59 = vpop.f32.mrf.mxu1  ;;  %v1194_v36 = vpop.f32.mrf.mxu0 }
 0x13f   : > { %v7811_v10 = vadd.f32 %v6108_v59, %v1260_v28  ;;  %v1261_v0 = vadd.f32 %v1194_v36, %v7681_v27 }
 0x140   : > { %v7814_v19 = vpop.f32.mrf.mxu1  ;;  %v6078_v37 = vpop.f32.mrf.mxu0 }
 0x141   : > { %v1264_v39 = vadd.f32 %v6078_v37, %v7685_v41 }
 0x142   : > { %v6111_v47 = vpop.f32.mrf.mxu1  ;;  %v7817_v34 = vpop.f32.mrf.mxu0 }
 0x143   : > { %v7819_v61 = vadd.f32 %v6111_v47, %v1263_v57 }
 0x144   : > { %v1395_v42 = vpop.f32.mrf.mxu1  ;;  %v6081_v20 = vpop.f32.mrf.mxu0  ;;  %6284 = vmatmul.mubr.msk.bf16.gmra.mxu0 %vm604_vm1, %v7483_v46 }
 0x145   : > { %v7823_v3 = vadd.f32 %v1395_v42, %v1261_v0  ;;  %v1267_v23 = vadd.f32 %v6081_v20, %v7693_v15  ;;  %6287 = vmatprep.mubr.msk.bf16.mxu0 %vm604_vm1, %v7274_v29  ;;  %v10699_v29 = vpack.c.bf16 %v7220_v50, %v7215_v14 }
 0x146   : > { %v6112_v27 = vpop.f32.mrf.mxu1  ;;  %v1210_v51 = vpop.f32.mrf.mxu0 }
 0x147   : > { %v7828_v41 = vadd.f32 %v6112_v27, %v1264_v39  ;;  %v1265_v28 = vadd.f32 %v1210_v51, %v7701_v24 }
 0x148   : > { %v7831_v53 = vpop.f32.mrf.mxu1  ;;  %v6082_v1 = vpop.f32.mrf.mxu0 }
 0x149   : > { %v1268_v38 = vadd.f32 %v6082_v1, %v7705_v7 }
 0x14a   : > { %v6115_v57 = vpop.f32.mrf.mxu1  ;;  %v7834_v46 = vpop.f32.mrf.mxu0 }
 0x14b   : > { %v7836_v59 = vadd.f32 %v6115_v57, %v1267_v23 }
 0x14c   : > { %v1411_v15 = vpop.f32.mrf.mxu1  ;;  %v6085_v36 = vpop.f32.mrf.mxu0  ;;  %6288 = vmatmul.mubr.msk.bf16.gmra.mxu0 %vm604_vm1, %v10699_v29 }
 0x14d   : > { %v7842_v0 = vadd.f32 %v1411_v15, %v1265_v28  ;;  %v1271_v24 = vadd.f32 %v6085_v36, %v7713_v55 }
 0x14e   : > { %v6116_v37 = vpop.f32.mrf.mxu1  ;;  %v1226_v39 = vpop.f32.mrf.mxu0 }
 0x14f   : > { %v7845_v47 = vadd.f32 %v6116_v37, %v1268_v38  ;;  %v1269_v7 = vadd.f32 %v1226_v39, %v7717_v17 }
 0x150   : > { %v7848_v42 = vpop.f32.mrf.mxu1  ;;  %v6086_v20 = vpop.f32.mrf.mxu0 }
 0x151   : > { %v1272_v23 = vadd.f32 %v6086_v20, %v7722_v21 }
 0x152   : > { %v6119_v27 = vpop.f32.mrf.mxu1  ;;  %v7851_v51 = vpop.f32.mrf.mxu0 }
 0x153   : > { %v7853_v14 = vadd.f32 %v6119_v27, %v1271_v24 }
 0x154   : > { %v1427_v50 = vpop.f32.mrf.mxu1  ;;  %v6125_v28 = vpop.f32.mrf.mxu0 }
 0x155   : > { %v7855_v1 = vadd.f32 %v1427_v50, %v1269_v7  ;;  %v1645_v55 = vadd.f32 %v6125_v28, %v7728_v40 }
 0x156   : > { %v6120_v38 = vpop.f32.mrf.mxu1  ;;  %v1516_v57 = vpop.f32.mrf.mxu0 }
 0x157   : > { %v7858_v15 = vadd.f32 %v6120_v38, %v1272_v23  ;;  %v1643_v17 = vadd.f32 %v1516_v57, %v7735_v16 }
 0x158   : > { %v7861_v36 = vpop.f32.mrf.mxu1  ;;  %v6126_v21 = vpop.f32.mrf.mxu0 }
 0x159   : > { %10700 = vst [vmem:[#allocation20_spill] sm:$0xff] %v7861_v36  ;;  %v1646_v29 = vadd.f32 %v6126_v21, %v7740_v8 }
 0x15a   : > { %v6159_v37 = vpop.f32.mrf.mxu1  ;;  %v7864_v24 = vpop.f32.mrf.mxu0 }
 0x15b   : > { %v7866_v39 = vadd.f32 %v6159_v37, %v1645_v55 }
 0x15c   : > { %v1717_v7 = vpop.f32.mrf.mxu1  ;;  %v6129_v20 = vpop.f32.mrf.mxu0 }
 0x15d   : > { %v7868_v27 = vadd.f32 %v1717_v7, %v1643_v17  ;;  %v1649_v40 = vadd.f32 %v6129_v20, %v7746_v45 }
 0x15e   : > { %v6160_v23 = vpop.f32.mrf.mxu1  ;;  %v1532_v50 = vpop.f32.mrf.mxu0 }
 0x15f   : > { %v7871_v28 = vadd.f32 %v6160_v23, %v1646_v29  ;;  %v7874_v16 = vadd.f32 %v1532_v50, %v7753_v54 }
 0x160   : > { %v7876_v38 = vpop.f32.mrf.mxu1  ;;  %v6130_v8 = vpop.f32.mrf.mxu0 }
 0x161   : > { %v1650_v57 = vadd.f32 %v6130_v8, %v7758_v43 }
 0x162   : > { %v6163_v55 = vpop.f32.mrf.mxu1  ;;  %v7879_v21 = vpop.f32.mrf.mxu0 }
 0x163   : > { %v7881_v37 = vadd.f32 %v6163_v55, %v1649_v40 }
 0x164   : > { %v7883_v17 = vpop.f32.mrf.mxu1  ;;  %v6133_v45 = vpop.f32.mrf.mxu0 }
 0x165   : > { %10701 = vst [vmem:[#allocation22_spill] sm:$0xff] %v7883_v17  ;;  %v1653_v7 = vadd.f32 %v6133_v45, %v7764_v5 }
 0x166   : > { %v6164_v29 = vpop.f32.mrf.mxu1  ;;  %v1548_v20 = vpop.f32.mrf.mxu0 }
 0x167   : > { %v7886_v23 = vadd.f32 %v6164_v29, %v1650_v57  ;;  %v7889_v54 = vadd.f32 %v1548_v20, %v7771_v11 }
 0x168   : > { %v7891_v50 = vpop.f32.mrf.mxu1  ;;  %v6134_v43 = vpop.f32.mrf.mxu0 }
 0x169   : > { %10702 = vst [vmem:[#allocation17_spill] sm:$0xff] %v7889_v54  ;;  %v1654_v8 = vadd.f32 %v6134_v43, %v7776_v26 }
 0x16a   : > { %v6167_v18 = vpop.f32.mrf.mxu1  ;;  %v7894_v40 = vpop.f32.mrf.mxu0 }
 0x16b   : > { %10703 = vst [vmem:[#allocation6_spill] sm:$0xff] %v7894_v40  ;;  %v7896_v55 = vadd.f32 %v6167_v18, %v1653_v7 }
 0x16c   : > { %v7898_v36 = vpop.f32.mrf.mxu1  ;;  %v6137_v5 = vpop.f32.mrf.mxu0 }
 0x16d   : > { %10704 = vst [vmem:[#allocation5_spill] sm:$0xff] %v7898_v36  ;;  %v1657_v45 = vadd.f32 %v6137_v5, %v7782_v62 }
 0x16e   : > { %v6168_v57 = vpop.f32.mrf.mxu1  ;;  %v1564_v29 = vpop.f32.mrf.mxu0 }
 0x16f   : > { %v7901_v17 = vadd.f32 %v6168_v57, %v1654_v8  ;;  %v7904_v11 = vadd.f32 %v1564_v29, %v7789_v44 }
 0x170   : > { %v7906_v20 = vpop.f32.mrf.mxu1  ;;  %v6138_v26 = vpop.f32.mrf.mxu0 }
 0x171   : > { %10705 = vst [vmem:[#allocation4_spill] sm:$0xff] %v7904_v11  ;;  %10706 = vst [vmem:[#allocation7_spill] sm:$0xff] %v7906_v20  ;;  %v1658_v43 = vadd.f32 %v6138_v26, %v7794_v56 }
 0x172   : > { %v6171_v54 = vpop.f32.mrf.mxu1  ;;  %v7909_v18 = vpop.f32.mrf.mxu0 }
 0x173   : > { %v7911_v7 = vadd.f32 %v6171_v54, %v1657_v45 }
 0x174   : > { %v7913_v36 = vpop.f32.mrf.mxu1  ;;  %v6141_v62 = vpop.f32.mrf.mxu0 }
 0x175   : > { %10707 = vst [vmem:[#allocation8_spill] sm:$0xff] %v7913_v36  ;;  %v1661_v5 = vadd.f32 %v6141_v62, %v7802_v12 }
 0x176   : > { %v6172_v8 = vpop.f32.mrf.mxu1  ;;  %v1580_v57 = vpop.f32.mrf.mxu0 }
 0x177   : > { %v7916_v40 = vadd.f32 %v6172_v8, %v1658_v43  ;;  %v7919_v44 = vadd.f32 %v1580_v57, %v7806_v49 }
 0x178   : > { %v7921_v29 = vpop.f32.mrf.mxu1  ;;  %v6142_v56 = vpop.f32.mrf.mxu0 }
 0x179   : > { %10708 = vst [vmem:[#allocation9_spill] sm:$0xff] %v7919_v44  ;;  %v1662_v26 = vadd.f32 %v6142_v56, %v7811_v10 }
 0x17a   : > { %v6175_v11 = vpop.f32.mrf.mxu1  ;;  %v7924_v54 = vpop.f32.mrf.mxu0 }
 0x17b   : > { %10709 = vst [vmem:[#allocation10_spill] sm:$0xff] %v7924_v54  ;;  %v7926_v45 = vadd.f32 %v6175_v11, %v1661_v5 }
 0x17c   : > { %v7928_v36 = vpop.f32.mrf.mxu1  ;;  %v6145_v12 = vpop.f32.mrf.mxu0 }
 0x17d   : > { %10710 = vst [vmem:[#allocation11_spill] sm:$0xff] %v7928_v36  ;;  %v1665_v62 = vadd.f32 %v6145_v12, %v7819_v61 }
 0x17e   : > { %v6176_v43 = vpop.f32.mrf.mxu1  ;;  %v1596_v8 = vpop.f32.mrf.mxu0 }
 0x17f   : > { %v7931_v20 = vadd.f32 %v6176_v43, %v1662_v26  ;;  %v7934_v49 = vadd.f32 %v1596_v8, %v7823_v3 }
 0x180   : > { %v7936_v57 = vpop.f32.mrf.mxu1  ;;  %v6146_v10 = vpop.f32.mrf.mxu0 }
 0x181   : > { %10711 = vst [vmem:[#allocation12_spill] sm:$0xff] %v7934_v49  ;;  %10712 = vst [vmem:[#allocation13_spill] sm:$0xff] %v7936_v57  ;;  %v1666_v56 = vadd.f32 %v6146_v10, %v7828_v41 }
 0x182   : > { %v6179_v44 = vpop.f32.mrf.mxu1  ;;  %v7939_v11 = vpop.f32.mrf.mxu0 }
 0x183   : > { %10713 = vst [vmem:[#allocation14_spill] sm:$0xff] %v7939_v11  ;;  %v7941_v5 = vadd.f32 %v6179_v44, %v1665_v62 }
 0x184   : > { %v7943_v36 = vpop.f32.mrf.mxu1  ;;  %v6149_v61 = vpop.f32.mrf.mxu0 }
 0x185   : > { %10714 = vst [vmem:[#allocation18_spill] sm:$0xff] %v7943_v36  ;;  %v1669_v12 = vadd.f32 %v6149_v61, %v7836_v59 }
 0x186   : > { %v6180_v26 = vpop.f32.mrf.mxu1  ;;  %v1612_v43 = vpop.f32.mrf.mxu0 }
 0x187   : > { %v7946_v54 = vadd.f32 %v6180_v26, %v1666_v56  ;;  %v7949_v3 = vadd.f32 %v1612_v43, %v7842_v0  ;;  %v5523_v0 = vld [vmem:[%s10568_s2 + $0x2] sm:$0x3] }
 0x188   : > { %v7951_v8 = vpop.f32.mrf.mxu1  ;;  %v6150_v41 = vpop.f32.mrf.mxu0  ;;  %6606 = vmatprep.subr.msk.bf16.mxu1 %vm650_vm0, %v5523_v0 }
 0x189   : > { %10715 = vst [vmem:[#allocation19_spill] sm:$0xff] %v7949_v3  ;;  %10716 = vst [vmem:[#allocation24_spill] sm:$0xff] %v7951_v8  ;;  %v1670_v10 = vadd.f32 %v6150_v41, %v7845_v47 }
 0x18a   : > { %v6183_v49 = vpop.f32.mrf.mxu1  ;;  %v7954_v44 = vpop.f32.mrf.mxu0 }
 0x18b   : > { %10717 = vst [vmem:[#allocation25_spill] sm:$0xff] %v7954_v44  ;;  %v7956_v62 = vadd.f32 %v6183_v49, %v1669_v12  ;;  %v3178_v49 = vsel %vm650_vm0, %v5523_v0, 0 }
 0x18c   : > { %v7958_v36 = vpop.f32.mrf.mxu1  ;;  %v6153_v59 = vpop.f32.mrf.mxu0  ;;  %6292 = vmatpush3.bf16.msra.mxu1 %v3178_v49 }
 0x18d   : > { %10718 = vst [vmem:[#allocation26_spill] sm:$0xff] %v7958_v36  ;;  %v1673_v61 = vadd.f32 %v6153_v59, %v7853_v14 }
 0x18e   : > { %v6184_v56 = vpop.f32.mrf.mxu1  ;;  %v1628_v26 = vpop.f32.mrf.mxu0 }
 0x18f   : > { %v7964_v43 = vadd.f32 %v6184_v56, %v1670_v10  ;;  %v7967_v47 = vadd.f32 %v1628_v26, %v7855_v1 }
 0x190   : > { %v7971_v12 = vpop.f32.mrf.mxu1  ;;  %v6154_v41 = vpop.f32.mrf.mxu0 }
 0x191   : > { %10719 = vst [vmem:[#allocation15_spill] sm:$0xff] %v7967_v47  ;;  %10720 = vst [vmem:[#allocation16_spill] sm:$0xff] %v7971_v12  ;;  %v1674_v14 = vadd.f32 %v6154_v41, %v7858_v15 }
 0x192   : > { %v6187_v59 = vpop.f32.mrf.mxu1  ;;  %v7974_v36 = vpop.f32.mrf.mxu0 }
 0x193   : > { %10721 = vst [vmem:[#allocation27_spill] sm:$0xff] %v7974_v36  ;;  %v7976_v3 = vadd.f32 %v6187_v59, %v1673_v61 }
 0x194   : > { %v7978_v10 = vpop.f32.mrf.mxu1  ;;  %v6193_v56 = vpop.f32.mrf.mxu0 }
 0x195   : > { %10722 = vst [vmem:[#allocation28_spill] sm:$0xff] %v7978_v10  ;;  %v7981_v1 = vadd.f32 %v6193_v56, %v7866_v39 }
 0x196   : > { %v6188_v26 = vpop.f32.mrf.mxu1  ;;  %v1918_v47 = vpop.f32.mrf.mxu0 }
 0x197   : > { %v7983_v0 = vadd.f32 %v6188_v26, %v1674_v14  ;;  %v7986_v12 = vadd.f32 %v1918_v47, %v7868_v27 }
 0x198   : > { %v7988_v49 = vpop.f32.mrf.mxu1  ;;  %v6194_v15 = vpop.f32.mrf.mxu0 }
 0x199   : > { %10723 = vst [vmem:[#allocation29_spill] sm:$0xff] %v7988_v49  ;;  %v7991_v41 = vadd.f32 %v6194_v15, %v7871_v28 }
 0x19a   : > { %v7993_v61 = vpop.f32.mrf.mxu1  ;;  %v7995_v59 = vpop.f32.mrf.mxu0 }
 0x19c   : > { %v7997_v36 = vpop.f32.mrf.mxu1  ;;  %v6197_v39 = vpop.f32.mrf.mxu0 }
 0x19d   : > { %v8000_v56 = vadd.f32 %v6197_v39, %v7881_v37 }
 0x19e   : > { %v8002_v14 = vpop.f32.mrf.mxu1  ;;  %v8004_v27 = vpop.f32.mrf.mxu0 }
 0x1a0   : > { %v8006_v47 = vpop.f32.mrf.mxu1  ;;  %v6198_v26 = vpop.f32.mrf.mxu0 }
 0x1a1   : > { %v8009_v28 = vadd.f32 %v6198_v26, %v7886_v23 }
 0x1a2   : > { %v8011_v15 = vpop.f32.mrf.mxu1  ;;  %v8013_v49 = vpop.f32.mrf.mxu0 }
 0x1a3   : > { %10724 = vst [vmem:[#allocation30_spill] sm:$0xff] %v8009_v28  ;;  %10725 = vst [vmem:[#allocation31_spill] sm:$0xff] %v8011_v15 }
 0x1a4   : > { %10726 = vst [vmem:[#allocation32_spill] sm:$0xff] %v8013_v49  ;;  %v6201_v10 = vpop.f32.mrf.mxu0  ;;  %v8015_v44 = vpop.f32.mrf.mxu1 }
 0x1a5   : > { %v8018_v37 = vadd.f32 %v6201_v10, %v7896_v55 }
 0x1a6   : > { %v8020_v39 = vpop.f32.mrf.mxu0  ;;  %v8022_v11 = vpop.f32.mrf.mxu1 }
 0x1a7   : > { %10727 = vst [vmem:[#allocation33_spill] sm:$0xff] %v8018_v37  ;;  %10728 = vst [vmem:[#allocation34_spill] sm:$0xff] %v8020_v39 }
 0x1a8   : > { %v6202_v8 = vpop.f32.mrf.mxu0  ;;  %v8029_v28 = vpop.f32.mrf.mxu1 }
 0x1a9   : > { %v8025_v57 = vadd.f32 %v6202_v8, %v7901_v17 }
 0x1aa   : > { %v8027_v23 = vpop.f32.mrf.mxu0  ;;  %v8036_v10 = vpop.f32.mrf.mxu1 }
 0x1ab   : > { %10729 = vst [vmem:[#allocation35_spill] sm:$0xff] %v8025_v57  ;;  %10730 = vst [vmem:[#allocation36_spill] sm:$0xff] %v8027_v23 }
 0x1ac   : > { %v6205_v26 = vpop.f32.mrf.mxu0  ;;  %v8043_v8 = vpop.f32.mrf.mxu1 }
 0x1ad   : > { %v8032_v49 = vadd.f32 %v6205_v26, %v7911_v7 }
 0x1ae   : > { %v8034_v15 = vpop.f32.mrf.mxu0  ;;  %v8050_v26 = vpop.f32.mrf.mxu1 }
 0x1af   : > { %10731 = vst [vmem:[#allocation37_spill] sm:$0xff] %v8032_v49  ;;  %10732 = vst [vmem:[#allocation38_spill] sm:$0xff] %v8034_v15 }
 0x1b0   : > { %v6206_v55 = vpop.f32.mrf.mxu0 }
 0x1b1   : > { %v8039_v37 = vadd.f32 %v6206_v55, %v7916_v40  ;;  %v8057_v55 = vpop.f32.mrf.mxu1 }
 0x1b2   : > { %v8041_v39 = vpop.f32.mrf.mxu0 }
 0x1b3   : > { %10733 = vst [vmem:[#allocation39_spill] sm:$0xff] %v8039_v37  ;;  %10734 = vst [vmem:[#allocation40_spill] sm:$0xff] %v8041_v39 }
 0x1b4   : > { %v6209_v17 = vpop.f32.mrf.mxu0 }
 0x1b5   : > { %v8046_v57 = vadd.f32 %v6209_v17, %v7926_v45  ;;  %v8064_v17 = vpop.f32.mrf.mxu1 }
 0x1b6   : > { %v8048_v23 = vpop.f32.mrf.mxu0 }
 0x1b7   : > { %10735 = vst [vmem:[#allocation41_spill] sm:$0xff] %v8046_v57  ;;  %10736 = vst [vmem:[#allocation42_spill] sm:$0xff] %v8048_v23 }
 0x1b8   : > { %v6210_v7 = vpop.f32.mrf.mxu0 }
 0x1b9   : > { %v8053_v49 = vadd.f32 %v6210_v7, %v7931_v20  ;;  %v3129_v7 = vld [vmem:[%s10568_s2] sm:$0x3] }
 0x1ba   : > { %v8055_v15 = vpop.f32.mrf.mxu0  ;;  %6607 = vmatprep.subr.msk.bf16.mxu0 %vm650_vm0, %v3129_v7 }
 0x1bb   : > { %10737 = vst [vmem:[#allocation43_spill] sm:$0xff] %v8053_v49  ;;  %10738 = vst [vmem:[#allocation44_spill] sm:$0xff] %v8055_v15  ;;  %v8074_v49 = vpop.f32.mrf.mxu1 }
 0x1bc   : > { %v6213_v40 = vpop.f32.mrf.mxu0 }
 0x1bd   : > { %v8060_v37 = vadd.f32 %v6213_v40, %v7941_v5 }
 0x1be   : > { %v8062_v39 = vpop.f32.mrf.mxu0 }
 0x1bf   : > { %10739 = vst [vmem:[#allocation45_spill] sm:$0xff] %v8060_v37  ;;  %10740 = vst [vmem:[#allocation46_spill] sm:$0xff] %v8062_v39 }
 0x1c0   : > { %v6214_v45 = vpop.f32.mrf.mxu0 }
 0x1c1   : > { %v8067_v57 = vadd.f32 %v6214_v45, %v7946_v54  ;;  %v3390_v54 = vsel %vm650_vm0, %v3129_v7, 0  ;;  %v8083_v45 = vpop.f32.mrf.mxu1  ;;  %v1443_v7 = vadd.f32 %v7743_v60, %v7731_v30  ;;  %v1016_v30 = vadd.f32 %v7725_v6, %v7711_v33 }
 0x1c2   : > { %v8069_v23 = vpop.f32.mrf.mxu0  ;;  %6326 = vmatpush3.bf16.msra.mxu0 %v3390_v54 }
 0x1c3   : > { %10741 = vst [vmem:[#allocation47_spill] sm:$0xff] %v8067_v57  ;;  %10742 = vst [vmem:[#allocation48_spill] sm:$0xff] %v8069_v23  ;;  %v8090_v15 = vpop.f32.mrf.mxu1 }
 0x1c4   : > { %v6217_v20 = vpop.f32.mrf.mxu0 }
 0x1c5   : > { %v8077_v5 = vadd.f32 %v6217_v20, %v7956_v62 }
 0x1c6   : > { %v8080_v40 = vpop.f32.mrf.mxu0 }
 0x1c7   : > { %10743 = vst [vmem:[#allocation49_spill] sm:$0xff] %v8077_v5  ;;  %10744 = vst [vmem:[#allocation50_spill] sm:$0xff] %v8080_v40  ;;  %v8099_v40 = vpop.f32.mrf.mxu1 }
 0x1c8   : > { %v6218_v37 = vpop.f32.mrf.mxu0 }
 0x1c9   : > { %v8086_v57 = vadd.f32 %v6218_v37, %v7964_v43  ;;  %v968_v37 = vadd.f32 %v7669_v32, %v7655_v2  ;;  %v1451_v2 = vadd.f32 %v7779_v31, %v7767_v63  ;;  %v2245_v63 = vadd.f32 %v7993_v61, %v7981_v1  ;;  %v10748_v1 = vld [vmem:[#allocation6_spill] sm:$0xff] }
 0x1ca   : > { %v8088_v23 = vpop.f32.mrf.mxu0 }
 0x1cb   : > { %10745 = vst [vmem:[#allocation51_spill] sm:$0xff] %v8086_v57  ;;  %v1644_v57 = vadd.f32 %v7864_v24, %v1443_v7  ;;  %v1258_v60 = vadd.f32 %v7800_v25, %v968_v37  ;;  %v10749_v7 = vld [vmem:[#allocation17_spill] sm:$0xff] }
 0x1cc   : > { %v6221_v39 = vpop.f32.mrf.mxu0  ;;  %v10750_v37 = vld [vmem:[#allocation5_spill] sm:$0xff] }
 0x1cd   : > { %v8093_v62 = vadd.f32 %v6221_v39, %v7976_v3  ;;  %v984_v3 = vadd.f32 %v7687_v52, %v7673_v35  ;;  %v1000_v39 = vadd.f32 %v7707_v22, %v7691_v48  ;;  %v1845_v32 = vadd.f32 %v7876_v38, %v1644_v57  ;;  %v8123_v52 = vpop.f32.mrf.mxu1 }
 0x1ce   : > { %v8095_v20 = vpop.f32.mrf.mxu0  ;;  %v2243_v35 = vadd.f32 %v7997_v36, %v7986_v12  ;;  %v1455_v48 = vadd.f32 %v7797_v4, %v7785_v9  ;;  %v1459_v33 = vadd.f32 %v7814_v19, %v1258_v60  ;;  %v10746_v19 = vld [vmem:[#allocation22_spill] sm:$0xff]  ;;  %v2246_v38 = vadd.f32 %v8002_v14, %v7991_v41  ;;  %v10753_v60 = vld [vmem:[#allocation8_spill] sm:$0xff] }
 0x1cf   : > { %v1262_v22 = vadd.f32 %v7817_v34, %v984_v3  ;;  %v1266_v6 = vadd.f32 %v7834_v46, %v1000_v39  ;;  %v2046_v31 = vadd.f32 %v7995_v59, %v1845_v32  ;;  %v1848_v34 = vadd.f32 %v10746_v19, %v7874_v16  ;;  %v8151_v12 = vpop.f32.mrf.mxu1  ;;  %v10751_v39 = vld [vmem:[#allocation7_spill] sm:$0xff] }
 0x1d0   : > { %v6222_v5 = vpop.f32.mrf.mxu0  ;;  %v1656_v61 = vadd.f32 %v7909_v18, %v1455_v48  ;;  %v1852_v3 = vadd.f32 %v10750_v37, %v10749_v7  ;;  %v10757_v37 = vld [vmem:[#allocation10_spill] sm:$0xff] }
 0x1d1   : > { %v8102_v43 = vadd.f32 %v6222_v5, %v7983_v0  ;;  %v1447_v5 = vadd.f32 %v7761_v13, %v7749_v58  ;;  %v1270_v13 = vadd.f32 %v7851_v51, %v1016_v30  ;;  %v8137_v36 = vadd.f32 %v7831_v53, %v1262_v22  ;;  %v10747_v51 = vld [vmem:[#allocation20_spill] sm:$0xff] }
 0x1d2   : > { %v8106_v54 = vpop.f32.mrf.mxu0  ;;  %v8140_v9 = vadd.f32 %v7848_v42, %v1266_v6  ;;  %v2244_v57 = vadd.f32 %v8006_v47, %v2046_v31  ;;  %v2049_v16 = vadd.f32 %v8004_v27, %v1848_v34  ;;  %v8173_v18 = vadd.f32 %v7921_v29, %v1656_v61  ;;  %v10754_v29 = vld [vmem:[#allocation31_spill] sm:$0xff] }
 0x1d3   : > { %v1648_v4 = vadd.f32 %v7879_v21, %v1447_v5  ;;  %v8146_v24 = vadd.f32 %v10747_v51, %v1270_v13  ;;  %v1652_v21 = vadd.f32 %v10748_v1, %v1451_v2  ;;  %v8176_v2 = vpop.f32.mrf.mxu1  ;;  %v2249_v6 = vadd.f32 %v10754_v29, %v8000_v56  ;;  %v8200_v56 = vld [vmem:[%s10568_s2 + $0x4] sm:$0x3]  ;;  %v10760_v29 = vld [vmem:[#allocation11_spill] sm:$0xff] }
 0x1d4   : > { %v6261_v0 = vpop.f32.mrf.mxu0  ;;  %v2247_v27 = vadd.f32 %v8015_v44, %v2049_v16  ;;  %v10756_v51 = vld [vmem:[#allocation30_spill] sm:$0xff]  ;;  %6608 = vmatprep.subr.msk.bf16.mxu1 %vm650_vm0, %v8200_v56 }
 0x1d5   : > { %v8153_v53 = vadd.f32 %v6261_v0, %v2245_v63  ;;  %v1849_v42 = vadd.f32 %v7891_v50, %v1648_v4  ;;  %v1853_v30 = vadd.f32 %v10751_v39, %v1652_v21  ;;  %v10752_v50 = vld [vmem:[#allocation4_spill] sm:$0xff]  ;;  %v8207_v61 = vpop.f32.mrf.mxu1 }
 0x1d6   : > { %v2317_v58 = vpop.f32.mrf.mxu0  ;;  %v8170_v0 = vadd.f32 %v10753_v60, %v10752_v50 }
 0x1d7   : > { %v8134_v25 = vadd.f32 %v2317_v58, %v2243_v35  ;;  %v2547_v32 = vmul.f32 %v8153_v53, %v8153_v53  ;;  %v10755_v58 = vld [vmem:[#allocation32_spill] sm:$0xff]  ;;  %v2479_v13 = vsel %vm604_vm1, %v8153_v53, 0.0 }
 0x1d8   : > { %v6262_v46 = vpop.f32.mrf.mxu0  ;;  %v2050_v44 = vadd.f32 %v10755_v58, %v1849_v42 }
 0x1d9   : > { %v2545_v41 = vmul.f32 %v8134_v25, %v8134_v25  ;;  %v8163_v14 = vadd.f32 %v6262_v46, %v2246_v38  ;;  %v2476_v35 = vsel %vm604_vm1, %v8134_v25, 0.0  ;;  %v2250_v38 = vadd.f32 %v8022_v11, %v10756_v51 }
 0x1da   : > { %v2320_v59 = vpop.f32.mrf.mxu0  ;;  %v2580_v16 = vsel %vm604_vm1, %v2547_v32, 0.0 }
 0x1db   : > { %v8165_v47 = vadd.f32 %v2320_v59, %v2244_v57  ;;  %v2577_v4 = vsel %vm604_vm1, %v2545_v41, 0.0  ;;  %v2548_v19 = vmul.f32 %v8163_v14, %v8163_v14  ;;  %v2248_v57 = vadd.f32 %v8029_v28, %v2050_v44  ;;  %v10758_v41 = vld [vmem:[#allocation34_spill] sm:$0xff] }
 0x1dc   : > { %v6265_v5 = vpop.f32.mrf.mxu0  ;;  %v2481_v59 = vsel %vm604_vm1, %v8163_v14, 0.0  ;;  %v1660_v28 = vadd.f32 %v10757_v37, %v1459_v33  ;;  %v2053_v39 = vadd.f32 %v10758_v41, %v1852_v3  ;;  %v10763_v37 = vld [vmem:[#allocation35_spill] sm:$0xff] }
 0x1dd   : > { %v2477_v48 = vsel %vm604_vm1, %v8165_v47, 0.0  ;;  %v2546_v22 = vmul.f32 %v8165_v47, %v8165_v47  ;;  %v8212_v7 = vadd.f32 %v6265_v5, %v2249_v6  ;;  %v10759_v5 = vld [vmem:[#allocation9_spill] sm:$0xff]  ;;  %v2254_v41 = vadd.f32 %v8050_v26, %v10763_v37  ;;  %v10765_v26 = vld [vmem:[#allocation38_spill] sm:$0xff] }
 0x1de   : > { %v2478_v63 = vadd.f32 %v2477_v48, %v2476_v35  ;;  %v2333_v31 = vpop.f32.mrf.mxu0  ;;  %v2582_v35 = vsel %vm604_vm1, %v2548_v19, 0.0  ;;  %v8227_v6 = vadd.f32 %v10760_v29, %v10759_v5  ;;  %v2251_v33 = vadd.f32 %v8043_v8, %v2053_v39  ;;  %v10762_v8 = vld [vmem:[#allocation36_spill] sm:$0xff]  ;;  %v10764_v29 = vld [vmem:[#allocation13_spill] sm:$0xff] }
 0x1df   : > { %v2578_v34 = vsel %vm604_vm1, %v2546_v22, 0.0  ;;  %v8195_v46 = vadd.f32 %v2333_v31, %v2247_v27 }
 0x1e0   : > { %v2480_v42 = vadd.f32 %v2479_v13, %v2478_v63  ;;  %v2579_v1 = vadd.f32 %v2578_v34, %v2577_v4  ;;  %v6266_v21 = vpop.f32.mrf.mxu0  ;;  %v8230_v13 = vpop.f32.mrf.mxu1  ;;  %v2551_v63 = vmul.f32 %v8212_v7, %v8212_v7  ;;  %v10761_v34 = vld [vmem:[#allocation33_spill] sm:$0xff] }
 0x1e1   : > { %v2549_v11 = vmul.f32 %v8195_v46, %v8195_v46  ;;  %v2483_v32 = vsel %vm604_vm1, %v8195_v46, 0.0  ;;  %v8221_v48 = vadd.f32 %v6266_v21, %v2250_v38  ;;  %v2253_v51 = vadd.f32 %v8036_v10, %v10761_v34  ;;  %v10766_v34 = vld [vmem:[#allocation14_spill] sm:$0xff] }
 0x1e2   : > { %v2581_v50 = vadd.f32 %v2580_v16, %v2579_v1  ;;  %v2482_v60 = vadd.f32 %v2481_v59, %v2480_v42  ;;  %v2336_v27 = vpop.f32.mrf.mxu0  ;;  %v2054_v38 = vadd.f32 %v10762_v8, %v1853_v30  ;;  %v2487_v21 = vsel %vm604_vm1, %v8212_v7, 0.0 }
 0x1e3   : > { %v8223_v22 = vadd.f32 %v2336_v27, %v2248_v57  ;;  %v2584_v31 = vsel %vm604_vm1, %v2549_v11, 0.0  ;;  %v2552_v16 = vmul.f32 %v8221_v48, %v8221_v48  ;;  %v2588_v27 = vsel %vm604_vm1, %v2551_v63, 0.0 }
 0x1e4   : > { %v2484_v58 = vadd.f32 %v2483_v32, %v2482_v60  ;;  %v2583_v3 = vadd.f32 %v2582_v35, %v2581_v50  ;;  %v6269_v44 = vpop.f32.mrf.mxu0  ;;  %v2252_v10 = vadd.f32 %v8057_v55, %v2054_v38  ;;  %v8252_v60 = vpop.f32.mrf.mxu1  ;;  %v2489_v35 = vsel %vm604_vm1, %v8221_v48, 0.0 }
 0x1e5   : > { %v2485_v4 = vsel %vm604_vm1, %v8223_v22, 0.0  ;;  %v2550_v19 = vmul.f32 %v8223_v22, %v8223_v22  ;;  %v8257_v32 = vadd.f32 %v6269_v44, %v2253_v51  ;;  %v2057_v55 = vadd.f32 %v10765_v26, %v8170_v0 }
 0x1e6   : > { %v2585_v57 = vadd.f32 %v2584_v31, %v2583_v3  ;;  %v2486_v42 = vadd.f32 %v2485_v4, %v2484_v58  ;;  %v2349_v1 = vpop.f32.mrf.mxu0  ;;  %v2590_v4 = vsel %vm604_vm1, %v2552_v16, 0.0  ;;  %v1664_v51 = vadd.f32 %v10766_v34, %v8137_v36  ;;  %v10770_v34 = vld [vmem:[#allocation12_spill] sm:$0xff] }
 0x1e7   : > { %v2586_v59 = vsel %vm604_vm1, %v2550_v19, 0.0  ;;  %v8247_v11 = vadd.f32 %v2349_v1, %v2251_v33  ;;  %v1861_v33 = vadd.f32 %v10764_v29, %v1660_v28  ;;  %v2255_v28 = vadd.f32 %v8074_v49, %v2057_v55  ;;  %v10768_v49 = vld [vmem:[#allocation40_spill] sm:$0xff] }
 0x1e8   : > { %v2488_v39 = vadd.f32 %v2487_v21, %v2486_v42  ;;  %v2587_v30 = vadd.f32 %v2586_v59, %v2585_v57  ;;  %v6270_v50 = vpop.f32.mrf.mxu0  ;;  %v8274_v57 = vpop.f32.mrf.mxu1  ;;  %v2555_v42 = vmul.f32 %v8257_v32, %v8257_v32  ;;  %v10767_v59 = vld [vmem:[#allocation37_spill] sm:$0xff]  ;;  %v2058_v37 = vadd.f32 %v10768_v49, %v8173_v18 }
 0x1e9   : > { %v2553_v5 = vmul.f32 %v8247_v11, %v8247_v11  ;;  %v2491_v63 = vsel %vm604_vm1, %v8247_v11, 0.0  ;;  %v8267_v19 = vadd.f32 %v6270_v50, %v2254_v41  ;;  %v2257_v36 = vadd.f32 %v8064_v17, %v10767_v59 }
 0x1ea   : > { %v2589_v58 = vadd.f32 %v2588_v27, %v2587_v30  ;;  %v2490_v3 = vadd.f32 %v2489_v35, %v2488_v39  ;;  %v2352_v31 = vpop.f32.mrf.mxu0  ;;  %v2495_v30 = vsel %vm604_vm1, %v8257_v32, 0.0  ;;  %v2256_v17 = vadd.f32 %v8090_v15, %v2058_v37  ;;  %v10772_v15 = vld [vmem:[#allocation42_spill] sm:$0xff] }
 0x1eb   : > { %v8269_v44 = vadd.f32 %v2352_v31, %v2252_v10  ;;  %v2592_v1 = vsel %vm604_vm1, %v2553_v5, 0.0  ;;  %v2556_v50 = vmul.f32 %v8267_v19, %v8267_v19  ;;  %v10769_v5 = vld [vmem:[#allocation39_spill] sm:$0xff]  ;;  %v2497_v31 = vsel %vm604_vm1, %v8267_v19, 0.0 }
 0x1ec   : > { %v2492_v8 = vadd.f32 %v2491_v63, %v2490_v3  ;;  %v2591_v38 = vadd.f32 %v2590_v4, %v2589_v58  ;;  %v6273_v0 = vpop.f32.mrf.mxu0  ;;  %v2258_v29 = vadd.f32 %v8083_v45, %v10769_v5  ;;  %v8297_v58 = vpop.f32.mrf.mxu1  ;;  %v2596_v3 = vsel %vm604_vm1, %v2555_v42, 0.0 }
 0x1ed   : > { %v2493_v21 = vsel %vm604_vm1, %v8269_v44, 0.0  ;;  %v2554_v16 = vmul.f32 %v8269_v44, %v8269_v44  ;;  %v8302_v4 = vadd.f32 %v6273_v0, %v2257_v36  ;;  %v10773_v36 = vld [vmem:[#allocation24_spill] sm:$0xff] }
 0x1ee   : > { %v2593_v41 = vadd.f32 %v2592_v1, %v2591_v38  ;;  %v2494_v10 = vadd.f32 %v2493_v21, %v2492_v8  ;;  %v2365_v39 = vpop.f32.mrf.mxu0  ;;  %v2061_v8 = vadd.f32 %v10772_v15, %v8227_v6  ;;  %v1865_v49 = vadd.f32 %v10773_v36, %v1664_v51  ;;  %v8319_v6 = vpop.f32.mrf.mxu1 }
 0x1ef   : > { %v2594_v27 = vsel %vm604_vm1, %v2554_v16, 0.0  ;;  %v8292_v35 = vadd.f32 %v2365_v39, %v2255_v28  ;;  %v10771_v28 = vld [vmem:[#allocation18_spill] sm:$0xff]  ;;  %v2598_v16 = vsel %vm604_vm1, %v2556_v50, 0.0 }
 0x1f0   : > { %v2496_v26 = vadd.f32 %v2495_v30, %v2494_v10  ;;  %v2595_v18 = vadd.f32 %v2594_v27, %v2593_v41  ;;  %v6274_v55 = vpop.f32.mrf.mxu0  ;;  %v1864_v45 = vadd.f32 %v10771_v28, %v10770_v34  ;;  %v2259_v37 = vadd.f32 %v8123_v52, %v2061_v8  ;;  %v10775_v52 = vld [vmem:[#allocation44_spill] sm:$0xff]  ;;  %v10776_v28 = vld [vmem:[#allocation43_spill] sm:$0xff] }
 0x1f1   : > { %v2557_v63 = vmul.f32 %v8292_v35, %v8292_v35  ;;  %v2499_v42 = vsel %vm604_vm1, %v8292_v35, 0.0  ;;  %v8313_v59 = vadd.f32 %v6274_v55, %v2258_v29  ;;  %v2559_v30 = vmul.f32 %v8302_v4, %v8302_v4  ;;  %v10774_v29 = vld [vmem:[#allocation41_spill] sm:$0xff] }
 0x1f2   : > { %v2597_v38 = vadd.f32 %v2596_v3, %v2595_v18  ;;  %v2498_v1 = vadd.f32 %v2497_v31, %v2496_v26  ;;  %v2368_v21 = vpop.f32.mrf.mxu0  ;;  %v2261_v51 = vadd.f32 %v8099_v40, %v10774_v29  ;;  %v2503_v3 = vsel %vm604_vm1, %v8302_v4, 0.0 }
 0x1f3   : > { %v8315_v0 = vadd.f32 %v2368_v21, %v2256_v17  ;;  %v2600_v50 = vsel %vm604_vm1, %v2557_v63, 0.0  ;;  %v2062_v17 = vadd.f32 %v10775_v52, %v1861_v33  ;;  %v2560_v31 = vmul.f32 %v8313_v59, %v8313_v59  ;;  %v10780_v52 = vld [vmem:[#allocation26_spill] sm:$0xff] }
 0x1f4   : > { %v2500_v41 = vadd.f32 %v2499_v42, %v2498_v1  ;;  %v2599_v10 = vadd.f32 %v2598_v16, %v2597_v38  ;;  %v6277_v39 = vpop.f32.mrf.mxu0  ;;  %v2262_v15 = vadd.f32 %v8151_v12, %v10776_v28  ;;  %v8341_v1 = vpop.f32.mrf.mxu1  ;;  %v2604_v21 = vsel %vm604_vm1, %v2559_v30, 0.0 }
 0x1f5   : > { %v2501_v27 = vsel %vm604_vm1, %v8315_v0, 0.0  ;;  %v2558_v5 = vmul.f32 %v8315_v0, %v8315_v0  ;;  %v2260_v40 = vadd.f32 %v8176_v2, %v2062_v17  ;;  %v2505_v16 = vsel %vm604_vm1, %v8313_v59, 0.0 }
 0x1f6   : > { %v2601_v26 = vadd.f32 %v2600_v50, %v2599_v10  ;;  %v2502_v18 = vadd.f32 %v2501_v27, %v2500_v41  ;;  %v2381_v55 = vpop.f32.mrf.mxu0  ;;  %v8346_v42 = vadd.f32 %v6277_v39, %v2261_v51  ;;  %v10778_v41 = vld [vmem:[#allocation46_spill] sm:$0xff]  ;;  %v10779_v51 = vld [vmem:[#allocation19_spill] sm:$0xff] }
 0x1f7   : > { %v2602_v63 = vsel %vm604_vm1, %v2558_v5, 0.0  ;;  %v8336_v34 = vadd.f32 %v2381_v55, %v2259_v37  ;;  %v10777_v37 = vld [vmem:[#allocation25_spill] sm:$0xff]  ;;  %v2065_v2 = vadd.f32 %v10778_v41, %v1864_v45  ;;  %v2606_v5 = vsel %vm604_vm1, %v2560_v31, 0.0  ;;  %v2215_v55 = vpop.f32.mrf.mxu1 }
 0x1f8   : > { %v2504_v8 = vadd.f32 %v2503_v3, %v2502_v18  ;;  %v2603_v33 = vadd.f32 %v2602_v63, %v2601_v26  ;;  %v6278_v38 = vpop.f32.mrf.mxu0  ;;  %v1668_v12 = vadd.f32 %v10777_v37, %v8140_v9  ;;  %v1868_v17 = vadd.f32 %v10780_v52, %v10779_v51 }
 0x1f9   : > { %v2561_v36 = vmul.f32 %v8336_v34, %v8336_v34  ;;  %v2507_v30 = vsel %vm604_vm1, %v8336_v34, 0.0  ;;  %v8356_v29 = vadd.f32 %v6278_v38, %v2262_v15  ;;  %v2263_v26 = vadd.f32 %v8230_v13, %v2065_v2  ;;  %v10781_v15 = vld [vmem:[#allocation45_spill] sm:$0xff]  ;;  %v10783_v2 = vld [vmem:[#allocation47_spill] sm:$0xff] }
 0x1fa   : > { %v2605_v10 = vadd.f32 %v2604_v21, %v2603_v33  ;;  %v2506_v50 = vadd.f32 %v2505_v16, %v2504_v8  ;;  %v2384_v27 = vpop.f32.mrf.mxu0  ;;  %v2563_v3 = vmul.f32 %v8346_v42, %v8346_v42  ;;  %v10782_v8 = vld [vmem:[#allocation48_spill] sm:$0xff]  ;;  %v2511_v16 = vsel %vm604_vm1, %v8346_v42, 0.0 }
 0x1fb   : > { %v8358_v39 = vadd.f32 %v2384_v27, %v2260_v40  ;;  %v2608_v31 = vsel %vm604_vm1, %v2561_v36, 0.0  ;;  %v2265_v40 = vadd.f32 %v8207_v61, %v10781_v15  ;;  %v2066_v13 = vadd.f32 %v10782_v8, %v1865_v49 }
 0x1fc   : > { %v2508_v9 = vadd.f32 %v2507_v30, %v2506_v50  ;;  %v2607_v18 = vadd.f32 %v2606_v5, %v2605_v10  ;;  %v6281_v45 = vpop.f32.mrf.mxu0  ;;  %v2564_v36 = vmul.f32 %v8356_v29, %v8356_v29  ;;  %v2266_v10 = vadd.f32 %v8252_v60, %v10783_v2  ;;  %v6255_v5 = vpop.f32.mrf.mxu1 }
 0x1fd   : > { %v2509_v63 = vsel %vm604_vm1, %v8358_v39, 0.0  ;;  %v2562_v28 = vmul.f32 %v8358_v39, %v8358_v39  ;;  %v2264_v61 = vadd.f32 %v8274_v57, %v2066_v13  ;;  %v2612_v30 = vsel %vm604_vm1, %v2563_v3, 0.0 }
 0x1fe   : > { %v2609_v33 = vadd.f32 %v2608_v31, %v2607_v18  ;;  %v2510_v38 = vadd.f32 %v2509_v63, %v2508_v9  ;;  %v2397_v21 = vpop.f32.mrf.mxu0  ;;  %v2513_v51 = vsel %vm604_vm1, %v8356_v29, 0.0  ;;  %v8386_v52 = vadd.f32 %v6281_v45, %v2265_v40  ;;  %v10784_v9 = vld [vmem:[#allocation16_spill] sm:$0xff]  ;;  %v10785_v31 = vld [vmem:[#allocation50_spill] sm:$0xff]  ;;  %v10786_v45 = vld [vmem:[#allocation15_spill] sm:$0xff] }
 0x1ff   : > { %v2610_v37 = vsel %vm604_vm1, %v2562_v28, 0.0  ;;  %v8378_v41 = vadd.f32 %v2397_v21, %v2263_v26  ;;  %v1869_v18 = vadd.f32 %v10784_v9, %v1668_v12  ;;  %v2069_v60 = vadd.f32 %v10785_v31, %v1868_v17  ;;  %v10787_v40 = vld [vmem:[#allocation28_spill] sm:$0xff] }
 0x200   : > { %v2512_v50 = vadd.f32 %v2511_v16, %v2510_v38  ;;  %v2611_v49 = vadd.f32 %v2610_v37, %v2609_v33  ;;  %v6282_v27 = vpop.f32.mrf.mxu0  ;;  %v2614_v15 = vsel %vm604_vm1, %v2564_v36, 0.0  ;;  %v1872_v33 = vadd.f32 %v10787_v40, %v10786_v45  ;;  %v2228_v16 = vpop.f32.mrf.mxu1 }
 0x201   : > { %v2565_v26 = vmul.f32 %v8378_v41, %v8378_v41  ;;  %v2515_v3 = vsel %vm604_vm1, %v8378_v41, 0.0  ;;  %v8395_v8 = vadd.f32 %v6282_v27, %v2266_v10  ;;  %v2267_v38 = vadd.f32 %v8319_v6, %v2069_v60  ;;  %v10789_v60 = vld [vmem:[#allocation51_spill] sm:$0xff] }
 0x202   : > { %v2613_v63 = vadd.f32 %v2612_v30, %v2611_v49  ;;  %v2514_v57 = vadd.f32 %v2513_v51, %v2512_v50  ;;  %v2400_v28 = vpop.f32.mrf.mxu0  ;;  %v2567_v37 = vmul.f32 %v8386_v52, %v8386_v52  ;;  %v2070_v6 = vadd.f32 %v8088_v23, %v1869_v18  ;;  %v6256_v18 = vpop.f32.mrf.mxu1 }
 0x203   : > { %v8397_v13 = vadd.f32 %v2400_v28, %v2264_v61  ;;  %v2616_v36 = vsel %vm604_vm1, %v2565_v26, 0.0  ;;  %v10788_v61 = vld [vmem:[#allocation49_spill] sm:$0xff]  ;;  %v2519_v51 = vsel %vm604_vm1, %v8386_v52, 0.0  ;;  %v2568_v26 = vmul.f32 %v8395_v8, %v8395_v8 }
 0x204   : > { %v2516_v12 = vadd.f32 %v2515_v3, %v2514_v57  ;;  %v2615_v21 = vadd.f32 %v2614_v15, %v2613_v63  ;;  %v6285_v17 = vpop.f32.mrf.mxu0  ;;  %v2269_v50 = vadd.f32 %v8297_v58, %v10788_v61  ;;  %v2270_v63 = vadd.f32 %v8341_v1, %v10789_v60  ;;  %v10791_v61 = vld [vmem:[#allocation29_spill] sm:$0xff] }
 0x205   : > { %v2517_v2 = vsel %vm604_vm1, %v8397_v13, 0.0  ;;  %v2566_v10 = vmul.f32 %v8397_v13, %v8397_v13  ;;  %v2268_v57 = vadd.f32 %v2215_v55, %v2070_v6  ;;  %v2620_v15 = vsel %vm604_vm1, %v2567_v37, 0.0 }
 0x206   : > { %v2617_v49 = vadd.f32 %v2616_v36, %v2615_v21  ;;  %v2518_v27 = vadd.f32 %v2517_v2, %v2516_v12  ;;  %v2413_v30 = vpop.f32.mrf.mxu0  ;;  %v2521_v3 = vsel %vm604_vm1, %v8395_v8, 0.0  ;;  %v8424_v45 = vadd.f32 %v6285_v17, %v2269_v50 }
 0x207   : > { %v2618_v9 = vsel %vm604_vm1, %v2566_v10, 0.0  ;;  %v8417_v31 = vadd.f32 %v2413_v30, %v2267_v38  ;;  %v10790_v38 = vld [vmem:[#allocation27_spill] sm:$0xff]  ;;  %v2073_v1 = vadd.f32 %v8095_v20, %v1872_v33  ;;  %v2622_v2 = vsel %vm604_vm1, %v2568_v26, 0.0  ;;  %v2231_v30 = vpop.f32.mrf.mxu1 }
 0x208   : > { %v2520_v58 = vadd.f32 %v2519_v51, %v2518_v27  ;;  %v2619_v28 = vadd.f32 %v2618_v9, %v2617_v49  ;;  %v6286_v23 = vpop.f32.mrf.mxu0  ;;  %v1672_v12 = vadd.f32 %v10790_v38, %v8146_v24  ;;  %v2571_v20 = vmul.f32 %v8424_v45, %v8424_v45 }
 0x209   : > { %v2569_v40 = vmul.f32 %v8417_v31, %v8417_v31  ;;  %v2523_v37 = vsel %vm604_vm1, %v8417_v31, 0.0  ;;  %v8434_v10 = vadd.f32 %v6286_v23, %v2270_v63  ;;  %v2271_v6 = vadd.f32 %v2228_v16, %v2073_v1 }
 0x20a   : > { %v2621_v55 = vadd.f32 %v2620_v15, %v2619_v28  ;;  %v2522_v21 = vadd.f32 %v2521_v3, %v2520_v58  ;;  %v2416_v36 = vpop.f32.mrf.mxu0  ;;  %v1873_v50 = vadd.f32 %v10791_v61, %v1672_v12  ;;  %v2273_v9 = vadd.f32 %v6255_v5, %v8093_v62 }
 0x20b   : > { %v8436_v17 = vadd.f32 %v2416_v36, %v2268_v57  ;;  %v2624_v33 = vsel %vm604_vm1, %v2569_v40, 0.0  ;;  %v2527_v58 = vsel %vm604_vm1, %v8424_v45, 0.0  ;;  %v2572_v28 = vmul.f32 %v8434_v10, %v8434_v10 }
 0x20c   : > { %v2524_v49 = vadd.f32 %v2523_v37, %v2522_v21  ;;  %v2623_v27 = vadd.f32 %v2622_v2, %v2621_v55  ;;  %v6289_v24 = vpop.f32.mrf.mxu0  ;;  %v2074_v60 = vadd.f32 %v8106_v54, %v1873_v50  ;;  %v2274_v3 = vadd.f32 %v6256_v18, %v8102_v43 }
 0x20d   : > { %v2525_v51 = vsel %vm604_vm1, %v8436_v17, 0.0  ;;  %v2570_v26 = vmul.f32 %v8436_v17, %v8436_v17  ;;  %v2628_v54 = vsel %vm604_vm1, %v2571_v20, 0.0  ;;  %v2529_v12 = vsel %vm604_vm1, %v8434_v10, 0.0 }
 0x20e   : > { %v2625_v16 = vadd.f32 %v2624_v33, %v2623_v27  ;;  %v2526_v63 = vadd.f32 %v2525_v51, %v2524_v49  ;;  %v2429_v57 = vpop.f32.mrf.mxu0  ;;  %v2272_v40 = vadd.f32 %v2231_v30, %v2074_v60  ;;  %v8459_v1 = vadd.f32 %v6289_v24, %v2273_v9 }
 0x20f   : > { %v2626_v23 = vsel %vm604_vm1, %v2570_v26, 0.0  ;;  %v8453_v15 = vadd.f32 %v2429_v57, %v2271_v6  ;;  %v2630_v37 = vsel %vm604_vm1, %v2572_v28, 0.0 }
 0x210   : > { %v2528_v38 = vadd.f32 %v2527_v58, %v2526_v63  ;;  %v2627_v62 = vadd.f32 %v2626_v23, %v2625_v16  ;;  %v6290_v5 = vpop.f32.mrf.mxu0  ;;  %v2575_v49 = vmul.f32 %v8459_v1, %v8459_v1  ;;  %v2535_v51 = vsel %vm604_vm1, %v8459_v1, 0.0 }
 0x211   : > { %v2573_v55 = vmul.f32 %v8453_v15, %v8453_v15  ;;  %v2531_v43 = vsel %vm604_vm1, %v8453_v15, 0.0  ;;  %v8466_v18 = vadd.f32 %v6290_v5, %v2274_v3 }
 0x212   : > { %v2629_v21 = vadd.f32 %v2628_v54, %v2627_v62  ;;  %v2530_v36 = vadd.f32 %v2529_v12, %v2528_v38  ;;  %v2432_v2 = vpop.f32.mrf.mxu0  ;;  %v2636_v63 = vsel %vm604_vm1, %v2575_v49, 0.0  ;;  %v5573_v38 = vld [vmem:[%s10568_s2 + $0x6] sm:$0x3] }
 0x213   : > { %v8468_v61 = vadd.f32 %v2432_v2, %v2272_v40  ;;  %v2632_v27 = vsel %vm604_vm1, %v2573_v55, 0.0  ;;  %v2576_v26 = vmul.f32 %v8466_v18, %v8466_v18  ;;  %v2537_v57 = vsel %vm604_vm1, %v8466_v18, 0.0  ;;  %6609 = vmatprep.subr.msk.bf16.mxu0 %vm650_vm0, %v5573_v38 }
 0x214   : > { %v2532_v50 = vadd.f32 %v2531_v43, %v2530_v36  ;;  %v2631_v6 = vadd.f32 %v2630_v37, %v2629_v21 }
 0x215   : > { %v2533_v24 = vsel %vm604_vm1, %v8468_v61, 0.0  ;;  %v2574_v30 = vmul.f32 %v8468_v61, %v8468_v61  ;;  %v2638_v23 = vsel %vm604_vm1, %v2576_v26, 0.0 }
 0x216   : > { %v2633_v20 = vadd.f32 %v2632_v27, %v2631_v6  ;;  %v2534_v33 = vadd.f32 %v2533_v24, %v2532_v50 }
 0x217   : > { %v2634_v9 = vsel %vm604_vm1, %v2574_v30, 0.0 }
 0x218   : > { %v2536_v60 = vadd.f32 %v2535_v51, %v2534_v33  ;;  %v2635_v16 = vadd.f32 %v2634_v9, %v2633_v20 }
 0x21a   : > { %v2538_v58 = vadd.f32 %v2537_v57, %v2536_v60  ;;  %v2637_v28 = vadd.f32 %v2636_v63, %v2635_v16 }
 0x21c   : > { %v2539_v3 = vrot.slane %v2538_v58, 4  ;;  %v2639_v40 = vadd.f32 %v2638_v23, %v2637_v28 }
 0x21e   : > { %v2540_v62 = vadd.f32 %v2539_v3, %v2538_v58  ;;  %v2640_v5 = vrot.slane %v2639_v40, 4 }
 0x220   : > { %v2541_v54 = vrot.slane %v2540_v62, 2  ;;  %v2641_v12 = vadd.f32 %v2640_v5, %v2639_v40 }
 0x222   : > { %v2542_v55 = vadd.f32 %v2541_v54, %v2540_v62  ;;  %v2642_v21 = vrot.slane %v2641_v12, 2 }
 0x224   : > { %v2543_v36 = vrot.slane %v2542_v55, 1  ;;  %v2643_v2 = vadd.f32 %v2642_v21, %v2641_v12 }
 0x226   : > { %v2544_v37 = vadd.f32 %v2543_v36, %v2542_v55  ;;  %v2644_v43 = vrot.slane %v2643_v2, 1 }
 0x228   : > { %v2645_v50 = vadd.f32 %v2644_v43, %v2643_v2  ;;  %v8490_v6 = vmul.f32 0.00390625, %v2544_v37 }
 0x22a   : > { %v2647_v49 = vmul.f32 0.00390625, %v2645_v50  ;;  %v2648_v27 = vmul.f32 %v8490_v6, %v8490_v6  ;;  %v2680_v24 = vsub.f32 %v8468_v61, %v8490_v6  ;;  %v2660_v20 = vsub.f32 %v8269_v44, %v8490_v6 }
 0x22b   : > { %v2663_v51 = vsub.f32 %v8292_v35, %v8490_v6  ;;  %v2664_v26 = vsub.f32 %v8315_v0, %v8490_v6  ;;  %v2665_v9 = vsub.f32 %v8302_v4, %v8490_v6  ;;  %v2666_v60 = vsub.f32 %v8313_v59, %v8490_v6 }
 0x22c   : > { %v2649_v30 = vsub.f32 %v2647_v49, %v2648_v27  ;;  %v2667_v61 = vsub.f32 %v8336_v34, %v8490_v6  ;;  %v2668_v16 = vsub.f32 %v8358_v39, %v8490_v6  ;;  %v2669_v44 = vsub.f32 %v8346_v42, %v8490_v6 }
 0x22d   : > { %v2670_v35 = vsub.f32 %v8356_v29, %v8490_v6  ;;  %v2671_v0 = vsub.f32 %v8378_v41, %v8490_v6  ;;  %v2672_v4 = vsub.f32 %v8397_v13, %v8490_v6  ;;  %v2673_v59 = vsub.f32 %v8386_v52, %v8490_v6 }
 0x22e   : > { %v2650_v33 = vmax.f32 %v2649_v30, 0.0  ;;  %v2674_v34 = vsub.f32 %v8395_v8, %v8490_v6  ;;  %v2675_v39 = vsub.f32 %v8417_v31, %v8490_v6  ;;  %v2676_v42 = vsub.f32 %v8436_v17, %v8490_v6 }
 0x22f   : > { %v2677_v29 = vsub.f32 %v8424_v45, %v8490_v6  ;;  %v2678_v41 = vsub.f32 %v8434_v10, %v8490_v6  ;;  %v2679_v13 = vsub.f32 %v8453_v15, %v8490_v6  ;;  %v2681_v52 = vsub.f32 %v8459_v1, %v8490_v6 }
 0x230   : > { %v2683_v63 = vadd.f32 1e-05, %v2650_v33  ;;  %v2682_v8 = vsub.f32 %v8466_v18, %v8490_v6  ;;  %v8538_v31 = vsel %vm650_vm0, %v8200_v56, 0  ;;  %v2651_v17 = vsub.f32 %v8134_v25, %v8490_v6 }
 0x231   : > { %v2652_v45 = vsub.f32 %v8165_v47, %v8490_v6  ;;  %v2653_v10 = vsub.f32 %v8153_v53, %v8490_v6  ;;  %v8547_v15 = vsel %vm650_vm0, %v5573_v38, 0  ;;  %v2654_v1 = vsub.f32 %v8163_v14, %v8490_v6 }
 0x232   : > { %6623 = vrsqrt.f32 %v2683_v63  ;;  %v2655_v18 = vsub.f32 %v8195_v46, %v8490_v6  ;;  %v2656_v56 = vsub.f32 %v8223_v22, %v8490_v6  ;;  %v2657_v25 = vsub.f32 %v8212_v7, %v8490_v6 }
 0x233   : > { %v2658_v47 = vsub.f32 %v8221_v48, %v8490_v6  ;;  %v2659_v53 = vsub.f32 %v8247_v11, %v8490_v6  ;;  %v2661_v58 = vsub.f32 %v8257_v32, %v8490_v6  ;;  %v2662_v14 = vsub.f32 %v8267_v19, %v8490_v6  ;;  %v10792_v19 = vld [vmem:[#allocation21_spill] sm:$0xff] }
 0x23f   : > { %v6624_v57 = vpop.eup %6623 }
 0x240   : > { %v2714_v46 = vmul.f32 %v6624_v57, %v2680_v24  ;;  %v2685_v28 = vmul.f32 %v6624_v57, %v2651_v17  ;;  %v2686_v23 = vmul.f32 %v6624_v57, %v2652_v45  ;;  %v2687_v22 = vmul.f32 %v6624_v57, %v2653_v10 }
 0x241   : > { %v2688_v3 = vmul.f32 %v6624_v57, %v2654_v1  ;;  %v2689_v40 = vmul.f32 %v6624_v57, %v2655_v18  ;;  %v2690_v7 = vmul.f32 %v6624_v57, %v2656_v56  ;;  %v2691_v38 = vmul.f32 %v6624_v57, %v2657_v25 }
 0x242   : > { %v8565_v62 = vmax.f32 %v2714_v46, 0.0  ;;  %v2692_v48 = vmul.f32 %v6624_v57, %v2658_v47  ;;  %v2693_v5 = vmul.f32 %v6624_v57, %v2659_v53  ;;  %v2694_v54 = vmul.f32 %v6624_v57, %v2660_v20 }
 0x243   : > { %v2695_v11 = vmul.f32 %v6624_v57, %v2661_v58  ;;  %v2696_v12 = vmul.f32 %v6624_v57, %v2662_v14  ;;  %v2697_v55 = vmul.f32 %v6624_v57, %v2663_v51  ;;  %v2698_v32 = vmul.f32 %v6624_v57, %v2664_v26 }
 0x244   : > { %v8568_v21 = vrot.slane %v8565_v62, 1  ;;  %v8572_v36 = vrot.slane %v8565_v62, %v10792_v19  ;;  %v2699_v2 = vmul.f32 %v6624_v57, %v2665_v9  ;;  %v2700_v37 = vmul.f32 %v6624_v57, %v2666_v60 }
 0x245   : > { %v2701_v43 = vmul.f32 %v6624_v57, %v2667_v61  ;;  %v2702_v50 = vmul.f32 %v6624_v57, %v2668_v16  ;;  %v2703_v6 = vmul.f32 %v6624_v57, %v2669_v44  ;;  %v2704_v49 = vmul.f32 %v6624_v57, %v2670_v35 }
 0x246   : > { %10793 = vst [vmem:[#allocation22_spill] sm:$0xff] %v8572_v36  ;;  %v2705_v27 = vmul.f32 %v6624_v57, %v2671_v0  ;;  %v2706_v24 = vmul.f32 %v6624_v57, %v2672_v4  ;;  %v2707_v30 = vmul.f32 %v6624_v57, %v2673_v59  ;;  %v2708_v20 = vmul.f32 %v6624_v57, %v2674_v34 }
 0x247   : > { %v2709_v33 = vmul.f32 %v6624_v57, %v2675_v39  ;;  %v2710_v51 = vmul.f32 %v6624_v57, %v2676_v42  ;;  %v2711_v26 = vmul.f32 %v6624_v57, %v2677_v29  ;;  %v2712_v63 = vmul.f32 %v6624_v57, %v2678_v41 }
 0x248   : > { %v2713_v17 = vmul.f32 %v6624_v57, %v2679_v13  ;;  %v2715_v45 = vmul.f32 %v6624_v57, %v2681_v52  ;;  %v2716_v10 = vmul.f32 %v6624_v57, %v2682_v8  ;;  %v8574_v1 = vmax.f32 %v2685_v28, 0.0 }
 0x249   : > { %v8576_v18 = vmax.f32 %v2686_v23, 0.0  ;;  %v8578_v9 = vmax.f32 %v2687_v22, 0.0  ;;  %v8580_v60 = vmax.f32 %v2688_v3, 0.0  ;;  %v8582_v61 = vmax.f32 %v2689_v40, 0.0 }
 0x24a   : > { %v8584_v16 = vmax.f32 %v2690_v7, 0.0  ;;  %v8586_v44 = vmax.f32 %v2691_v38, 0.0  ;;  %v8588_v35 = vmax.f32 %v2692_v48, 0.0  ;;  %v8590_v0 = vmax.f32 %v2693_v5, 0.0 }
 0x24b   : > { %v8592_v4 = vmax.f32 %v2694_v54, 0.0  ;;  %v8594_v59 = vmax.f32 %v2695_v11, 0.0  ;;  %v8596_v34 = vmax.f32 %v2696_v12, 0.0  ;;  %v8598_v39 = vmax.f32 %v2697_v55, 0.0  ;;  %v8748_v12 = vld [vmem:[%s10568_s2 + $0x8] sm:$0x3] }
 0x24c   : > { %v8600_v42 = vmax.f32 %v2698_v32, 0.0  ;;  %v8602_v29 = vmax.f32 %v2699_v2, 0.0  ;;  %v8604_v41 = vmax.f32 %v2700_v37, 0.0  ;;  %v8606_v13 = vmax.f32 %v2701_v43, 0.0  ;;  %v10796_v43 = vld [vmem:[#allocation3_spill] sm:$0xff]  ;;  %10801 = vst [vmem:[#allocation4_spill] sm:$0xff] %v8748_v12 }
 0x24d   : > { %v8608_v52 = vmax.f32 %v2702_v50, 0.0  ;;  %v8610_v8 = vmax.f32 %v2703_v6, 0.0  ;;  %v8612_v56 = vmax.f32 %v2704_v49, 0.0  ;;  %v8614_v25 = vmax.f32 %v2705_v27, 0.0 }
 0x24e   : > { %v8616_v57 = vmax.f32 %v2706_v24, 0.0  ;;  %v8618_v47 = vmax.f32 %v2707_v30, 0.0  ;;  %v8620_v53 = vmax.f32 %v2708_v20, 0.0  ;;  %v8622_v58 = vmax.f32 %v2709_v33, 0.0 }
 0x24f   : > { %v8624_v14 = vmax.f32 %v2710_v51, 0.0  ;;  %v8626_v46 = vmax.f32 %v2711_v26, 0.0  ;;  %v8628_v28 = vmax.f32 %v2712_v63, 0.0  ;;  %v8630_v23 = vmax.f32 %v2713_v17, 0.0 }
 0x250   : > { %v8632_v22 = vmax.f32 %v2715_v45, 0.0  ;;  %v8634_v3 = vmax.f32 %v2716_v10, 0.0  ;;  %v2751_v40 = vrot.slane %v8574_v1, 7  ;;  %v2752_v7 = vrot.slane %v8576_v18, 7 }
 0x251   : > { %v2753_v38 = vrot.slane %v8582_v61, 7  ;;  %v10616_v48 = vrot.slane %v8584_v16, 7  ;;  %v8651_v6 = vrot.slane %v8630_v23, 7  ;;  %v2888_v17 = vrot.slane %v8574_v1, %v10796_v43 }
 0x252   : > { %10794 = vst [vmem:[#allocation20_spill] sm:$0xff] %v8634_v3  ;;  %v2812_v30 = vsel %vm238_vm2, %v2751_v40, %v2752_v7  ;;  %v2892_v10 = vrot.slane %v8582_v61, %v10796_v43  ;;  %v2900_v49 = vrot.slane %v8590_v0, %v10796_v43  ;;  %v8688_v51 = vrot.slane %v8630_v23, %v10796_v43 }
 0x253   : > { %v8710_v50 = vpack.c.bf16 %v8580_v60, %v8578_v9  ;;  %v8714_v2 = vpack.c.bf16 %v8576_v18, %v8574_v1  ;;  %v2749_v26 = vrot.slane %v8578_v9, 7  ;;  %v2750_v63 = vrot.slane %v8580_v60, 7 }
 0x254   : > { %v8719_v37 = vrot.slane %v8565_v62, 7  ;;  %v2884_v20 = vrot.slane %v8578_v9, %v10796_v43  ;;  %v8725_v45 = vpack.c.bf16 %v8584_v16, %v8582_v61  ;;  %v8729_v33 = vpack.c.bf16 %v8588_v35, %v8586_v44 }
 0x255   : > { %10797 = vst [vmem:[#allocation6_spill] sm:$0xff] %v8710_v50  ;;  %10798 = vst [vmem:[#allocation17_spill] sm:$0xff] %v8714_v2  ;;  %6293 = vmatprep.mubr.msk.bf16.mxu1 %vm604_vm1, %v8710_v50  ;;  %v2810_v55 = vsel %vm238_vm2, %v2749_v26, %v2750_v63  ;;  %v2813_v32 = vsel %vm238_vm2, %v2750_v63, %v2751_v40  ;;  %v2811_v27 = vsel %vm238_vm2, %v2752_v7, %v2749_v26 }
 0x256   : > { %10799 = vst [vmem:[#allocation5_spill] sm:$0xff] %v8725_v45  ;;  %10800 = vst [vmem:[#allocation7_spill] sm:$0xff] %v8729_v33  ;;  %v2808_v11 = vsel %vm238_vm2, %v2753_v38, %v10616_v48  ;;  %6294 = vmatmul.mubr.msk.bf16.vlgmr.msra.gmra.mxu1 %vm604_vm1, %v8714_v2  ;;  %v2814_v40 = vsel %vm238_vm2, %v8719_v37, %v2749_v26  ;;  %v2947_v7 = vsel %vm341_vm3, %v2888_v17, %v2813_v32 }
 0x257   : > { %v2949_v5 = vsel %vm341_vm3, %v2884_v20, %v2811_v27  ;;  %v2809_v54 = vsel %vm238_vm2, %v2750_v63, %v2753_v38  ;;  %6360 = vmatpush3.bf16.msra.mxu1 %v8538_v31  ;;  %6297 = vmatprep.mubr.msk.bf16.mxu1 %vm604_vm1, %v8710_v50  ;;  %v2945_v48 = vsel %vm341_vm3, %v2884_v20, %v2814_v40  ;;  %v2755_v32 = vrot.slane %v8586_v44, 7 }
 0x258   : > { %v8768_v26 = vpack.c.bf16 %v2812_v30, %v2947_v7  ;;  %v8770_v2 = vpack.c.bf16 %v2810_v55, %v2949_v5  ;;  %v3077_v27 = vpack.c.bf16 %v2810_v55, %v2945_v48  ;;  %v2950_v17 = vsel %vm341_vm3, %v2892_v10, %v2809_v54  ;;  %6610 = vmatprep.subr.msk.bf16.mxu1 %vm650_vm0, %v8748_v12 }
 0x259   : > { %v2756_v38 = vrot.slane %v8588_v35, 7  ;;  %v2896_v31 = vrot.slane %v8586_v44, %v10796_v43  ;;  %v8780_v63 = vpack.c.bf16 %v2808_v11, %v2950_v17  ;;  %v10805_v30 = vrot.slane %v8584_v16, 7 }
 0x25a   : > { %10802 = vst [vmem:[#allocation8_spill] sm:$0xff] %v8768_v26  ;;  %10803 = vst [vmem:[#allocation31_spill] sm:$0xff] %v8770_v2  ;;  %v8788_v48 = vpack.c.bf16 %v8592_v4, %v8590_v0  ;;  %v8792_v54 = vpack.c.bf16 %v8596_v34, %v8594_v59  ;;  %6327 = vmatprep.mubr.msk.bf16.mxu0 %vm604_vm1, %v3077_v27  ;;  %v10808_v20 = vrot.slane %v8592_v4, 7  ;;  %v10809_v10 = vrot.slane %v8590_v0, 7 }
 0x25b   : > { %10804 = vst [vmem:[#allocation32_spill] sm:$0xff] %v8780_v63  ;;  %v2807_v5 = vsel %vm238_vm2, %v10805_v30, %v2755_v32  ;;  %v2806_v55 = vsel %vm238_vm2, %v2755_v32, %v2756_v38  ;;  %6328 = vmatmul.mubr.msk.bf16.vlgmr.msra.gmra.mxu0 %vm604_vm1, %v8768_v26  ;;  %v2760_v30 = vrot.slane %v8596_v34, 7  ;;  %v10825_v36 = vrot.slane %v8606_v13, %v10796_v43 }
 0x25c   : > { %10806 = vst [vmem:[#allocation30_spill] sm:$0xff] %v8788_v48  ;;  %10807 = vst [vmem:[#allocation10_spill] sm:$0xff] %v8792_v54  ;;  %v2952_v11 = vsel %vm341_vm3, %v2896_v31, %v2807_v5  ;;  %v2804_v40 = vsel %vm238_vm2, %v10809_v10, %v10808_v20  ;;  %v10810_v7 = vmov %v10809_v10  ;;  %v2759_v31 = vrot.slane %v8594_v59, 7  ;;  %v8820_v5 = vld [vmem:[%s10568_s2 + $0xa] sm:$0x3]  ;;  %6331 = vmatprep.mubr.msk.bf16.mxu0 %vm604_vm1, %v8770_v2 }
 0x25d   : > { %v2805_v17 = vsel %vm238_vm2, %v2756_v38, %v10810_v7  ;;  %v8811_v27 = vpack.c.bf16 %v2806_v55, %v2952_v11  ;;  %10812 = vst [vmem:[#allocation9_spill] sm:$0xff] %v8820_v5  ;;  %v2904_v55 = vrot.slane %v8594_v59, %v10796_v43  ;;  %v8834_v11 = vpack.c.bf16 %v8604_v41, %v8602_v29 }
 0x25e   : > { %v2954_v32 = vsel %vm341_vm3, %v2900_v49, %v2805_v17  ;;  %v8830_v49 = vpack.c.bf16 %v8600_v42, %v8598_v39  ;;  %v2802_v20 = vsel %vm238_vm2, %v2759_v31, %v2760_v30  ;;  %v10815_v10 = vrot.slane %v8592_v4, 7  ;;  %6394 = vmatpush3.bf16.msra.mxu0 %v8547_v15  ;;  %6298 = vmatmul.mubr.msk.bf16.gmra.mxu1 %vm604_vm1, %v8725_v45 }
 0x25f   : > { %10811 = vst [vmem:[#allocation34_spill] sm:$0xff] %v8811_v27  ;;  %v8824_v38 = vpack.c.bf16 %v2804_v40, %v2954_v32  ;;  %10814 = vst [vmem:[#allocation33_spill] sm:$0xff] %v8834_v11  ;;  %v10816_v7 = vrot.slane %v8600_v42, 7  ;;  %v10817_v17 = vrot.slane %v8598_v39, 7  ;;  %6611 = vmatprep.subr.msk.bf16.mxu0 %vm650_vm0, %v8820_v5  ;;  %6301 = vmatprep.mubr.msk.bf16.mxu1 %vm604_vm1, %v8729_v33 }
 0x260   : > { %v2803_v40 = vsel %vm238_vm2, %v10815_v10, %v2759_v31  ;;  %v10819_v10 = vrot.slane %v8598_v39, %v10796_v43 }
 0x261   : > { %10813 = vst [vmem:[#allocation11_spill] sm:$0xff] %v8824_v38  ;;  %v2800_v32 = vsel %vm238_vm2, %v10817_v17, %v10816_v7  ;;  %v10818_v50 = vmov %v10817_v17  ;;  %v2956_v31 = vsel %vm341_vm3, %v2904_v55, %v2803_v40  ;;  %v2763_v7 = vrot.slane %v8602_v29, 7 }
 0x262   : > { %v2801_v2 = vsel %vm238_vm2, %v2760_v30, %v10818_v50  ;;  %v2764_v17 = vrot.slane %v8604_v41, 7  ;;  %v8868_v15 = vpack.c.bf16 %v2802_v20, %v2956_v31  ;;  %v2912_v30 = vrot.slane %v8602_v29, %v10796_v43 }
 0x263   : > { %v2958_v12 = vsel %vm341_vm3, %v10819_v10, %v2801_v2  ;;  %v8876_v2 = vpack.c.bf16 %v8608_v52, %v8606_v13  ;;  %v10821_v40 = vrot.slane %v8600_v42, 7  ;;  %v8886_v20 = vpack.c.bf16 %v8612_v56, %v8610_v8  ;;  %6332 = vmatmul.mubr.msk.bf16.gmra.mxu0 %vm604_vm1, %v8780_v63 }
 0x264   : > { %10820 = vst [vmem:[#allocation36_spill] sm:$0xff] %v8868_v15  ;;  %v8870_v50 = vpack.c.bf16 %v2800_v32, %v2958_v12  ;;  %v2798_v55 = vsel %vm238_vm2, %v2763_v7, %v2764_v17  ;;  %v10822_v12 = vrot.slane %v8608_v52, 7  ;;  %v10823_v32 = vrot.slane %v8606_v13, 7  ;;  %6335 = vmatprep.mubr.msk.bf16.mxu0 %vm604_vm1, %v8811_v27 }
 0x265   : > { %v2799_v10 = vsel %vm238_vm2, %v10821_v40, %v2763_v7  ;;  %v2767_v7 = vrot.slane %v8610_v8, 7  ;;  %v2768_v40 = vrot.slane %v8612_v56, 7  ;;  %v10830_v27 = vrot.slane %v8614_v25, %v10796_v43 }
 0x266   : > { %v2796_v31 = vsel %vm238_vm2, %v10823_v32, %v10822_v12  ;;  %v2960_v33 = vsel %vm341_vm3, %v2912_v30, %v2799_v10  ;;  %v10824_v45 = vmov %v10823_v32  ;;  %v2920_v30 = vrot.slane %v8610_v8, %v10796_v43  ;;  %6302 = vmatmul.mubr.msk.bf16.gmra.mxu1 %vm604_vm1, %v8788_v48 }
 0x267   : > { %v2797_v5 = vsel %vm238_vm2, %v2764_v17, %v10824_v45  ;;  %v8902_v26 = vpack.c.bf16 %v2798_v55, %v2960_v33  ;;  %v8913_v10 = vpack.c.bf16 %v8616_v57, %v8614_v25  ;;  %v2794_v33 = vsel %vm238_vm2, %v2767_v7, %v2768_v40  ;;  %6305 = vmatprep.mubr.msk.bf16.mxu1 %vm604_vm1, %v8792_v54 }
 0x268   : > { %v2962_v12 = vsel %vm341_vm3, %v10825_v36, %v2797_v5  ;;  %v10826_v17 = vrot.slane %v8608_v52, 7  ;;  %v8927_v5 = vpack.c.bf16 %v8620_v53, %v8618_v47  ;;  %v10827_v32 = vrot.slane %v8616_v57, 7 }
 0x269   : > { %v8917_v45 = vpack.c.bf16 %v2796_v31, %v2962_v12  ;;  %v10828_v31 = vrot.slane %v8614_v25, 7  ;;  %v2776_v54 = vrot.slane %v8628_v28, 7 }
 0x26a   : > { %v2795_v36 = vsel %vm238_vm2, %v10826_v17, %v2767_v7  ;;  %v2771_v17 = vrot.slane %v8618_v47, 7 }
 0x26b   : > { %v2964_v55 = vsel %vm341_vm3, %v2920_v30, %v2795_v36  ;;  %v2792_v12 = vsel %vm238_vm2, %v10828_v31, %v10827_v32  ;;  %v10829_v63 = vmov %v10828_v31  ;;  %v2772_v36 = vrot.slane %v8620_v53, 7  ;;  %6336 = vmatmul.mubr.msk.bf16.gmra.mxu0 %vm604_vm1, %v8824_v38 }
 0x26c   : > { %v2793_v7 = vsel %vm238_vm2, %v2768_v40, %v10829_v63  ;;  %v8944_v3 = vpack.c.bf16 %v2794_v33, %v2964_v55  ;;  %v2928_v32 = vrot.slane %v8618_v47, %v10796_v43  ;;  %v10832_v63 = vrot.slane %v8616_v57, 7  ;;  %6339 = vmatprep.mubr.msk.bf16.mxu0 %vm604_vm1, %v8868_v15 }
 0x26d   : > { %v2966_v30 = vsel %vm341_vm3, %v10830_v27, %v2793_v7  ;;  %v8964_v33 = vpack.c.bf16 %v8624_v14, %v8622_v58  ;;  %v8968_v27 = vpack.c.bf16 %v8628_v28, %v8626_v46  ;;  %v2790_v55 = vsel %vm238_vm2, %v2771_v17, %v2772_v36 }
 0x26e   : > { %v8956_v31 = vpack.c.bf16 %v2792_v12, %v2966_v30  ;;  %v2791_v40 = vsel %vm238_vm2, %v10832_v63, %v2771_v17  ;;  %v10835_v7 = vrot.slane %v8624_v14, 7  ;;  %v10836_v30 = vrot.slane %v8622_v58, 7  ;;  %6306 = vmatmul.mubr.msk.bf16.gmra.mxu1 %vm604_vm1, %v8830_v49 }
 0x26f   : > { %10833 = vst [vmem:[#allocation13_spill] sm:$0xff] %v8964_v33  ;;  %10834 = vst [vmem:[#allocation38_spill] sm:$0xff] %v8968_v27  ;;  %v2968_v12 = vsel %vm341_vm3, %v2928_v32, %v2791_v40  ;;  %v10838_v17 = vrot.slane %v8622_v58, %v10796_v43  ;;  %v2775_v40 = vrot.slane %v8626_v46, 7  ;;  %v2785_v15 = vsel %vm238_vm2, %v2776_v54, %v8651_v6 }
 0x270   : > { %10831 = vst [vmem:[#allocation35_spill] sm:$0xff] %v8956_v31  ;;  %v2788_v63 = vsel %vm238_vm2, %v10836_v30, %v10835_v7  ;;  %v10837_v48 = vmov %v10836_v30  ;;  %v8986_v33 = vpack.c.bf16 %v2790_v55, %v2968_v12  ;;  %v2936_v7 = vrot.slane %v8626_v46, %v10796_v43  ;;  %6309 = vmatprep.mubr.msk.bf16.mxu1 %vm604_vm1, %v8834_v11 }
 0x271   : > { %v2789_v27 = vsel %vm238_vm2, %v2772_v36, %v10837_v48  ;;  %v9001_v48 = vpack.c.bf16 %v8565_v62, %v8630_v23  ;;  %v9004_v36 = vrot.slane %v8578_v9, 1  ;;  %v2786_v55 = vsel %vm238_vm2, %v2775_v40, %v2776_v54 }
 0x272   : > { %v2970_v32 = vsel %vm341_vm3, %v10838_v17, %v2789_v27  ;;  %v10840_v27 = vrot.slane %v8624_v14, 7  ;;  %v2816_v30 = vrot.slane %v8580_v60, 1  ;;  %v10841_v9 = vrot.slane %v8576_v18, 1 }
 0x273   : > { %v8995_v31 = vpack.c.bf16 %v2788_v63, %v2970_v32  ;;  %10839 = vst [vmem:[#allocation14_spill] sm:$0xff] %v9001_v48  ;;  %v2817_v63 = vrot.slane %v8574_v1, 1  ;;  %v2982_v32 = vrot.slane %v8580_v60, %v10792_v19  ;;  %v9029_v1 = vsel %vm238_vm2, %v8651_v6, %v8719_v37  ;;  %6340 = vmatmul.mubr.msk.bf16.gmra.mxu0 %vm604_vm1, %v8870_v50 }
 0x274   : > { %v2787_v12 = vsel %vm238_vm2, %v10840_v27, %v2775_v40  ;;  %v2877_v17 = vsel %vm305_vm4, %v10841_v9, %v9004_v36  ;;  %v10842_v27 = vmov %v10841_v9  ;;  %v2819_v48 = vrot.slane %v8582_v61, 1  ;;  %6343 = vmatprep.mubr.msk.bf16.mxu0 %vm604_vm1, %v8902_v26  ;;  %v10892_v9 = vld [vmem:[#allocation8_spill] sm:$0xff] }
 0x275   : > { %v2972_v62 = vsel %vm341_vm3, %v2936_v7, %v2787_v12  ;;  %v9038_v7 = vsel %vm305_vm4, %v9004_v36, %v2816_v30  ;;  %v2878_v60 = vsel %vm305_vm4, %v2817_v63, %v10842_v27  ;;  %v2879_v12 = vsel %vm305_vm4, %v2816_v30, %v2817_v63 }
 0x276   : > { %v9033_v40 = vpack.c.bf16 %v2786_v55, %v2972_v62  ;;  %v9048_v38 = vsel %vm446_vm5, %v2982_v32, %v2879_v12  ;;  %v10844_v55 = vrot.slane %v8576_v18, %v10792_v19  ;;  %v2974_v18 = vsel %vm341_vm3, %v8688_v51, %v2785_v15  ;;  %6310 = vmatmul.mubr.msk.bf16.gmra.mxu1 %vm604_vm1, %v8876_v2 }
 0x277   : > { %v10846_v12 = vrot.slane %v8584_v16, 1  ;;  %v9077_v61 = vpack.c.bf16 %v9029_v1, %v2974_v18  ;;  %v2822_v18 = vrot.slane %v8588_v35, 1  ;;  %6313 = vmatprep.mubr.msk.bf16.mxu1 %vm604_vm1, %v8886_v20 }
 0x278   : > { %v3046_v62 = vsel %vm446_vm5, %v10844_v55, %v2877_v17  ;;  %v10845_v17 = vrot.slane %v8586_v44, 1 }
 0x279   : > { %v9063_v27 = vpack.c.bf16 %v3046_v62, %v2878_v60  ;;  %v2875_v60 = vsel %vm305_vm4, %v2816_v30, %v2819_v48  ;;  %v10847_v55 = vmov %v10846_v12  ;;  %v10848_v62 = vrot.slane %v8584_v16, %v10792_v19 }
 0x27a   : > { %v2873_v54 = vsel %vm305_vm4, %v10846_v12, %v10845_v17  ;;  %v2874_v15 = vsel %vm305_vm4, %v2819_v48, %v10847_v55  ;;  %v3047_v12 = vsel %vm446_vm5, %v2982_v32, %v2875_v60  ;;  %v2823_v30 = vrot.slane %v8590_v0, 1  ;;  %v10890_v24 = vld [vmem:[#allocation14_spill] sm:$0xff] }
 0x27b   : > { %v3049_v17 = vsel %vm446_vm5, %v10848_v62, %v2873_v54  ;;  %v9097_v11 = vpack.c.bf16 %v3047_v12, %v9038_v7  ;;  %v2994_v48 = vrot.slane %v8588_v35, %v10792_v19  ;;  %v10849_v16 = vrot.slane %v8594_v59, 1  ;;  %6344 = vmatmul.mubr.msk.bf16.gmra.mxu0 %vm604_vm1, %v8917_v45 }
 0x27c   : > { %v9092_v63 = vpack.c.bf16 %v3049_v17, %v2874_v15  ;;  %v10850_v55 = vrot.slane %v8592_v4, 1  ;;  %v2826_v32 = vrot.slane %v8596_v34, 1  ;;  %v2871_v60 = vsel %vm305_vm4, %v2822_v18, %v2823_v30  ;;  %6347 = vmatprep.mubr.msk.bf16.mxu0 %vm604_vm1, %v8944_v3 }
 0x27d   : > { %v10851_v0 = vrot.slane %v8586_v44, 1  ;;  %v10853_v17 = vrot.slane %v8592_v4, %v10792_v19  ;;  %v3051_v44 = vsel %vm446_vm5, %v2994_v48, %v2871_v60  ;;  %v10856_v48 = vrot.slane %v8600_v42, 1 }
 0x27e   : > { %v2869_v54 = vsel %vm305_vm4, %v10850_v55, %v10849_v16  ;;  %v10852_v62 = vmov %v10850_v55  ;;  %v10854_v55 = vrot.slane %v8594_v59, 1  ;;  %v2830_v59 = vrot.slane %v8604_v41, 1  ;;  %6314 = vmatmul.mubr.msk.bf16.gmra.mxu1 %vm604_vm1, %v8913_v10 }
 0x27f   : > { %v2872_v15 = vsel %vm305_vm4, %v10851_v0, %v2822_v18  ;;  %v2870_v35 = vsel %vm305_vm4, %v2823_v30, %v10852_v62  ;;  %v3053_v12 = vsel %vm446_vm5, %v10853_v17, %v2869_v54  ;;  %v2827_v18 = vrot.slane %v8598_v39, 1  ;;  %6317 = vmatprep.mubr.msk.bf16.mxu1 %vm604_vm1, %v8927_v5 }
 0x280   : > { %v9127_v16 = vpack.c.bf16 %v3053_v12, %v2870_v35  ;;  %v2868_v30 = vsel %vm305_vm4, %v10854_v55, %v2826_v32  ;;  %v9136_v4 = vpack.c.bf16 %v3051_v44, %v2872_v15  ;;  %v3002_v54 = vrot.slane %v8596_v34, %v10792_v19 }
 0x281   : > { %v10855_v0 = vrot.slane %v8602_v29, 1  ;;  %v2867_v60 = vsel %vm305_vm4, %v2826_v32, %v2827_v18  ;;  %v10857_v62 = vmov %v10856_v48  ;;  %v10858_v34 = vrot.slane %v8600_v42, %v10792_v19 }
 0x282   : > { %v2866_v15 = vsel %vm305_vm4, %v2827_v18, %v10857_v62  ;;  %v2831_v17 = vrot.slane %v8606_v13, 1  ;;  %v3055_v12 = vsel %vm446_vm5, %v3002_v54, %v2867_v60  ;;  %v3010_v42 = vrot.slane %v8604_v41, %v10792_v19 }
 0x283   : > { %v2865_v39 = vsel %vm305_vm4, %v10856_v48, %v10855_v0  ;;  %v10859_v44 = vmov %v10855_v0  ;;  %v9173_v13 = vpack.c.bf16 %v3055_v12, %v2868_v30  ;;  %v10860_v54 = vrot.slane %v8610_v8, 1 }
 0x284   : > { %v3057_v35 = vsel %vm446_vm5, %v10858_v34, %v2865_v39  ;;  %v2864_v18 = vsel %vm305_vm4, %v10859_v44, %v2830_v59  ;;  %v2863_v55 = vsel %vm305_vm4, %v2830_v59, %v2831_v17  ;;  %v10861_v0 = vrot.slane %v8608_v52, 1 }
 0x285   : > { %v9163_v32 = vpack.c.bf16 %v3057_v35, %v2866_v15  ;;  %v3059_v39 = vsel %vm446_vm5, %v3010_v42, %v2863_v55  ;;  %v10863_v30 = vrot.slane %v8608_v52, %v10792_v19  ;;  %v2834_v60 = vrot.slane %v8612_v56, 1 }
 0x286   : > { %v2861_v29 = vsel %vm305_vm4, %v10861_v0, %v10860_v54  ;;  %v10862_v48 = vmov %v10861_v0  ;;  %v2835_v62 = vrot.slane %v8614_v25, 1  ;;  %v9196_v15 = vpack.c.bf16 %v3059_v39, %v2864_v18 }
 0x287   : > { %v2862_v41 = vsel %vm305_vm4, %v2831_v17, %v10862_v48  ;;  %v3061_v59 = vsel %vm446_vm5, %v10863_v30, %v2861_v29  ;;  %v3018_v35 = vrot.slane %v8612_v56, %v10792_v19  ;;  %v10864_v17 = vrot.slane %v8618_v47, 1 }
 0x288   : > { %v9198_v34 = vpack.c.bf16 %v3061_v59, %v2862_v41  ;;  %v10865_v12 = vrot.slane %v8616_v57, 1  ;;  %v2859_v44 = vsel %vm305_vm4, %v2834_v60, %v2835_v62  ;;  %v10866_v42 = vmov %v10860_v54 }
 0x289   : > { %v2860_v25 = vsel %vm305_vm4, %v10866_v42, %v2834_v60  ;;  %v10868_v55 = vrot.slane %v8616_v57, %v10792_v19  ;;  %v3063_v8 = vsel %vm446_vm5, %v3018_v35, %v2859_v44  ;;  %v2838_v29 = vrot.slane %v8620_v53, 1 }
 0x28a   : > { %v2857_v52 = vsel %vm305_vm4, %v10865_v12, %v10864_v17  ;;  %v10867_v18 = vmov %v10865_v12  ;;  %v2839_v48 = vrot.slane %v8622_v58, 1  ;;  %v9233_v41 = vpack.c.bf16 %v3063_v8, %v2860_v25 }
 0x28b   : > { %v2858_v56 = vsel %vm305_vm4, %v2835_v62, %v10867_v18  ;;  %v3065_v54 = vsel %vm446_vm5, %v10868_v55, %v2857_v52  ;;  %v3026_v57 = vrot.slane %v8620_v53, %v10792_v19  ;;  %v10869_v39 = vrot.slane %v8626_v46, 1 }
 0x28c   : > { %v9227_v0 = vpack.c.bf16 %v3065_v54, %v2858_v56  ;;  %v10870_v30 = vrot.slane %v8624_v14, 1  ;;  %v2842_v60 = vrot.slane %v8628_v28, 1  ;;  %v2855_v58 = vsel %vm305_vm4, %v2838_v29, %v2839_v48 }
 0x28d   : > { %v10871_v62 = vmov %v10864_v17  ;;  %v10873_v12 = vrot.slane %v8624_v14, %v10792_v19  ;;  %v3067_v47 = vsel %vm446_vm5, %v3026_v57, %v2855_v58  ;;  %v2843_v42 = vrot.slane %v8630_v23, 1  ;;  %v10876_v23 = vld [vmem:[#allocation20_spill] sm:$0xff]  ;;  %v10879_v57 = vld [vmem:[#allocation22_spill] sm:$0xff] }
 0x28e   : > { %v2853_v59 = vsel %vm305_vm4, %v10870_v30, %v10869_v39  ;;  %v2856_v35 = vsel %vm305_vm4, %v10871_v62, %v2838_v29  ;;  %v10872_v17 = vmov %v10870_v30  ;;  %v10874_v25 = vmov %v10869_v39 }
 0x28f   : > { %v2854_v53 = vsel %vm305_vm4, %v2839_v48, %v10872_v17  ;;  %v3069_v52 = vsel %vm446_vm5, %v10873_v12, %v2853_v59  ;;  %v2852_v18 = vsel %vm305_vm4, %v10874_v25, %v2842_v60  ;;  %v9272_v14 = vpack.c.bf16 %v3067_v47, %v2856_v35 }
 0x290   : > { %v9263_v44 = vpack.c.bf16 %v3069_v52, %v2854_v53  ;;  %v3034_v56 = vrot.slane %v8628_v28, %v10792_v19  ;;  %v10875_v55 = vrot.slane %v8632_v22, 1  ;;  %v10877_v8 = vrot.slane %v10876_v23, 7 }
 0x291   : > { %v10878_v46 = vrot.slane %v8632_v22, 7  ;;  %v2851_v48 = vsel %vm305_vm4, %v2842_v60, %v2843_v42  ;;  %v9292_v28 = vsel %vm305_vm4, %v2843_v42, %v8568_v21  ;;  %v10881_v62 = vrot.slane %v8632_v22, %v10796_v43 }
 0x292   : > { %v2850_v54 = vsel %vm305_vm4, %v8568_v21, %v10875_v55  ;;  %v3071_v58 = vsel %vm446_vm5, %v3034_v56, %v2851_v48  ;;  %v9318_v12 = vpack.c.bf16 %v10876_v23, %v8632_v22  ;;  %v10883_v52 = vrot.slane %v10876_v23, 1 }
 0x293   : > { %v2783_v29 = vsel %vm238_vm2, %v10878_v46, %v10877_v8  ;;  %v3073_v39 = vsel %vm446_vm5, %v10879_v57, %v2850_v54  ;;  %v10880_v30 = vmov %v10878_v46  ;;  %v9312_v17 = vpack.c.bf16 %v3071_v58, %v2852_v18  ;;  %v10889_v46 = vld [vmem:[#allocation38_spill] sm:$0xff] }
 0x294   : > { %v2784_v59 = vsel %vm238_vm2, %v8719_v37, %v10880_v30  ;;  %v9305_v60 = vpack.c.bf16 %v3073_v39, %v9292_v28  ;;  %v10882_v37 = vld [vmem:[#allocation35_spill] sm:$0xff]  ;;  %v2848_v47 = vsel %vm305_vm4, %v10883_v52, %v2843_v42  ;;  %v10884_v43 = vmov %v10883_v52  ;;  %v10897_v58 = vld [vmem:[#allocation34_spill] sm:$0xff]  ;;  %v10900_v52 = vld [vmem:[#allocation17_spill] sm:$0xff] }
 0x295   : > { %v2976_v35 = vsel %vm341_vm3, %v10881_v62, %v2784_v59  ;;  %6348 = vmatmul.mubr.msk.bf16.gmra.mxu0 %vm604_vm1, %v10882_v37  ;;  %v10885_v25 = vmov %v10875_v55  ;;  %v10886_v56 = vmov %v10877_v8  ;;  %v2880_v54 = vsel %vm305_vm4, %v8568_v21, %v9004_v36  ;;  %v5641_v39 = vld [vmem:[%s10568_s2 + $0xe] sm:$0x3]  ;;  %v10896_v59 = vld [vmem:[#allocation32_spill] sm:$0xff] }
 0x296   : > { %v9314_v53 = vpack.c.bf16 %v2783_v29, %v2976_v35  ;;  %v2849_v18 = vsel %vm305_vm4, %v10885_v25, %v10884_v43  ;;  %v2782_v55 = vsel %vm238_vm2, %v10886_v56, %v8651_v6  ;;  %6351 = vmatprep.mubr.msk.bf16.mxu0 %vm604_vm1, %v8986_v33  ;;  %v10887_v22 = vrot.slane %v10876_v23, %v10792_v19  ;;  %v10888_v23 = vld [vmem:[#allocation13_spill] sm:$0xff]  ;;  %v10893_v29 = vld [vmem:[#allocation4_spill] sm:$0xff]  ;;  %v10895_v30 = vld [vmem:[#allocation31_spill] sm:$0xff] }
 0x297   : > { %v9351_v8 = vsel %vm341_vm3, %v8688_v51, %v2782_v55  ;;  %v9356_v6 = vsel %vm446_vm5, %v10879_v57, %v2880_v54  ;;  %6318 = vmatmul.mubr.msk.bf16.gmra.mxu1 %vm604_vm1, %v10888_v23  ;;  %v10891_v51 = vpack.c.bf16 %v9048_v38, %v9038_v7  ;;  %v4006_v48 = vsel %vm650_vm0, %v10893_v29, 0  ;;  %v5624_v57 = vld [vmem:[%s10568_s2 + $0xc] sm:$0x3]  ;;  %v10894_v38 = vld [vmem:[#allocation9_spill] sm:$0xff]  ;;  %v10899_v35 = vld [vmem:[#allocation36_spill] sm:$0xff] }
 0x298   : > { %v3075_v42 = vsel %vm446_vm5, %v10887_v22, %v2848_v47  ;;  %v3094_v36 = vpack.c.bf16 %v9029_v1, %v9351_v8  ;;  %v3128_v19 = vpack.c.bf16 %v9356_v6, %v9292_v28  ;;  %6321 = vmatprep.mubr.msk.bf16.mxu1 %vm604_vm1, %v10889_v46  ;;  %v4207_v7 = vsel %vm650_vm0, %v10894_v38, 0  ;;  %v10898_v62 = vld [vmem:[#allocation11_spill] sm:$0xff]  ;;  %v5658_v43 = vld [vmem:[%s10568_s2 + $0x10] sm:$0x3]  ;;  %v10901_v25 = vld [vmem:[#allocation6_spill] sm:$0xff] }
 0x299   : > { %v9358_v21 = vpack.c.bf16 %v3075_v42, %v2849_v18  ;;  %v4408_v47 = vsel %vm650_vm0, %v5624_v57, 0  ;;  %v10902_v18 = vld [vmem:[#allocation5_spill] sm:$0xff]  ;;  %v4606_v56 = vsel %vm650_vm0, %v5641_v39, 0  ;;  %v10904_v55 = vld [vmem:[#allocation30_spill] sm:$0xff]  ;;  %v4807_v42 = vsel %vm650_vm0, %v5658_v43, 0 }
 0x29a   : > { %v10905_v54 = vld [vmem:[#allocation10_spill] sm:$0xff]  ;;  %v10906_v22 = vld [vmem:[#allocation33_spill] sm:$0xff] }
 0x29d   : > { %6352 = vmatmul.mubr.msk.bf16.gmra.mxu0 %vm604_vm1, %v8995_v31 }
 0x29e   : > { %6355 = vmatprep.mubr.msk.bf16.mxu0 %vm604_vm1, %v9033_v40 }
 0x29f   : > { %6322 = vmatmul.mubr.msk.bf16.gmra.mxu1 %vm604_vm1, %v10890_v24 }
 0x2a0   : > { %6361 = vmatprep.mubr.msk.bf16.mxu1 %vm604_vm1, %v10891_v51 }
 0x2a5   : > { %6356 = vmatmul.mubr.msk.bf16.gmra.mxu0 %vm604_vm1, %v9077_v61 }
 0x2a6   : > { %6395 = vmatprep.mubr.msk.bf16.mxu0 %vm604_vm1, %v10892_v9 }
 0x2a7   : > { %6362 = vmatmul.mubr.msk.bf16.vlgmr.msra.gmra.mxu1 %vm604_vm1, %v9063_v27 }
 0x2a8   : > { %6428 = vmatpush3.bf16.msra.mxu1 %v4006_v48  ;;  %6365 = vmatprep.mubr.msk.bf16.mxu1 %vm604_vm1, %v9097_v11 }
 0x2a9   : > { %6612 = vmatprep.subr.msk.bf16.mxu1 %vm650_vm0, %v5624_v57 }
 0x2ad   : > { %6396 = vmatmul.mubr.msk.bf16.vlgmr.msra.gmra.mxu0 %vm604_vm1, %v10895_v30 }
 0x2ae   : > { %6399 = vmatprep.mubr.msk.bf16.mxu0 %vm604_vm1, %v10896_v59  ;;  %6462 = vmatpush3.bf16.msra.mxu0 %v4207_v7 }
 0x2af   : > { %6613 = vmatprep.subr.msk.bf16.mxu0 %vm650_vm0, %v5641_v39  ;;  %6366 = vmatmul.mubr.msk.bf16.gmra.mxu1 %vm604_vm1, %v9092_v63 }
 0x2b0   : > { %6369 = vmatprep.mubr.msk.bf16.mxu1 %vm604_vm1, %v9136_v4 }
 0x2b5   : > { %6400 = vmatmul.mubr.msk.bf16.gmra.mxu0 %vm604_vm1, %v10897_v58 }
 0x2b6   : > { %6403 = vmatprep.mubr.msk.bf16.mxu0 %vm604_vm1, %v10898_v62 }
 0x2b7   : > { %6370 = vmatmul.mubr.msk.bf16.gmra.mxu1 %vm604_vm1, %v9127_v16 }
 0x2b8   : > { %6373 = vmatprep.mubr.msk.bf16.mxu1 %vm604_vm1, %v9173_v13 }
 0x2bd   : > { %6404 = vmatmul.mubr.msk.bf16.gmra.mxu0 %vm604_vm1, %v10899_v35 }
 0x2be   : > { %6407 = vmatprep.mubr.msk.bf16.mxu0 %vm604_vm1, %v8870_v50 }
 0x2bf   : > { %6374 = vmatmul.mubr.msk.bf16.gmra.mxu1 %vm604_vm1, %v9163_v32 }
 0x2c0   : > { %6377 = vmatprep.mubr.msk.bf16.mxu1 %vm604_vm1, %v9196_v15 }
 0x2c5   : > { %6408 = vmatmul.mubr.msk.bf16.gmra.mxu0 %vm604_vm1, %v8902_v26 }
 0x2c6   : > { %6411 = vmatprep.mubr.msk.bf16.mxu0 %vm604_vm1, %v8917_v45 }
 0x2c7   : > { %6378 = vmatmul.mubr.msk.bf16.gmra.mxu1 %vm604_vm1, %v9198_v34 }
 0x2c8   : > { %6381 = vmatprep.mubr.msk.bf16.mxu1 %vm604_vm1, %v9233_v41 }
 0x2cd   : > { %6412 = vmatmul.mubr.msk.bf16.gmra.mxu0 %vm604_vm1, %v8944_v3 }
 0x2ce   : > { %6415 = vmatprep.mubr.msk.bf16.mxu0 %vm604_vm1, %v10882_v37 }
 0x2cf   : > { %6382 = vmatmul.mubr.msk.bf16.gmra.mxu1 %vm604_vm1, %v9227_v0 }
 0x2d0   : > { %6385 = vmatprep.mubr.msk.bf16.mxu1 %vm604_vm1, %v9272_v14 }
 0x2d5   : > { %6416 = vmatmul.mubr.msk.bf16.gmra.mxu0 %vm604_vm1, %v8986_v33 }
 0x2d6   : > { %6419 = vmatprep.mubr.msk.bf16.mxu0 %vm604_vm1, %v8995_v31 }
 0x2d7   : > { %6386 = vmatmul.mubr.msk.bf16.gmra.mxu1 %vm604_vm1, %v9263_v44 }
 0x2d8   : > { %6389 = vmatprep.mubr.msk.bf16.mxu1 %vm604_vm1, %v9312_v17 }
 0x2dd   : > { %6420 = vmatmul.mubr.msk.bf16.gmra.mxu0 %vm604_vm1, %v9033_v40 }
 0x2de   : > { %6423 = vmatprep.mubr.msk.bf16.mxu0 %vm604_vm1, %v9077_v61 }
 0x2df   : > { %6390 = vmatmul.mubr.msk.bf16.gmra.mxu1 %vm604_vm1, %v9305_v60 }
 0x2e0   : > { %6429 = vmatprep.mubr.msk.bf16.mxu1 %vm604_vm1, %v10900_v52 }
 0x2e5   : > { %6424 = vmatmul.mubr.msk.bf16.gmra.mxu0 %vm604_vm1, %v9314_v53 }
 0x2e6   : > { %6463 = vmatprep.mubr.msk.bf16.mxu0 %vm604_vm1, %v9063_v27  ;;  %v10903_v27 = vld [vmem:[#allocation7_spill] sm:$0xff] }
 0x2e7   : > { %6430 = vmatmul.mubr.msk.bf16.vlgmr.msra.gmra.mxu1 %vm604_vm1, %v10901_v25 }
 0x2e8   : > { %6496 = vmatpush3.bf16.msra.mxu1 %v4408_v47  ;;  %6433 = vmatprep.mubr.msk.bf16.mxu1 %vm604_vm1, %v10902_v18 }
 0x2e9   : > { %6614 = vmatprep.subr.msk.bf16.mxu1 %vm650_vm0, %v5658_v43 }
 0x2ed   : > { %6464 = vmatmul.mubr.msk.bf16.vlgmr.msra.gmra.mxu0 %vm604_vm1, %v9097_v11 }
 0x2ee   : > { %6467 = vmatprep.mubr.msk.bf16.mxu0 %vm604_vm1, %v9092_v63  ;;  %6530 = vmatpush3.bf16.msra.mxu0 %v4606_v56 }
 0x2ef   : > { %6434 = vmatmul.mubr.msk.bf16.gmra.mxu1 %vm604_vm1, %v10903_v27 }
 0x2f0   : > { %6437 = vmatprep.mubr.msk.bf16.mxu1 %vm604_vm1, %v10904_v55 }
 0x2f5   : > { %6468 = vmatmul.mubr.msk.bf16.gmra.mxu0 %vm604_vm1, %v9136_v4 }
 0x2f6   : > { %6471 = vmatprep.mubr.msk.bf16.mxu0 %vm604_vm1, %v9127_v16 }
 0x2f7   : > { %6438 = vmatmul.mubr.msk.bf16.gmra.mxu1 %vm604_vm1, %v10905_v54 }
 0x2f8   : > { %6441 = vmatprep.mubr.msk.bf16.mxu1 %vm604_vm1, %v8830_v49 }
 0x2fd   : > { %6472 = vmatmul.mubr.msk.bf16.gmra.mxu0 %vm604_vm1, %v9173_v13 }
 0x2fe   : > { %6475 = vmatprep.mubr.msk.bf16.mxu0 %vm604_vm1, %v9163_v32 }
 0x2ff   : > { %6442 = vmatmul.mubr.msk.bf16.gmra.mxu1 %vm604_vm1, %v10906_v22 }
 0x300   : > { %6445 = vmatprep.mubr.msk.bf16.mxu1 %vm604_vm1, %v8876_v2 }
 0x305   : > { %6476 = vmatmul.mubr.msk.bf16.gmra.mxu0 %vm604_vm1, %v9196_v15 }
 0x306   : > { %6479 = vmatprep.mubr.msk.bf16.mxu0 %vm604_vm1, %v9198_v34 }
 0x307   : > { %6446 = vmatmul.mubr.msk.bf16.gmra.mxu1 %vm604_vm1, %v8886_v20 }
 0x308   : > { %6449 = vmatprep.mubr.msk.bf16.mxu1 %vm604_vm1, %v8913_v10 }
 0x30d   : > { %6480 = vmatmul.mubr.msk.bf16.gmra.mxu0 %vm604_vm1, %v9233_v41 }
 0x30e   : > { %6483 = vmatprep.mubr.msk.bf16.mxu0 %vm604_vm1, %v9227_v0 }
 0x30f   : > { %6450 = vmatmul.mubr.msk.bf16.gmra.mxu1 %vm604_vm1, %v8927_v5 }
 0x310   : > { %6453 = vmatprep.mubr.msk.bf16.mxu1 %vm604_vm1, %v10888_v23 }
 0x315   : > { %6484 = vmatmul.mubr.msk.bf16.gmra.mxu0 %vm604_vm1, %v9272_v14 }
 0x316   : > { %6487 = vmatprep.mubr.msk.bf16.mxu0 %vm604_vm1, %v9263_v44  ;;  %v6295_v51 = vpop.f32.mrf.mxu1 }
 0x317   : > { %6454 = vmatmul.mubr.msk.bf16.gmra.mxu1 %vm604_vm1, %v10889_v46 }
 0x318   : > { %6457 = vmatprep.mubr.msk.bf16.mxu1 %vm604_vm1, %v10890_v24  ;;  %v3214_v9 = vpop.f32.mrf.mxu1 }
 0x31a   : > { %v6296_v29 = vpop.f32.mrf.mxu1 }
 0x31b   : > { %v6329_v48 = vpop.f32.mrf.mxu0 }
 0x31c   : > { %v9535_v57 = vadd.f32 %v6329_v48, %v6295_v51  ;;  %v3217_v38 = vpop.f32.mrf.mxu1 }
 0x31d   : > { %6488 = vmatmul.mubr.msk.bf16.gmra.mxu0 %vm604_vm1, %v9312_v17  ;;  %v3426_v7 = vpop.f32.mrf.mxu0 }
 0x31e   : > { %6491 = vmatprep.mubr.msk.bf16.mxu0 %vm604_vm1, %v9305_v60  ;;  %v9539_v39 = vadd.f32 %v3426_v7, %v3214_v9 }
 0x31f   : > { %6458 = vmatmul.mubr.msk.bf16.gmra.mxu1 %vm604_vm1, %v9318_v12 }
 0x320   : > { %6497 = vmatprep.mubr.msk.bf16.mxu1 %vm604_vm1, %v10895_v30  ;;  %v6299_v30 = vpop.f32.mrf.mxu1 }
 0x322   : > { %v3230_v52 = vpop.f32.mrf.mxu1 }
 0x325   : > { %6492 = vmatmul.mubr.msk.bf16.gmra.mxu0 %vm604_vm1, %v9358_v21 }
 0x326   : > { %6531 = vmatprep.mubr.msk.bf16.mxu0 %vm604_vm1, %v10901_v25  ;;  %v6300_v25 = vpop.f32.mrf.mxu1 }
 0x327   : > { %6498 = vmatmul.mubr.msk.bf16.vlgmr.msra.gmra.mxu1 %vm604_vm1, %v10896_v59  ;;  %v6330_v59 = vpop.f32.mrf.mxu0 }
 0x328   : > { %6564 = vmatpush3.bf16.msra.mxu1 %v4807_v42  ;;  %6501 = vmatprep.mubr.msk.bf16.mxu1 %vm604_vm1, %v10897_v58  ;;  %v9545_v58 = vadd.f32 %v6330_v59, %v6296_v29 }
 0x329   : > { %v3429_v47 = vpop.f32.mrf.mxu0 }
 0x32a   : > { %v9547_v43 = vadd.f32 %v3429_v47, %v3217_v38 }
 0x32d   : > { %6532 = vmatmul.mubr.msk.bf16.vlgmr.msra.gmra.mxu0 %vm604_vm1, %v10902_v18  ;;  %v6333_v18 = vpop.f32.mrf.mxu0 }
 0x32e   : > { %6535 = vmatprep.mubr.msk.bf16.mxu0 %vm604_vm1, %v10903_v27  ;;  %v9551_v56 = vadd.f32 %v6333_v18, %v6299_v30 }
 0x32f   : > { %6502 = vmatmul.mubr.msk.bf16.gmra.mxu1 %vm604_vm1, %v10898_v62  ;;  %v3233_v62 = vpop.f32.mrf.mxu1  ;;  %v3442_v27 = vpop.f32.mrf.mxu0 }
 0x330   : > { %6505 = vmatprep.mubr.msk.bf16.mxu1 %vm604_vm1, %v10899_v35  ;;  %v9555_v42 = vadd.f32 %v3442_v27, %v3230_v52 }
 0x331   : > { %v6303_v35 = vpop.f32.mrf.mxu1  ;;  %v6334_v51 = vpop.f32.mrf.mxu0 }
 0x332   : > { %v9561_v9 = vadd.f32 %v6334_v51, %v6300_v25 }
 0x333   : > { %v3445_v29 = vpop.f32.mrf.mxu0 }
 0x334   : > { %v9563_v48 = vadd.f32 %v3445_v29, %v3233_v62 }
 0x335   : > { %6536 = vmatmul.mubr.msk.bf16.gmra.mxu0 %vm604_vm1, %v10904_v55  ;;  %v3246_v55 = vpop.f32.mrf.mxu1 }
 0x336   : > { %6539 = vmatprep.mubr.msk.bf16.mxu0 %vm604_vm1, %v10905_v54  ;;  %v6337_v54 = vpop.f32.mrf.mxu0 }
 0x337   : > { %6506 = vmatmul.mubr.msk.bf16.gmra.mxu1 %vm604_vm1, %v8870_v50  ;;  %v6304_v38 = vpop.f32.mrf.mxu1  ;;  %v9567_v7 = vadd.f32 %v6337_v54, %v6303_v35 }
 0x338   : > { %6509 = vmatprep.mubr.msk.bf16.mxu1 %vm604_vm1, %v8902_v26  ;;  %v3458_v30 = vpop.f32.mrf.mxu0 }
 0x339   : > { %v3249_v50 = vpop.f32.mrf.mxu1  ;;  %v9571_v59 = vadd.f32 %v3458_v30, %v3246_v55 }
 0x33a   : > { %v6338_v52 = vpop.f32.mrf.mxu0 }
 0x33b   : > { %v6307_v26 = vpop.f32.mrf.mxu1  ;;  %v9577_v47 = vadd.f32 %v6338_v52, %v6304_v38 }
 0x33c   : > { %v3461_v25 = vpop.f32.mrf.mxu0 }
 0x33d   : > { %6540 = vmatmul.mubr.msk.bf16.gmra.mxu0 %vm604_vm1, %v8830_v49  ;;  %v3262_v49 = vpop.f32.mrf.mxu1  ;;  %v9579_v18 = vadd.f32 %v3461_v25, %v3249_v50 }
 0x33e   : > { %6543 = vmatprep.mubr.msk.bf16.mxu0 %vm604_vm1, %v10906_v22  ;;  %v6341_v22 = vpop.f32.mrf.mxu0 }
 0x33f   : > { %6510 = vmatmul.mubr.msk.bf16.gmra.mxu1 %vm604_vm1, %v8917_v45  ;;  %v6308_v62 = vpop.f32.mrf.mxu1  ;;  %v9583_v27 = vadd.f32 %v6341_v22, %v6307_v26 }
 0x340   : > { %6513 = vmatprep.mubr.msk.bf16.mxu1 %vm604_vm1, %v8944_v3  ;;  %v3474_v35 = vpop.f32.mrf.mxu0 }
 0x341   : > { %v3265_v45 = vpop.f32.mrf.mxu1  ;;  %v9587_v51 = vadd.f32 %v3474_v35, %v3262_v49 }
 0x342   : > { %v6342_v55 = vpop.f32.mrf.mxu0 }
 0x343   : > { %v6311_v3 = vpop.f32.mrf.mxu1  ;;  %v9593_v29 = vadd.f32 %v6342_v55, %v6308_v62 }
 0x344   : > { %v3477_v38 = vpop.f32.mrf.mxu0 }
 0x345   : > { %6544 = vmatmul.mubr.msk.bf16.gmra.mxu0 %vm604_vm1, %v8876_v2  ;;  %v3278_v2 = vpop.f32.mrf.mxu1  ;;  %v9595_v54 = vadd.f32 %v3477_v38, %v3265_v45 }
 0x346   : > { %6547 = vmatprep.mubr.msk.bf16.mxu0 %vm604_vm1, %v8886_v20  ;;  %v6345_v20 = vpop.f32.mrf.mxu0 }
 0x347   : > { %6514 = vmatmul.mubr.msk.bf16.gmra.mxu1 %vm604_vm1, %v10882_v37  ;;  %v6312_v50 = vpop.f32.mrf.mxu1  ;;  %v9599_v30 = vadd.f32 %v6345_v20, %v6311_v3 }
 0x348   : > { %6517 = vmatprep.mubr.msk.bf16.mxu1 %vm604_vm1, %v8986_v33  ;;  %v3490_v26 = vpop.f32.mrf.mxu0 }
 0x349   : > { %v3281_v37 = vpop.f32.mrf.mxu1  ;;  %v9603_v52 = vadd.f32 %v3490_v26, %v3278_v2 }
 0x34a   : > { %v6346_v49 = vpop.f32.mrf.mxu0 }
 0x34b   : > { %v6315_v33 = vpop.f32.mrf.mxu1  ;;  %v9609_v25 = vadd.f32 %v6346_v49, %v6312_v50 }
 0x34c   : > { %v3493_v62 = vpop.f32.mrf.mxu0 }
 0x34d   : > { %6548 = vmatmul.mubr.msk.bf16.gmra.mxu0 %vm604_vm1, %v8913_v10  ;;  %v3294_v10 = vpop.f32.mrf.mxu1  ;;  %v9611_v22 = vadd.f32 %v3493_v62, %v3281_v37 }
 0x34e   : > { %6551 = vmatprep.mubr.msk.bf16.mxu0 %vm604_vm1, %v8927_v5 }
 0x34f   : > { %6518 = vmatmul.mubr.msk.bf16.gmra.mxu1 %vm604_vm1, %v8995_v31  ;;  %v6316_v45 = vpop.f32.mrf.mxu1 }
 0x350   : > { %6521 = vmatprep.mubr.msk.bf16.mxu1 %vm604_vm1, %v9033_v40 }
 0x351   : > { %v3297_v31 = vpop.f32.mrf.mxu1 }
 0x355   : > { %v6349_v5 = vpop.f32.mrf.mxu0  ;;  %6552 = vmatmul.mubr.msk.bf16.gmra.mxu0 %vm604_vm1, %v10888_v23 }
 0x356   : > { %v9615_v35 = vadd.f32 %v6349_v5, %v6315_v33  ;;  %6555 = vmatprep.mubr.msk.bf16.mxu0 %vm604_vm1, %v10889_v46 }
 0x357   : > { %v3506_v3 = vpop.f32.mrf.mxu0  ;;  %v6319_v40 = vpop.f32.mrf.mxu1  ;;  %6522 = vmatmul.mubr.msk.bf16.gmra.mxu1 %vm604_vm1, %v9077_v61 }
 0x358   : > { %v9619_v55 = vadd.f32 %v3506_v3, %v3294_v10  ;;  %6525 = vmatprep.mubr.msk.bf16.mxu1 %vm604_vm1, %v9314_v53 }
 0x359   : > { %v6350_v2 = vpop.f32.mrf.mxu0  ;;  %v3310_v23 = vpop.f32.mrf.mxu1 }
 0x35a   : > { %v9625_v38 = vadd.f32 %v6350_v2, %v6316_v45 }
 0x35b   : > { %v3509_v50 = vpop.f32.mrf.mxu0  ;;  %v6320_v37 = vpop.f32.mrf.mxu1 }
 0x35c   : > { %v9627_v20 = vadd.f32 %v3509_v50, %v3297_v31 }
 0x35d   : > { %v6353_v46 = vpop.f32.mrf.mxu0  ;;  %6556 = vmatmul.mubr.msk.bf16.gmra.mxu0 %vm604_vm1, %v10890_v24  ;;  %v3313_v61 = vpop.f32.mrf.mxu1 }
 0x35e   : > { %v9631_v26 = vadd.f32 %v6353_v46, %v6319_v40  ;;  %6559 = vmatprep.mubr.msk.bf16.mxu0 %vm604_vm1, %v9318_v12 }
 0x35f   : > { %v3522_v33 = vpop.f32.mrf.mxu0  ;;  %v6323_v53 = vpop.f32.mrf.mxu1  ;;  %6526 = vmatmul.mubr.msk.bf16.gmra.mxu1 %vm604_vm1, %v3094_v36 }
 0x360   : > { %v9635_v49 = vadd.f32 %v3522_v33, %v3310_v23  ;;  %6565 = vmatprep.mubr.msk.bf16.mxu1 %vm604_vm1, %v9097_v11 }
 0x361   : > { %v6354_v10 = vpop.f32.mrf.mxu0  ;;  %v3326_v45 = vpop.f32.mrf.mxu1 }
 0x362   : > { %v9643_v62 = vadd.f32 %v6354_v10, %v6320_v37 }
 0x363   : > { %v3525_v5 = vpop.f32.mrf.mxu0  ;;  %v6324_v12 = vpop.f32.mrf.mxu1 }
 0x364   : > { %v9645_v31 = vadd.f32 %v3525_v5, %v3313_v61 }
 0x365   : > { %v6357_v3 = vpop.f32.mrf.mxu0  ;;  %6560 = vmatmul.mubr.msk.bf16.gmra.mxu0 %vm604_vm1, %v10890_v24  ;;  %v3329_v1 = vpop.f32.mrf.mxu1 }
 0x366   : > { %v9649_v40 = vadd.f32 %v6357_v3, %v6323_v53 }
 0x367   : > { %v3538_v8 = vpop.f32.mrf.mxu0  ;;  %v6363_v2 = vpop.f32.mrf.mxu1  ;;  %6566 = vmatmul.mubr.msk.bf16.vlgmr.msra.gmra.mxu1 %vm604_vm1, %v9092_v63 }
 0x368   : > { %v9651_v36 = vadd.f32 %v3538_v8, %v3326_v45  ;;  %v3769_v23 = vadd.f32 %v6363_v2, %v9535_v57  ;;  %6569 = vmatprep.mubr.msk.bf16.mxu1 %vm604_vm1, %v9136_v4 }
 0x369   : > { %v6358_v11 = vpop.f32.mrf.mxu0  ;;  %v3640_v37 = vpop.f32.mrf.mxu1 }
 0x36a   : > { %v9658_v50 = vadd.f32 %v6358_v11, %v6324_v12  ;;  %v3767_v46 = vadd.f32 %v3640_v37, %v9539_v39 }
 0x36b   : > { %v3541_v24 = vpop.f32.mrf.mxu0  ;;  %v6364_v33 = vpop.f32.mrf.mxu1 }
 0x36c   : > { %v9661_v61 = vadd.f32 %v3541_v24, %v3329_v1  ;;  %v3770_v53 = vadd.f32 %v6364_v33, %v9545_v58 }
 0x36d   : > { %v6397_v10 = vpop.f32.mrf.mxu0  ;;  %v3643_v63 = vpop.f32.mrf.mxu1 }
 0x36e   : > { %v9664_v45 = vadd.f32 %v6397_v10, %v3769_v23  ;;  %v3768_v57 = vadd.f32 %v3643_v63, %v9547_v43 }
 0x36f   : > { %v3841_v5 = vpop.f32.mrf.mxu0  ;;  %v6367_v4 = vpop.f32.mrf.mxu1  ;;  %6570 = vmatmul.mubr.msk.bf16.gmra.mxu1 %vm604_vm1, %v9127_v16 }
 0x370   : > { %v9667_v3 = vadd.f32 %v3841_v5, %v3767_v46  ;;  %v3773_v39 = vadd.f32 %v6367_v4, %v9551_v56  ;;  %6573 = vmatprep.mubr.msk.bf16.mxu1 %vm604_vm1, %v9173_v13 }
 0x371   : > { %v6398_v12 = vpop.f32.mrf.mxu0  ;;  %v3656_v1 = vpop.f32.mrf.mxu1 }
 0x372   : > { %v9674_v58 = vadd.f32 %v6398_v12, %v3770_v53  ;;  %v3771_v8 = vadd.f32 %v3656_v1, %v9555_v42 }
 0x373   : > { %v3844_v2 = vpop.f32.mrf.mxu0  ;;  %v6368_v11 = vpop.f32.mrf.mxu1 }
 0x374   : > { %v9677_v43 = vadd.f32 %v3844_v2, %v3768_v57  ;;  %v3774_v23 = vadd.f32 %v6368_v11, %v9561_v9 }
 0x375   : > { %v6401_v37 = vpop.f32.mrf.mxu0  ;;  %v3659_v16 = vpop.f32.mrf.mxu1 }
 0x376   : > { %v9680_v24 = vadd.f32 %v6401_v37, %v3773_v39  ;;  %v3772_v56 = vadd.f32 %v3659_v16, %v9563_v48 }
 0x377   : > { %v3857_v46 = vpop.f32.mrf.mxu0  ;;  %v6371_v13 = vpop.f32.mrf.mxu1  ;;  %6574 = vmatmul.mubr.msk.bf16.gmra.mxu1 %vm604_vm1, %v9163_v32 }
 0x378   : > { %v9683_v33 = vadd.f32 %v3857_v46, %v3771_v8  ;;  %v3777_v42 = vadd.f32 %v6371_v13, %v9567_v7  ;;  %6577 = vmatprep.mubr.msk.bf16.mxu1 %vm604_vm1, %v9196_v15 }
 0x379   : > { %v6402_v53 = vpop.f32.mrf.mxu0  ;;  %v3672_v10 = vpop.f32.mrf.mxu1 }
 0x37a   : > { %v9690_v9 = vadd.f32 %v6402_v53, %v3774_v23  ;;  %v3775_v63 = vadd.f32 %v3672_v10, %v9571_v59 }
 0x37b   : > { %v3860_v57 = vpop.f32.mrf.mxu0  ;;  %v6372_v5 = vpop.f32.mrf.mxu1 }
 0x37c   : > { %v9693_v48 = vadd.f32 %v3860_v57, %v3772_v56  ;;  %v3778_v4 = vadd.f32 %v6372_v5, %v9577_v47 }
 0x37d   : > { %v6405_v39 = vpop.f32.mrf.mxu0  ;;  %v3675_v32 = vpop.f32.mrf.mxu1 }
 0x37e   : > { %v9696_v12 = vadd.f32 %v6405_v39, %v3777_v42  ;;  %v3776_v7 = vadd.f32 %v3675_v32, %v9579_v18 }
 0x37f   : > { %v3873_v1 = vpop.f32.mrf.mxu0  ;;  %v6375_v15 = vpop.f32.mrf.mxu1  ;;  %6578 = vmatmul.mubr.msk.bf16.gmra.mxu1 %vm604_vm1, %v9198_v34 }
 0x380   : > { %v9699_v8 = vadd.f32 %v3873_v1, %v3775_v63  ;;  %v3781_v59 = vadd.f32 %v6375_v15, %v9583_v27  ;;  %6581 = vmatprep.mubr.msk.bf16.mxu1 %vm604_vm1, %v9233_v41 }
 0x381   : > { %v6406_v2 = vpop.f32.mrf.mxu0  ;;  %v3688_v11 = vpop.f32.mrf.mxu1 }
 0x382   : > { %v9706_v47 = vadd.f32 %v6406_v2, %v3778_v4  ;;  %v3779_v23 = vadd.f32 %v3688_v11, %v9587_v51 }
 0x383   : > { %v3876_v37 = vpop.f32.mrf.mxu0  ;;  %v6376_v16 = vpop.f32.mrf.mxu1 }
 0x384   : > { %v9709_v18 = vadd.f32 %v3876_v37, %v3776_v7  ;;  %v3782_v56 = vadd.f32 %v6376_v16, %v9593_v29 }
 0x385   : > { %v6409_v46 = vpop.f32.mrf.mxu0  ;;  %v3691_v34 = vpop.f32.mrf.mxu1 }
 0x386   : > { %v9712_v13 = vadd.f32 %v6409_v46, %v3781_v59  ;;  %v3780_v27 = vadd.f32 %v3691_v34, %v9595_v54 }
 0x387   : > { %v3889_v42 = vpop.f32.mrf.mxu0  ;;  %v6379_v41 = vpop.f32.mrf.mxu1  ;;  %6582 = vmatmul.mubr.msk.bf16.gmra.mxu1 %vm604_vm1, %v9227_v0 }
 0x388   : > { %v9715_v53 = vadd.f32 %v3889_v42, %v3779_v23  ;;  %v3785_v51 = vadd.f32 %v6379_v41, %v9599_v30  ;;  %6585 = vmatprep.mubr.msk.bf16.mxu1 %vm604_vm1, %v9272_v14 }
 0x389   : > { %v6410_v10 = vpop.f32.mrf.mxu0  ;;  %v3704_v63 = vpop.f32.mrf.mxu1 }
 0x38a   : > { %v9722_v29 = vadd.f32 %v6410_v10, %v3782_v56  ;;  %v3783_v57 = vadd.f32 %v3704_v63, %v9603_v52 }
 0x38b   : > { %v3892_v5 = vpop.f32.mrf.mxu0  ;;  %v6380_v4 = vpop.f32.mrf.mxu1 }
 0x38c   : > { %v9725_v54 = vadd.f32 %v3892_v5, %v3780_v27  ;;  %v3786_v39 = vadd.f32 %v6380_v4, %v9609_v25 }
 0x38d   : > { %v6413_v32 = vpop.f32.mrf.mxu0  ;;  %v3707_v0 = vpop.f32.mrf.mxu1 }
 0x38e   : > { %v9728_v7 = vadd.f32 %v6413_v32, %v3785_v51  ;;  %v3784_v30 = vadd.f32 %v3707_v0, %v9611_v22 }
 0x38f   : > { %v3905_v1 = vpop.f32.mrf.mxu0  ;;  %v6383_v14 = vpop.f32.mrf.mxu1  ;;  %6586 = vmatmul.mubr.msk.bf16.gmra.mxu1 %vm604_vm1, %v9263_v44 }
 0x390   : > { %v9731_v15 = vadd.f32 %v3905_v1, %v3783_v57  ;;  %v3789_v52 = vadd.f32 %v6383_v14, %v9615_v35  ;;  %6589 = vmatprep.mubr.msk.bf16.mxu1 %vm604_vm1, %v9312_v17 }
 0x391   : > { %v6414_v59 = vpop.f32.mrf.mxu0  ;;  %v3720_v2 = vpop.f32.mrf.mxu1 }
 0x392   : > { %v9738_v25 = vadd.f32 %v6414_v59, %v3786_v39  ;;  %v3787_v11 = vadd.f32 %v3720_v2, %v9619_v55 }
 0x393   : > { %v3908_v23 = vpop.f32.mrf.mxu0  ;;  %v6384_v37 = vpop.f32.mrf.mxu1 }
 0x394   : > { %v9741_v22 = vadd.f32 %v3908_v23, %v3784_v30  ;;  %v3790_v16 = vadd.f32 %v6384_v37, %v9625_v38 }
 0x395   : > { %v6417_v56 = vpop.f32.mrf.mxu0  ;;  %v3723_v44 = vpop.f32.mrf.mxu1 }
 0x396   : > { %v9744_v46 = vadd.f32 %v6417_v56, %v3789_v52  ;;  %v3788_v35 = vadd.f32 %v3723_v44, %v9627_v20 }
 0x397   : > { %v3921_v34 = vpop.f32.mrf.mxu0  ;;  %v6387_v17 = vpop.f32.mrf.mxu1  ;;  %6590 = vmatmul.mubr.msk.bf16.gmra.mxu1 %vm604_vm1, %v9305_v60 }
 0x398   : > { %v9747_v27 = vadd.f32 %v3921_v34, %v3787_v11  ;;  %v3793_v55 = vadd.f32 %v6387_v17, %v9631_v26  ;;  %6593 = vmatprep.mubr.msk.bf16.mxu1 %vm604_vm1, %v9358_v21 }
 0x399   : > { %v6418_v42 = vpop.f32.mrf.mxu0  ;;  %v3736_v41 = vpop.f32.mrf.mxu1 }
 0x39a   : > { %v9754_v38 = vadd.f32 %v6418_v42, %v3790_v16  ;;  %v3791_v51 = vadd.f32 %v3736_v41, %v9635_v49 }
 0x39b   : > { %v3924_v10 = vpop.f32.mrf.mxu0  ;;  %v6388_v63 = vpop.f32.mrf.mxu1 }
 0x39c   : > { %v9757_v20 = vadd.f32 %v3924_v10, %v3788_v35  ;;  %v3794_v57 = vadd.f32 %v6388_v63, %v9643_v62 }
 0x39d   : > { %v6421_v5 = vpop.f32.mrf.mxu0  ;;  %v3739_v60 = vpop.f32.mrf.mxu1 }
 0x39e   : > { %v9760_v4 = vadd.f32 %v6421_v5, %v3793_v55  ;;  %v3792_v26 = vadd.f32 %v3739_v60, %v9645_v31 }
 0x39f   : > { %v3937_v39 = vpop.f32.mrf.mxu0  ;;  %v6391_v21 = vpop.f32.mrf.mxu1  ;;  %6594 = vmatmul.mubr.msk.bf16.gmra.mxu1 %vm604_vm1, %v3128_v19 }
 0x3a0   : > { %v9763_v32 = vadd.f32 %v3937_v39, %v3791_v51  ;;  %v3797_v49 = vadd.f32 %v6391_v21, %v9649_v40 }
 0x3a1   : > { %v6422_v0 = vpop.f32.mrf.mxu0  ;;  %v3752_v62 = vpop.f32.mrf.mxu1 }
 0x3a2   : > { %v9770_v30 = vadd.f32 %v6422_v0, %v3794_v57  ;;  %v3795_v1 = vadd.f32 %v3752_v62, %v9651_v36 }
 0x3a3   : > { %v3940_v14 = vpop.f32.mrf.mxu0  ;;  %v6392_v31 = vpop.f32.mrf.mxu1 }
 0x3a4   : > { %v9773_v52 = vadd.f32 %v3940_v14, %v3792_v26  ;;  %v3798_v59 = vadd.f32 %v6392_v31, %v9658_v50 }
 0x3a5   : > { %v6425_v2 = vpop.f32.mrf.mxu0  ;;  %v3755_v28 = vpop.f32.mrf.mxu1 }
 0x3a6   : > { %v9776_v11 = vadd.f32 %v6425_v2, %v3797_v49  ;;  %v3796_v6 = vadd.f32 %v3755_v28, %v9661_v61 }
 0x3a7   : > { %v3953_v19 = vpop.f32.mrf.mxu0  ;;  %v6431_v23 = vpop.f32.mrf.mxu1 }
 0x3a8   : > { %v9779_v40 = vadd.f32 %v3953_v19, %v3795_v1  ;;  %v4171_v16 = vadd.f32 %v6431_v23, %v9664_v45 }
 0x3a9   : > { %v6426_v37 = vpop.f32.mrf.mxu0  ;;  %v4042_v56 = vpop.f32.mrf.mxu1 }
 0x3aa   : > { %v9782_v36 = vadd.f32 %v6426_v37, %v3798_v59  ;;  %v4169_v35 = vadd.f32 %v4042_v56, %v9667_v3 }
 0x3ab   : > { %v3956_v44 = vpop.f32.mrf.mxu0  ;;  %v6432_v34 = vpop.f32.mrf.mxu1 }
 0x3ac   : > { %v9785_v50 = vadd.f32 %v3956_v44, %v3796_v6  ;;  %v4172_v17 = vadd.f32 %v6432_v34, %v9674_v58 }
 0x3ad   : > { %v6465_v55 = vpop.f32.mrf.mxu0  ;;  %v4045_v42 = vpop.f32.mrf.mxu1 }
 0x3ae   : > { %v9788_v61 = vadd.f32 %v6465_v55, %v4171_v16  ;;  %v9791_v41 = vadd.f32 %v4045_v42, %v9677_v43 }
 0x3af   : > { %v4243_v51 = vpop.f32.mrf.mxu0  ;;  %v6435_v10 = vpop.f32.mrf.mxu1 }
 0x3b0   : > { %v9793_v45 = vadd.f32 %v4243_v51, %v4169_v35  ;;  %v4175_v63 = vadd.f32 %v6435_v10, %v9680_v24 }
 0x3b1   : > { %v6466_v57 = vpop.f32.mrf.mxu0  ;;  %v4058_v5 = vpop.f32.mrf.mxu1 }
 0x3b2   : > { %v9796_v3 = vadd.f32 %v6466_v57, %v4172_v17  ;;  %v9799_v60 = vadd.f32 %v4058_v5, %v9683_v33 }
 0x3b3   : > { %v9801_v58 = vpop.f32.mrf.mxu0  ;;  %v6436_v26 = vpop.f32.mrf.mxu1 }
 0x3b4   : > { %v4176_v39 = vadd.f32 %v6436_v26, %v9690_v9 }
 0x3b5   : > { %v6469_v43 = vpop.f32.mrf.mxu0  ;;  %v4061_v49 = vpop.f32.mrf.mxu1 }
 0x3b6   : > { %v9804_v21 = vadd.f32 %v6469_v43, %v4175_v63  ;;  %v9807_v0 = vadd.f32 %v4061_v49, %v9693_v48 }
 0x3b7   : > { %v9809_v24 = vpop.f32.mrf.mxu0  ;;  %v6439_v62 = vpop.f32.mrf.mxu1 }
 0x3b8   : > { %v4179_v1 = vadd.f32 %v6439_v62, %v9696_v12 }
 0x3b9   : > { %v6470_v14 = vpop.f32.mrf.mxu0  ;;  %v4074_v31 = vpop.f32.mrf.mxu1 }
 0x3ba   : > { %v9812_v33 = vadd.f32 %v6470_v14, %v4176_v39  ;;  %v9815_v59 = vadd.f32 %v4074_v31, %v9699_v8 }
 0x3bb   : > { %v9817_v9 = vpop.f32.mrf.mxu0  ;;  %v6440_v2 = vpop.f32.mrf.mxu1 }
 0x3bc   : > { %v4180_v28 = vadd.f32 %v6440_v2, %v9706_v47 }
 0x3bd   : > { %v6473_v6 = vpop.f32.mrf.mxu0  ;;  %v4077_v19 = vpop.f32.mrf.mxu1 }
 0x3be   : > { %v9820_v48 = vadd.f32 %v6473_v6, %v4179_v1  ;;  %v9823_v23 = vadd.f32 %v4077_v19, %v9709_v18 }
 0x3bf   : > { %v9825_v12 = vpop.f32.mrf.mxu0  ;;  %v6443_v37 = vpop.f32.mrf.mxu1 }
 0x3c0   : > { %v4183_v16 = vadd.f32 %v6443_v37, %v9712_v13 }
 0x3c1   : > { %v6474_v56 = vpop.f32.mrf.mxu0  ;;  %v4090_v44 = vpop.f32.mrf.mxu1 }
 0x3c2   : > { %v9828_v8 = vadd.f32 %v6474_v56, %v4180_v28  ;;  %v9831_v35 = vadd.f32 %v4090_v44, %v9715_v53 }
 0x3c3   : > { %v9833_v47 = vpop.f32.mrf.mxu0  ;;  %v6444_v34 = vpop.f32.mrf.mxu1 }
 0x3c4   : > { %v4184_v17 = vadd.f32 %v6444_v34, %v9722_v29 }
 0x3c5   : > { %v6477_v55 = vpop.f32.mrf.mxu0  ;;  %v4093_v42 = vpop.f32.mrf.mxu1 }
 0x3c6   : > { %v9836_v18 = vadd.f32 %v6477_v55, %v4183_v16  ;;  %v9839_v51 = vadd.f32 %v4093_v42, %v9725_v54 }
 0x3c7   : > { %v9841_v13 = vpop.f32.mrf.mxu0  ;;  %v6447_v10 = vpop.f32.mrf.mxu1 }
 0x3c8   : > { %v4187_v63 = vadd.f32 %v6447_v10, %v9728_v7 }
 0x3c9   : > { %v6478_v57 = vpop.f32.mrf.mxu0  ;;  %v4106_v5 = vpop.f32.mrf.mxu1 }
 0x3ca   : > { %v9844_v53 = vadd.f32 %v6478_v57, %v4184_v17  ;;  %v9847_v26 = vadd.f32 %v4106_v5, %v9731_v15 }
 0x3cb   : > { %v9849_v29 = vpop.f32.mrf.mxu0  ;;  %v6448_v39 = vpop.f32.mrf.mxu1 }
 0x3cc   : > { %v4188_v43 = vadd.f32 %v6448_v39, %v9738_v25 }
 0x3cd   : > { %v6481_v49 = vpop.f32.mrf.mxu0  ;;  %v4109_v62 = vpop.f32.mrf.mxu1 }
 0x3ce   : > { %v9852_v54 = vadd.f32 %v6481_v49, %v4187_v63  ;;  %v9855_v1 = vadd.f32 %v4109_v62, %v9741_v22 }
 0x3cf   : > { %v9857_v7 = vpop.f32.mrf.mxu0  ;;  %v6451_v14 = vpop.f32.mrf.mxu1 }
 0x3d0   : > { %v4191_v31 = vadd.f32 %v6451_v14, %v9744_v46 }
 0x3d1   : > { %v6482_v2 = vpop.f32.mrf.mxu0  ;;  %v4122_v28 = vpop.f32.mrf.mxu1 }
 0x3d2   : > { %v9860_v15 = vadd.f32 %v6482_v2, %v4188_v43  ;;  %v9863_v6 = vadd.f32 %v4122_v28, %v9747_v27 }
 0x3d3   : > { %v9865_v25 = vpop.f32.mrf.mxu0  ;;  %v6452_v19 = vpop.f32.mrf.mxu1 }
 0x3d4   : > { %10907 = vst [vmem:[#allocation37_spill] sm:$0xff] %v9863_v6  ;;  %v4192_v37 = vadd.f32 %v6452_v19, %v9754_v38 }
 0x3d5   : > { %v6485_v16 = vpop.f32.mrf.mxu0  ;;  %v4125_v56 = vpop.f32.mrf.mxu1 }
 0x3d6   : > { %v9868_v22 = vadd.f32 %v6485_v16, %v4191_v31  ;;  %v9871_v44 = vadd.f32 %v4125_v56, %v9757_v20 }
 0x3d7   : > { %v9873_v46 = vpop.f32.mrf.mxu0  ;;  %v6455_v34 = vpop.f32.mrf.mxu1 }
 0x3d8   : > { %10908 = vst [vmem:[#allocation40_spill] sm:$0xff] %v9871_v44  ;;  %10909 = vst [vmem:[#allocation39_spill] sm:$0xff] %v9873_v46  ;;  %v4195_v17 = vadd.f32 %v6455_v34, %v9760_v4 }
 0x3d9   : > { %v6486_v55 = vpop.f32.mrf.mxu0  ;;  %v4138_v42 = vpop.f32.mrf.mxu1 }
 0x3da   : > { %v9876_v27 = vadd.f32 %v6486_v55, %v4192_v37  ;;  %v9879_v10 = vadd.f32 %v4138_v42, %v9763_v32 }
 0x3db   : > { %v9881_v38 = vpop.f32.mrf.mxu0  ;;  %v6456_v63 = vpop.f32.mrf.mxu1 }
 0x3dc   : > { %10910 = vst [vmem:[#allocation12_spill] sm:$0xff] %v9879_v10  ;;  %10911 = vst [vmem:[#allocation18_spill] sm:$0xff] %v9881_v38  ;;  %v4196_v57 = vadd.f32 %v6456_v63, %v9770_v30 }
 0x3dd   : > { %v6489_v5 = vpop.f32.mrf.mxu0  ;;  %v4141_v39 = vpop.f32.mrf.mxu1 }
 0x3de   : > { %v9884_v20 = vadd.f32 %v6489_v5, %v4195_v17  ;;  %v9887_v43 = vadd.f32 %v4141_v39, %v9773_v52 }
 0x3df   : > { %v9889_v4 = vpop.f32.mrf.mxu0  ;;  %v6459_v49 = vpop.f32.mrf.mxu1 }
 0x3e0   : > { %10912 = vst [vmem:[#allocation42_spill] sm:$0xff] %v9887_v43  ;;  %10913 = vst [vmem:[#allocation24_spill] sm:$0xff] %v9889_v4  ;;  %v4199_v62 = vadd.f32 %v6459_v49, %v9776_v11 }
 0x3e1   : > { %v6490_v14 = vpop.f32.mrf.mxu0  ;;  %v4154_v31 = vpop.f32.mrf.mxu1 }
 0x3e2   : > { %v9892_v32 = vadd.f32 %v6490_v14, %v4196_v57  ;;  %v9895_v2 = vadd.f32 %v4154_v31, %v9779_v40 }
 0x3e3   : > { %v9897_v30 = vpop.f32.mrf.mxu0  ;;  %v6460_v28 = vpop.f32.mrf.mxu1 }
 0x3e4   : > { %10914 = vst [vmem:[#allocation41_spill] sm:$0xff] %v9895_v2  ;;  %10915 = vst [vmem:[#allocation44_spill] sm:$0xff] %v9897_v30  ;;  %v4200_v19 = vadd.f32 %v6460_v28, %v9782_v36 }
 0x3e5   : > { %v6493_v37 = vpop.f32.mrf.mxu0  ;;  %v4157_v16 = vpop.f32.mrf.mxu1 }
 0x3e6   : > { %v9900_v52 = vadd.f32 %v6493_v37, %v4199_v62  ;;  %v9903_v56 = vadd.f32 %v4157_v16, %v9785_v50 }
 0x3e7   : > { %v9905_v11 = vpop.f32.mrf.mxu0  ;;  %v6499_v34 = vpop.f32.mrf.mxu1 }
 0x3e8   : > { %10916 = vst [vmem:[#allocation43_spill] sm:$0xff] %v9903_v56  ;;  %10917 = vst [vmem:[#allocation25_spill] sm:$0xff] %v9905_v11  ;;  %v9908_v55 = vadd.f32 %v6499_v34, %v9788_v61 }
 0x3e9   : > { %v6494_v17 = vpop.f32.mrf.mxu0  ;;  %v4444_v42 = vpop.f32.mrf.mxu1 }
 0x3ea   : > { %v9910_v40 = vadd.f32 %v6494_v17, %v4200_v19  ;;  %v9915_v36 = vadd.f32 %v4444_v42, %v9793_v45 }
 0x3eb   : > { %v9912_v63 = vpop.f32.mrf.mxu0  ;;  %v6500_v57 = vpop.f32.mrf.mxu1 }
 0x3ec   : > { %10918 = vst [vmem:[#allocation46_spill] sm:$0xff] %v9912_v63  ;;  %v9918_v5 = vadd.f32 %v6500_v57, %v9796_v3 }
 0x3ed   : > { %v9920_v50 = vpop.f32.mrf.mxu0  ;;  %v9922_v39 = vpop.f32.mrf.mxu1 }
 0x3ef   : > { %v4642_v49 = vpop.f32.mrf.mxu0  ;;  %v6503_v62 = vpop.f32.mrf.mxu1 }
 0x3f0   : > { %v9925_v61 = vadd.f32 %v6503_v62, %v9804_v21 }
 0x3f1   : > { %v9927_v14 = vpop.f32.mrf.mxu0  ;;  %v9929_v31 = vpop.f32.mrf.mxu1 }
 0x3f3   : > { %v9931_v28 = vpop.f32.mrf.mxu0  ;;  %v6504_v45 = vpop.f32.mrf.mxu1 }
 0x3f4   : > { %v9934_v19 = vadd.f32 %v6504_v45, %v9812_v33 }
 0x3f5   : > { %v9936_v3 = vpop.f32.mrf.mxu0  ;;  %v9938_v37 = vpop.f32.mrf.mxu1 }
 0x3f7   : > { %v6507_v16 = vpop.f32.mrf.mxu1  ;;  %v9940_v34 = vpop.f32.mrf.mxu0 }
 0x3f8   : > { %v9943_v21 = vadd.f32 %v6507_v16, %v9820_v48 }
 0x3f9   : > { %v9945_v17 = vpop.f32.mrf.mxu1  ;;  %v9947_v57 = vpop.f32.mrf.mxu0 }
 0x3fb   : > { %v6508_v42 = vpop.f32.mrf.mxu1  ;;  %v9954_v63 = vpop.f32.mrf.mxu0 }
 0x3fc   : > { %v9950_v62 = vadd.f32 %v6508_v42, %v9828_v8 }
 0x3fd   : > { %v9952_v33 = vpop.f32.mrf.mxu1  ;;  %v9961_v16 = vpop.f32.mrf.mxu0 }
 0x3ff   : > { %v6511_v45 = vpop.f32.mrf.mxu1  ;;  %v9968_v42 = vpop.f32.mrf.mxu0 }
 0x400   : > { %v9957_v56 = vadd.f32 %v6511_v45, %v9836_v18 }
 0x401   : > { %v9959_v11 = vpop.f32.mrf.mxu1  ;;  %v9975_v45 = vpop.f32.mrf.mxu0 }
 0x403   : > { %v6512_v48 = vpop.f32.mrf.mxu1 }
 0x404   : > { %v9964_v2 = vadd.f32 %v6512_v48, %v9844_v53  ;;  %v9982_v48 = vpop.f32.mrf.mxu0 }
 0x405   : > { %v9966_v30 = vpop.f32.mrf.mxu1 }
 0x407   : > { %v6515_v8 = vpop.f32.mrf.mxu1 }
 0x408   : > { %v9971_v43 = vadd.f32 %v6515_v8, %v9852_v54  ;;  %v9989_v8 = vpop.f32.mrf.mxu0 }
 0x409   : > { %v9973_v4 = vpop.f32.mrf.mxu1 }
 0x40a   : > { %10919 = vst [vmem:[#allocation19_spill] sm:$0xff] %v9971_v43 }
 0x40b   : > { %v6516_v18 = vpop.f32.mrf.mxu1 }
 0x40c   : > { %v9978_v10 = vadd.f32 %v6516_v18, %v9860_v15  ;;  %v9996_v18 = vpop.f32.mrf.mxu0 }
 0x40d   : > { %v9980_v38 = vpop.f32.mrf.mxu1 }
 0x40e   : > { %10920 = vst [vmem:[#allocation26_spill] sm:$0xff] %v9978_v10  ;;  %10921 = vst [vmem:[#allocation45_spill] sm:$0xff] %v9980_v38 }
 0x40f   : > { %v6519_v53 = vpop.f32.mrf.mxu1 }
 0x410   : > { %v9985_v44 = vadd.f32 %v6519_v53, %v9868_v22  ;;  %v10003_v53 = vpop.f32.mrf.mxu0 }
 0x411   : > { %v9987_v46 = vpop.f32.mrf.mxu1 }
 0x412   : > { %10922 = vst [vmem:[#allocation48_spill] sm:$0xff] %v9985_v44  ;;  %10923 = vst [vmem:[#allocation47_spill] sm:$0xff] %v9987_v46 }
 0x413   : > { %v6520_v54 = vpop.f32.mrf.mxu1 }
 0x414   : > { %v9992_v43 = vadd.f32 %v6520_v54, %v9876_v27  ;;  %v10010_v54 = vpop.f32.mrf.mxu0 }
 0x415   : > { %v9994_v6 = vpop.f32.mrf.mxu1 }
 0x416   : > { %10924 = vst [vmem:[#allocation16_spill] sm:$0xff] %v9992_v43  ;;  %10925 = vst [vmem:[#allocation50_spill] sm:$0xff] %v9994_v6 }
 0x417   : > { %v6523_v15 = vpop.f32.mrf.mxu1 }
 0x418   : > { %v9999_v10 = vadd.f32 %v6523_v15, %v9884_v20  ;;  %v10017_v15 = vpop.f32.mrf.mxu0 }
 0x419   : > { %v10001_v38 = vpop.f32.mrf.mxu1 }
 0x41a   : > { %10926 = vst [vmem:[#allocation15_spill] sm:$0xff] %v9999_v10  ;;  %10927 = vst [vmem:[#allocation28_spill] sm:$0xff] %v10001_v38 }
 0x41b   : > { %v6524_v22 = vpop.f32.mrf.mxu1 }
 0x41c   : > { %v10006_v44 = vadd.f32 %v6524_v22, %v9892_v32  ;;  %v4371_v22 = vadd.f32 %v9801_v58, %v9791_v41 }
 0x41d   : > { %v10008_v46 = vpop.f32.mrf.mxu1 }
 0x41e   : > { %10928 = vst [vmem:[#allocation49_spill] sm:$0xff] %v10006_v44  ;;  %10929 = vst [vmem:[#allocation51_spill] sm:$0xff] %v10008_v46  ;;  %v4769_v44 = vadd.f32 %v4642_v49, %v9915_v36  ;;  %v10027_v46 = vpop.f32.mrf.mxu0 }
 0x41f   : > { %v6527_v27 = vpop.f32.mrf.mxu1 }
 0x420   : > { %v10013_v43 = vadd.f32 %v6527_v27, %v9900_v52  ;;  %v4771_v27 = vadd.f32 %v9920_v50, %v9908_v55  ;;  %v10039_v58 = vpop.f32.mrf.mxu0 }
 0x421   : > { %v10015_v6 = vpop.f32.mrf.mxu1 }
 0x422   : > { %10930 = vst [vmem:[#allocation27_spill] sm:$0xff] %v10013_v43  ;;  %10931 = vst [vmem:[#allocation29_spill] sm:$0xff] %v10015_v6  ;;  %v4572_v43 = vadd.f32 %v9922_v39, %v4371_v22 }
 0x423   : > { %v6528_v20 = vpop.f32.mrf.mxu1 }
 0x424   : > { %v10020_v10 = vadd.f32 %v6528_v20, %v9910_v40  ;;  %v4374_v40 = vadd.f32 %v9809_v24, %v9799_v60  ;;  %v4770_v41 = vadd.f32 %v9931_v28, %v4572_v43  ;;  %v4375_v60 = vadd.f32 %v9817_v9, %v9807_v0 }
 0x425   : > { %v10022_v38 = vpop.f32.mrf.mxu1  ;;  %v4378_v24 = vadd.f32 %v9825_v12, %v9815_v59  ;;  %v4775_v59 = vadd.f32 %v9936_v3, %v9925_v61 }
 0x426   : > { %10932 = vst [vmem:[#allocation21_spill] sm:$0xff] %v10020_v10  ;;  %v4772_v10 = vadd.f32 %v9927_v14, %v9918_v5  ;;  %v4575_v49 = vadd.f32 %v9929_v31, %v4374_v40  ;;  %v10055_v14 = vpop.f32.mrf.mxu0  ;;  %v4576_v9 = vadd.f32 %v9938_v37, %v4375_v60 }
 0x427   : > { %v6567_v32 = vpop.f32.mrf.mxu1 }
 0x428   : > { %v10041_v36 = vadd.f32 %v6567_v32, %v4771_v27  ;;  %v4773_v43 = vadd.f32 %v9940_v34, %v4575_v49  ;;  %v4774_v61 = vadd.f32 %v9954_v63, %v4576_v9  ;;  %v10079_v49 = vpop.f32.mrf.mxu0  ;;  %v4579_v63 = vadd.f32 %v9945_v17, %v4378_v24 }
 0x429   : > { %v4843_v52 = vpop.f32.mrf.mxu1 }
 0x42a   : > { %v10032_v6 = vadd.f32 %v4843_v52, %v4769_v44  ;;  %v5073_v31 = vmul.f32 %v10041_v36, %v10041_v36  ;;  %v5005_v12 = vsel %vm604_vm1, %v10041_v36, 0.0  ;;  %v10101_v24 = vpop.f32.mrf.mxu0 }
 0x42b   : > { %v6568_v20 = vpop.f32.mrf.mxu1 }
 0x42c   : > { %v5071_v44 = vmul.f32 %v10032_v6, %v10032_v6  ;;  %v10046_v50 = vadd.f32 %v6568_v20, %v4772_v10  ;;  %v5002_v10 = vsel %vm604_vm1, %v10032_v6, 0.0  ;;  %v4776_v20 = vadd.f32 %v9947_v57, %v9934_v19 }
 0x42d   : > { %v4846_v55 = vpop.f32.mrf.mxu1  ;;  %v4379_v19 = vadd.f32 %v9833_v47, %v9823_v23 }
 0x42e   : > { %v10048_v39 = vadd.f32 %v4846_v55, %v4770_v41  ;;  %v5103_v22 = vsel %vm604_vm1, %v5071_v44, 0.0  ;;  %v5074_v52 = vmul.f32 %v10046_v50, %v10046_v50  ;;  %v5106_v55 = vsel %vm604_vm1, %v5073_v31, 0.0 }
 0x42f   : > { %v6571_v5 = vpop.f32.mrf.mxu1  ;;  %v5007_v44 = vsel %vm604_vm1, %v10046_v50, 0.0 }
 0x430   : > { %v5003_v28 = vsel %vm604_vm1, %v10048_v39, 0.0  ;;  %v5072_v0 = vmul.f32 %v10048_v39, %v10048_v39  ;;  %v10084_v60 = vadd.f32 %v6571_v5, %v4775_v59  ;;  %v4382_v59 = vadd.f32 %v9841_v13, %v9831_v35 }
 0x431   : > { %v5004_v34 = vadd.f32 %v5003_v28, %v5002_v10  ;;  %v4859_v32 = vpop.f32.mrf.mxu1  ;;  %v4779_v35 = vadd.f32 %v9961_v16, %v9943_v21  ;;  %v4580_v13 = vadd.f32 %v9952_v33, %v4379_v19 }
 0x432   : > { %v5104_v27 = vsel %vm604_vm1, %v5072_v0, 0.0  ;;  %v10074_v40 = vadd.f32 %v4859_v32, %v4773_v43  ;;  %v5108_v0 = vsel %vm604_vm1, %v5074_v52, 0.0 }
 0x433   : > { %v5006_v3 = vadd.f32 %v5005_v12, %v5004_v34  ;;  %v5105_v37 = vadd.f32 %v5104_v27, %v5103_v22  ;;  %v6572_v41 = vpop.f32.mrf.mxu1  ;;  %v4777_v12 = vadd.f32 %v9968_v42, %v4579_v63  ;;  %v5077_v34 = vmul.f32 %v10084_v60, %v10084_v60 }
 0x434   : > { %v5075_v43 = vmul.f32 %v10074_v40, %v10074_v40  ;;  %v5009_v31 = vsel %vm604_vm1, %v10074_v40, 0.0  ;;  %v10094_v9 = vadd.f32 %v6572_v41, %v4776_v20  ;;  %v4778_v21 = vadd.f32 %v9982_v48, %v4580_v13 }
 0x435   : > { %v5107_v57 = vadd.f32 %v5106_v55, %v5105_v37  ;;  %v5008_v10 = vadd.f32 %v5007_v44, %v5006_v3  ;;  %v4862_v28 = vpop.f32.mrf.mxu1  ;;  %v4780_v55 = vadd.f32 %v9975_v45, %v9950_v62  ;;  %v5114_v19 = vsel %vm604_vm1, %v5077_v34, 0.0 }
 0x436   : > { %v10096_v5 = vadd.f32 %v4862_v28, %v4774_v61  ;;  %v5110_v32 = vsel %vm604_vm1, %v5075_v43, 0.0  ;;  %v5013_v61 = vsel %vm604_vm1, %v10084_v60, 0.0  ;;  %v5078_v3 = vmul.f32 %v10094_v9, %v10094_v9  ;;  %v10123_v43 = vpop.f32.mrf.mxu0 }
 0x437   : > { %v5010_v23 = vadd.f32 %v5009_v31, %v5008_v10  ;;  %v5109_v47 = vadd.f32 %v5108_v0, %v5107_v57  ;;  %v6575_v17 = vpop.f32.mrf.mxu1  ;;  %v5015_v63 = vsel %vm604_vm1, %v10094_v9, 0.0  ;;  %v4383_v62 = vadd.f32 %v9849_v29, %v9839_v51 }
 0x438   : > { %v5011_v22 = vsel %vm604_vm1, %v10096_v5, 0.0  ;;  %v5076_v52 = vmul.f32 %v10096_v5, %v10096_v5  ;;  %v10128_v57 = vadd.f32 %v6575_v17, %v4779_v35  ;;  %v4583_v45 = vadd.f32 %v9959_v11, %v4382_v59  ;;  %v10145_v59 = vpop.f32.mrf.mxu0 }
 0x439   : > { %v5111_v42 = vadd.f32 %v5110_v32, %v5109_v47  ;;  %v5012_v27 = vadd.f32 %v5011_v22, %v5010_v23  ;;  %v4875_v20 = vpop.f32.mrf.mxu1  ;;  %v5116_v31 = vsel %vm604_vm1, %v5078_v3, 0.0  ;;  %v4386_v17 = vadd.f32 %v9857_v7, %v9847_v26 }
 0x43a   : > { %v5112_v37 = vsel %vm604_vm1, %v5076_v52, 0.0  ;;  %v10118_v41 = vadd.f32 %v4875_v20, %v4777_v12  ;;  %v4781_v34 = vadd.f32 %v9996_v18, %v4583_v45  ;;  %v5081_v32 = vmul.f32 %v10128_v57, %v10128_v57 }
 0x43b   : > { %v5014_v16 = vadd.f32 %v5013_v61, %v5012_v27  ;;  %v5113_v33 = vadd.f32 %v5112_v37, %v5111_v42  ;;  %v6576_v44 = vpop.f32.mrf.mxu1  ;;  %v4783_v26 = vadd.f32 %v9989_v8, %v9957_v56  ;;  %v4584_v7 = vadd.f32 %v9966_v30, %v4383_v62 }
 0x43c   : > { %v5079_v10 = vmul.f32 %v10118_v41, %v10118_v41  ;;  %v5017_v12 = vsel %vm604_vm1, %v10118_v41, 0.0  ;;  %v10138_v23 = vadd.f32 %v6576_v44, %v4780_v55  ;;  %v5021_v27 = vsel %vm604_vm1, %v10128_v57, 0.0 }
 0x43d   : > { %v5115_v48 = vadd.f32 %v5114_v19, %v5113_v33  ;;  %v5016_v28 = vadd.f32 %v5015_v63, %v5014_v16  ;;  %v4878_v0 = vpop.f32.mrf.mxu1  ;;  %v4784_v37 = vadd.f32 %v10003_v53, %v9964_v2  ;;  %v4782_v56 = vadd.f32 %v10010_v54, %v4584_v7 }
 0x43e   : > { %v10140_v47 = vadd.f32 %v4878_v0, %v4778_v21  ;;  %v5118_v22 = vsel %vm604_vm1, %v5079_v10, 0.0  ;;  %v5082_v20 = vmul.f32 %v10138_v23, %v10138_v23  ;;  %v10167_v21 = vpop.f32.mrf.mxu0  ;;  %v5122_v16 = vsel %vm604_vm1, %v5081_v32, 0.0  ;;  %v10933_v0 = vld [vmem:[#allocation37_spill] sm:$0xff] }
 0x43f   : > { %v5018_v51 = vadd.f32 %v5017_v12, %v5016_v28  ;;  %v5117_v29 = vadd.f32 %v5116_v31, %v5115_v48  ;;  %v6579_v11 = vpop.f32.mrf.mxu1  ;;  %v5023_v33 = vsel %vm604_vm1, %v10138_v23, 0.0  ;;  %v4387_v2 = vadd.f32 %v9865_v25, %v9855_v1  ;;  %v10934_v31 = vld [vmem:[#allocation39_spill] sm:$0xff] }
 0x440   : > { %v5019_v52 = vsel %vm604_vm1, %v10140_v47, 0.0  ;;  %v5080_v35 = vmul.f32 %v10140_v47, %v10140_v47  ;;  %v10172_v44 = vadd.f32 %v6579_v11, %v4783_v26  ;;  %v4587_v53 = vadd.f32 %v9973_v4, %v4386_v17  ;;  %v10189_v17 = vpop.f32.mrf.mxu0 }
 0x441   : > { %v5119_v18 = vadd.f32 %v5118_v22, %v5117_v29  ;;  %v5020_v13 = vadd.f32 %v5019_v52, %v5018_v51  ;;  %v4891_v42 = vpop.f32.mrf.mxu1  ;;  %v5124_v62 = vsel %vm604_vm1, %v5082_v20, 0.0  ;;  %v4390_v12 = vadd.f32 %v10934_v31, %v10933_v0  ;;  %v10935_v22 = vld [vmem:[#allocation19_spill] sm:$0xff] }
 0x442   : > { %v5120_v61 = vsel %vm604_vm1, %v5080_v35, 0.0  ;;  %v10162_v3 = vadd.f32 %v4891_v42, %v4781_v34  ;;  %v4785_v34 = vadd.f32 %v10027_v46, %v4587_v53  ;;  %v5085_v51 = vmul.f32 %v10172_v44, %v10172_v44  ;;  %v10936_v46 = vld [vmem:[#allocation45_spill] sm:$0xff]  ;;  %v10938_v53 = vld [vmem:[#allocation40_spill] sm:$0xff] }
 0x443   : > { %v5022_v8 = vadd.f32 %v5021_v27, %v5020_v13  ;;  %v5121_v30 = vadd.f32 %v5120_v61, %v5119_v18  ;;  %v6580_v55 = vpop.f32.mrf.mxu1  ;;  %v4787_v52 = vadd.f32 %v10017_v15, %v10935_v22  ;;  %v4588_v35 = vadd.f32 %v10936_v46, %v4387_v2  ;;  %v10937_v61 = vld [vmem:[#allocation26_spill] sm:$0xff] }
 0x444   : > { %v5083_v19 = vmul.f32 %v10162_v3, %v10162_v3  ;;  %v5025_v45 = vsel %vm604_vm1, %v10162_v3, 0.0  ;;  %v10182_v48 = vadd.f32 %v6580_v55, %v4784_v37  ;;  %v5029_v13 = vsel %vm604_vm1, %v10172_v44, 0.0  ;;  %v10211_v55 = vpop.f32.mrf.mxu0 }
 0x445   : > { %v5123_v54 = vadd.f32 %v5122_v16, %v5121_v30  ;;  %v5024_v63 = vadd.f32 %v5023_v33, %v5022_v8  ;;  %v4894_v10 = vpop.f32.mrf.mxu1  ;;  %v4788_v37 = vadd.f32 %v10039_v58, %v10937_v61  ;;  %v4786_v15 = vadd.f32 %v10055_v14, %v4588_v35 }
 0x446   : > { %v10184_v28 = vadd.f32 %v4894_v10, %v4782_v56  ;;  %v5126_v29 = vsel %vm604_vm1, %v5083_v19, 0.0  ;;  %v5086_v42 = vmul.f32 %v10182_v48, %v10182_v48  ;;  %v5130_v16 = vsel %vm604_vm1, %v5085_v51, 0.0  ;;  %v4741_v22 = vpop.f32.mrf.mxu0 }
 0x447   : > { %v5026_v1 = vadd.f32 %v5025_v45, %v5024_v63  ;;  %v5125_v25 = vadd.f32 %v5124_v62, %v5123_v54  ;;  %v6583_v4 = vpop.f32.mrf.mxu1  ;;  %v5031_v33 = vsel %vm604_vm1, %v10182_v48, 0.0  ;;  %v10939_v54 = vld [vmem:[#allocation18_spill] sm:$0xff]  ;;  %v10940_v63 = vld [vmem:[#allocation47_spill] sm:$0xff] }
 0x448   : > { %v5027_v11 = vsel %vm604_vm1, %v10184_v28, 0.0  ;;  %v5084_v32 = vmul.f32 %v10184_v28, %v10184_v28  ;;  %v10216_v19 = vadd.f32 %v6583_v4, %v4787_v52  ;;  %v4391_v58 = vadd.f32 %v10939_v54, %v10938_v53  ;;  %v10942_v4 = vld [vmem:[#allocation24_spill] sm:$0xff]  ;;  %v6561_v54 = vpop.f32.mrf.mxu0 }
 0x449   : > { %v5127_v26 = vadd.f32 %v5126_v29, %v5125_v25  ;;  %v5028_v7 = vadd.f32 %v5027_v11, %v5026_v1  ;;  %v4907_v18 = vpop.f32.mrf.mxu1  ;;  %v4591_v14 = vadd.f32 %v10940_v63, %v4390_v12  ;;  %v5132_v0 = vsel %vm604_vm1, %v5086_v42, 0.0  ;;  %v10941_v25 = vld [vmem:[#allocation12_spill] sm:$0xff] }
 0x44a   : > { %v5128_v27 = vsel %vm604_vm1, %v5084_v32, 0.0  ;;  %v10206_v20 = vadd.f32 %v4907_v18, %v4785_v34  ;;  %v4394_v51 = vadd.f32 %v10942_v4, %v10941_v25  ;;  %v5089_v52 = vmul.f32 %v10216_v19, %v10216_v19 }
 0x44b   : > { %v5030_v56 = vadd.f32 %v5029_v13, %v5028_v7  ;;  %v5129_v8 = vadd.f32 %v5128_v27, %v5127_v26  ;;  %v6584_v30 = vpop.f32.mrf.mxu1  ;;  %v4789_v29 = vadd.f32 %v10101_v24, %v4591_v14  ;;  %v10943_v7 = vld [vmem:[#allocation48_spill] sm:$0xff]  ;;  %v10944_v13 = vld [vmem:[#allocation50_spill] sm:$0xff] }
 0x44c   : > { %v5087_v2 = vmul.f32 %v10206_v20, %v10206_v20  ;;  %v5033_v31 = vsel %vm604_vm1, %v10206_v20, 0.0  ;;  %v10226_v34 = vadd.f32 %v6584_v30, %v4788_v37  ;;  %v4791_v18 = vadd.f32 %v10079_v49, %v10943_v7  ;;  %v10945_v30 = vld [vmem:[#allocation16_spill] sm:$0xff] }
 0x44d   : > { %v5131_v10 = vadd.f32 %v5130_v16, %v5129_v8  ;;  %v5032_v62 = vadd.f32 %v5031_v33, %v5030_v56  ;;  %v4910_v45 = vpop.f32.mrf.mxu1  ;;  %v4592_v24 = vadd.f32 %v10944_v13, %v4391_v58  ;;  %v5037_v37 = vsel %vm604_vm1, %v10216_v19, 0.0  ;;  %v4754_v13 = vpop.f32.mrf.mxu0 }
 0x44e   : > { %v10228_v1 = vadd.f32 %v4910_v45, %v4786_v15  ;;  %v5134_v46 = vsel %vm604_vm1, %v5087_v2, 0.0  ;;  %v5090_v15 = vmul.f32 %v10226_v34, %v10226_v34  ;;  %v4792_v16 = vadd.f32 %v10123_v43, %v10945_v30  ;;  %v10947_v45 = vld [vmem:[#allocation44_spill] sm:$0xff] }
 0x44f   : > { %v5034_v11 = vadd.f32 %v5033_v31, %v5032_v62  ;;  %v5133_v32 = vadd.f32 %v5132_v0, %v5131_v10  ;;  %v6587_v12 = vpop.f32.mrf.mxu1  ;;  %v4790_v49 = vadd.f32 %v10145_v59, %v4592_v24  ;;  %v5138_v58 = vsel %vm604_vm1, %v5089_v52, 0.0  ;;  %v10946_v62 = vld [vmem:[#allocation42_spill] sm:$0xff]  ;;  %v10948_v43 = vld [vmem:[#allocation28_spill] sm:$0xff]  ;;  %v10949_v52 = vld [vmem:[#allocation41_spill] sm:$0xff] }
 0x450   : > { %v5035_v35 = vsel %vm604_vm1, %v10228_v1, 0.0  ;;  %v5088_v26 = vmul.f32 %v10228_v1, %v10228_v1  ;;  %v5039_v63 = vsel %vm604_vm1, %v10226_v34, 0.0  ;;  %v10256_v14 = vadd.f32 %v6587_v12, %v4791_v18 }
 0x451   : > { %v5135_v42 = vadd.f32 %v5134_v46, %v5133_v32  ;;  %v5036_v27 = vadd.f32 %v5035_v35, %v5034_v11  ;;  %v4923_v61 = vpop.f32.mrf.mxu1  ;;  %v4395_v0 = vadd.f32 %v10947_v45, %v10946_v62  ;;  %v4595_v31 = vadd.f32 %v10948_v43, %v4394_v51  ;;  %v10950_v46 = vld [vmem:[#allocation25_spill] sm:$0xff]  ;;  %v6562_v43 = vpop.f32.mrf.mxu0 }
 0x452   : > { %v5136_v56 = vsel %vm604_vm1, %v5088_v26, 0.0  ;;  %v10248_v8 = vadd.f32 %v4923_v61, %v4789_v29  ;;  %v5140_v29 = vsel %vm604_vm1, %v5090_v15, 0.0  ;;  %v4398_v35 = vadd.f32 %v10950_v46, %v10949_v52 }
 0x453   : > { %v5038_v33 = vadd.f32 %v5037_v37, %v5036_v27  ;;  %v5137_v2 = vadd.f32 %v5136_v56, %v5135_v42  ;;  %v6588_v53 = vpop.f32.mrf.mxu1  ;;  %v4793_v26 = vadd.f32 %v10189_v17, %v4595_v31  ;;  %v5093_v24 = vmul.f32 %v10256_v14, %v10256_v14  ;;  %v10951_v37 = vld [vmem:[#allocation15_spill] sm:$0xff] }
 0x454   : > { %v5091_v10 = vmul.f32 %v10248_v8, %v10248_v8  ;;  %v5041_v11 = vsel %vm604_vm1, %v10248_v8, 0.0  ;;  %v10266_v32 = vadd.f32 %v6588_v53, %v4792_v16  ;;  %v4795_v15 = vadd.f32 %v10167_v21, %v10951_v37  ;;  %v10952_v56 = vld [vmem:[#allocation51_spill] sm:$0xff] }
 0x455   : > { %v5139_v59 = vadd.f32 %v5138_v58, %v5137_v2  ;;  %v5040_v25 = vadd.f32 %v5039_v63, %v5038_v33  ;;  %v4926_v4 = vpop.f32.mrf.mxu1  ;;  %v4596_v17 = vadd.f32 %v10952_v56, %v4395_v0  ;;  %v5045_v33 = vsel %vm604_vm1, %v10256_v14, 0.0  ;;  %v10953_v63 = vld [vmem:[#allocation49_spill] sm:$0xff] }
 0x456   : > { %v10268_v12 = vadd.f32 %v4926_v4, %v4790_v49  ;;  %v5142_v42 = vsel %vm604_vm1, %v5091_v10, 0.0  ;;  %v5094_v2 = vmul.f32 %v10266_v32, %v10266_v32  ;;  %v4796_v10 = vadd.f32 %v10211_v55, %v10953_v63 }
 0x457   : > { %v5042_v7 = vadd.f32 %v5041_v11, %v5040_v25  ;;  %v5141_v18 = vadd.f32 %v5140_v29, %v5139_v59  ;;  %v6591_v51 = vpop.f32.mrf.mxu1  ;;  %v4794_v62 = vadd.f32 %v4741_v22, %v4596_v17  ;;  %v5146_v31 = vsel %vm604_vm1, %v5093_v24, 0.0  ;;  %v10954_v29 = vld [vmem:[#allocation29_spill] sm:$0xff]  ;;  %v10955_v24 = vld [vmem:[#allocation43_spill] sm:$0xff] }
 0x458   : > { %v5043_v27 = vsel %vm604_vm1, %v10268_v12, 0.0  ;;  %v5092_v61 = vmul.f32 %v10268_v12, %v10268_v12  ;;  %v5047_v59 = vsel %vm604_vm1, %v10266_v32, 0.0  ;;  %v10295_v25 = vadd.f32 %v6591_v51, %v4795_v15  ;;  %v10956_v51 = vld [vmem:[#allocation46_spill] sm:$0xff] }
 0x459   : > { %v5143_v30 = vadd.f32 %v5142_v42, %v5141_v18  ;;  %v5044_v16 = vadd.f32 %v5043_v27, %v5042_v7  ;;  %v4939_v49 = vpop.f32.mrf.mxu1  ;;  %v4599_v11 = vadd.f32 %v10954_v29, %v4398_v35  ;;  %v5148_v22 = vsel %vm604_vm1, %v5094_v2, 0.0  ;;  %v4757_v35 = vpop.f32.mrf.mxu0 }
 0x45a   : > { %v5144_v53 = vsel %vm604_vm1, %v5092_v61, 0.0  ;;  %v10288_v58 = vadd.f32 %v4939_v49, %v4793_v26  ;;  %v4399_v42 = vadd.f32 %v10956_v51, %v10955_v24  ;;  %v5097_v56 = vmul.f32 %v10295_v25, %v10295_v25  ;;  %v10957_v49 = vld [vmem:[#allocation27_spill] sm:$0xff] }
 0x45b   : > { %v5046_v21 = vadd.f32 %v5045_v33, %v5044_v16  ;;  %v5145_v45 = vadd.f32 %v5144_v53, %v5143_v30  ;;  %v6592_v0 = vpop.f32.mrf.mxu1  ;;  %v4797_v27 = vadd.f32 %v4754_v13, %v4599_v11  ;;  %v4799_v33 = vadd.f32 %v6561_v54, %v10957_v49 }
 0x45c   : > { %v5095_v4 = vmul.f32 %v10288_v58, %v10288_v58  ;;  %v5049_v26 = vsel %vm604_vm1, %v10288_v58, 0.0  ;;  %v10303_v7 = vadd.f32 %v6592_v0, %v4796_v10  ;;  %v4600_v2 = vadd.f32 %v10022_v38, %v4399_v42  ;;  %v10958_v0 = vld [vmem:[#allocation21_spill] sm:$0xff] }
 0x45d   : > { %v5147_v52 = vadd.f32 %v5146_v31, %v5145_v45  ;;  %v5048_v46 = vadd.f32 %v5047_v59, %v5046_v21  ;;  %v4942_v55 = vpop.f32.mrf.mxu1  ;;  %v5053_v10 = vsel %vm604_vm1, %v10295_v25, 0.0  ;;  %v4800_v31 = vadd.f32 %v6562_v43, %v10958_v0 }
 0x45e   : > { %v10305_v18 = vadd.f32 %v4942_v55, %v4794_v62  ;;  %v5150_v17 = vsel %vm604_vm1, %v5095_v4, 0.0  ;;  %v5098_v62 = vmul.f32 %v10303_v7, %v10303_v7  ;;  %v4798_v59 = vadd.f32 %v4757_v35, %v4600_v2 }
 0x45f   : > { %v5050_v61 = vadd.f32 %v5049_v26, %v5048_v46  ;;  %v5149_v37 = vadd.f32 %v5148_v22, %v5147_v52  ;;  %v6595_v15 = vpop.f32.mrf.mxu1  ;;  %v5154_v38 = vsel %vm604_vm1, %v5097_v56, 0.0  ;;  %v5055_v11 = vsel %vm604_vm1, %v10303_v7, 0.0 }
 0x460   : > { %v5051_v30 = vsel %vm604_vm1, %v10305_v18, 0.0  ;;  %v5096_v16 = vmul.f32 %v10305_v18, %v10305_v18  ;;  %v10329_v52 = vadd.f32 %v6595_v15, %v4799_v33  ;;  %v5156_v24 = vsel %vm604_vm1, %v5098_v62, 0.0 }
 0x461   : > { %v5151_v13 = vadd.f32 %v5150_v17, %v5149_v37  ;;  %v5052_v53 = vadd.f32 %v5051_v30, %v5050_v61  ;;  %v4955_v63 = vpop.f32.mrf.mxu1 }
 0x462   : > { %v5152_v21 = vsel %vm604_vm1, %v5096_v16, 0.0  ;;  %v10323_v45 = vadd.f32 %v4955_v63, %v4797_v27  ;;  %v5101_v37 = vmul.f32 %v10329_v52, %v10329_v52  ;;  %v5061_v16 = vsel %vm604_vm1, %v10329_v52, 0.0 }
 0x463   : > { %v5054_v4 = vadd.f32 %v5053_v10, %v5052_v53  ;;  %v5153_v54 = vadd.f32 %v5152_v21, %v5151_v13  ;;  %v6596_v29 = vpop.f32.mrf.mxu1 }
 0x464   : > { %v5099_v46 = vmul.f32 %v10323_v45, %v10323_v45  ;;  %v5057_v43 = vsel %vm604_vm1, %v10323_v45, 0.0  ;;  %v10336_v51 = vadd.f32 %v6596_v29, %v4800_v31  ;;  %v5162_v53 = vsel %vm604_vm1, %v5101_v37, 0.0 }
 0x465   : > { %v5155_v55 = vadd.f32 %v5154_v38, %v5153_v54  ;;  %v5056_v22 = vadd.f32 %v5055_v11, %v5054_v4  ;;  %v4958_v26 = vpop.f32.mrf.mxu1 }
 0x466   : > { %v10338_v42 = vadd.f32 %v4958_v26, %v4798_v59  ;;  %v5158_v15 = vsel %vm604_vm1, %v5099_v46, 0.0  ;;  %v5102_v49 = vmul.f32 %v10336_v51, %v10336_v51  ;;  %v5063_v63 = vsel %vm604_vm1, %v10336_v51, 0.0 }
 0x467   : > { %v5058_v27 = vadd.f32 %v5057_v43, %v5056_v22  ;;  %v5157_v61 = vadd.f32 %v5156_v24, %v5155_v55 }
 0x468   : > { %v5059_v35 = vsel %vm604_vm1, %v10338_v42, 0.0  ;;  %v5100_v56 = vmul.f32 %v10338_v42, %v10338_v42  ;;  %v5164_v21 = vsel %vm604_vm1, %v5102_v49, 0.0 }
 0x469   : > { %v5159_v17 = vadd.f32 %v5158_v15, %v5157_v61  ;;  %v5060_v30 = vadd.f32 %v5059_v35, %v5058_v27 }
 0x46a   : > { %v5160_v33 = vsel %vm604_vm1, %v5100_v56, 0.0 }
 0x46b   : > { %v5062_v2 = vadd.f32 %v5061_v16, %v5060_v30  ;;  %v5161_v13 = vadd.f32 %v5160_v33, %v5159_v17 }
 0x46d   : > { %v5064_v10 = vadd.f32 %v5063_v63, %v5062_v2  ;;  %v5163_v62 = vadd.f32 %v5162_v53, %v5161_v13 }
 0x46f   : > { %v5065_v0 = vrot.slane %v5064_v10, 4  ;;  %v5165_v31 = vadd.f32 %v5164_v21, %v5163_v62 }
 0x471   : > { %v5066_v59 = vadd.f32 %v5065_v0, %v5064_v10  ;;  %v5166_v4 = vrot.slane %v5165_v31, 4 }
 0x473   : > { %v5067_v54 = vrot.slane %v5066_v59, 2  ;;  %v5167_v29 = vadd.f32 %v5166_v4, %v5165_v31 }
 0x475   : > { %v5068_v38 = vadd.f32 %v5067_v54, %v5066_v59  ;;  %v5168_v11 = vrot.slane %v5167_v29, 2 }
 0x477   : > { %v5069_v46 = vrot.slane %v5068_v38, 1  ;;  %v5169_v55 = vadd.f32 %v5168_v11, %v5167_v29 }
 0x479   : > { %v5070_v22 = vadd.f32 %v5069_v46, %v5068_v38  ;;  %v5170_v26 = vrot.slane %v5169_v55, 1 }
 0x47b   : > { %v5171_v24 = vadd.f32 %v5170_v26, %v5169_v55  ;;  %v10356_v43 = vmul.f32 0.00390625, %v5070_v22 }
 0x47d   : > { %v5173_v27 = vmul.f32 0.00390625, %v5171_v24  ;;  %v5174_v61 = vmul.f32 %v10356_v43, %v10356_v43  ;;  %v5186_v15 = vsub.f32 %v10140_v47, %v10356_v43  ;;  %v5189_v35 = vsub.f32 %v10162_v3, %v10356_v43 }
 0x47e   : > { %v5190_v17 = vsub.f32 %v10184_v28, %v10356_v43  ;;  %v5191_v30 = vsub.f32 %v10172_v44, %v10356_v43  ;;  %v5192_v16 = vsub.f32 %v10182_v48, %v10356_v43  ;;  %v5193_v49 = vsub.f32 %v10206_v20, %v10356_v43 }
 0x47f   : > { %v5175_v37 = vsub.f32 %v5173_v27, %v5174_v61  ;;  %v5194_v33 = vsub.f32 %v10228_v1, %v10356_v43  ;;  %v5195_v47 = vsub.f32 %v10216_v19, %v10356_v43  ;;  %v5196_v3 = vsub.f32 %v10226_v34, %v10356_v43 }
 0x480   : > { %v5197_v28 = vsub.f32 %v10248_v8, %v10356_v43  ;;  %v5198_v44 = vsub.f32 %v10268_v12, %v10356_v43  ;;  %v5199_v48 = vsub.f32 %v10256_v14, %v10356_v43  ;;  %v5200_v20 = vsub.f32 %v10266_v32, %v10356_v43 }
 0x481   : > { %v5176_v56 = vmax.f32 %v5175_v37, 0.0  ;;  %v5201_v1 = vsub.f32 %v10288_v58, %v10356_v43  ;;  %v5202_v19 = vsub.f32 %v10305_v18, %v10356_v43  ;;  %v5203_v34 = vsub.f32 %v10295_v25, %v10356_v43 }
 0x482   : > { %v5204_v8 = vsub.f32 %v10303_v7, %v10356_v43  ;;  %v5205_v12 = vsub.f32 %v10323_v45, %v10356_v43  ;;  %v5206_v14 = vsub.f32 %v10338_v42, %v10356_v43  ;;  %v5207_v32 = vsub.f32 %v10329_v52, %v10356_v43 }
 0x483   : > { %v5208_v58 = vsub.f32 %v10336_v51, %v10356_v43  ;;  %v5209_v2 = vadd.f32 1e-05, %v5176_v56  ;;  %v5177_v25 = vsub.f32 %v10032_v6, %v10356_v43  ;;  %v5178_v7 = vsub.f32 %v10048_v39, %v10356_v43 }
 0x484   : > { %v5179_v18 = vsub.f32 %v10041_v36, %v10356_v43  ;;  %v5180_v45 = vsub.f32 %v10046_v50, %v10356_v43  ;;  %v5181_v52 = vsub.f32 %v10074_v40, %v10356_v43  ;;  %v5182_v51 = vsub.f32 %v10096_v5, %v10356_v43 }
 0x485   : > { %6625 = vrsqrt.f32 %v5209_v2  ;;  %v5183_v42 = vsub.f32 %v10084_v60, %v10356_v43  ;;  %v5184_v6 = vsub.f32 %v10094_v9, %v10356_v43  ;;  %v5185_v39 = vsub.f32 %v10118_v41, %v10356_v43 }
 0x486   : > { %v5187_v36 = vsub.f32 %v10128_v57, %v10356_v43  ;;  %v5188_v50 = vsub.f32 %v10138_v23, %v10356_v43 }
 0x492   : > { %v6626_v13 = vpop.eup %6625 }
 0x493   : > { %v5211_v40 = vmul.f32 %v6626_v13, %v5177_v25  ;;  %v5212_v53 = vmul.f32 %v6626_v13, %v5178_v7  ;;  %v5213_v63 = vmul.f32 %v6626_v13, %v5179_v18  ;;  %v5214_v5 = vmul.f32 %v6626_v13, %v5180_v45  ;;  %v6637_v25 = vld [vmem:[%s6723_s25 + $0x50] sm:$0xff]  ;;  %v6638_v18 = vld [vmem:[%s6723_s25 + $0x58] sm:$0xff] }
 0x494   : > { %v5215_v10 = vmul.f32 %v6626_v13, %v5181_v52  ;;  %v5216_v62 = vmul.f32 %v6626_v13, %v5182_v51  ;;  %v5217_v60 = vmul.f32 %v6626_v13, %v5183_v42  ;;  %v5218_v21 = vmul.f32 %v6626_v13, %v5184_v6  ;;  %v6639_v52 = vld [vmem:[%s6723_s25 + $0x60] sm:$0xff]  ;;  %v6640_v42 = vld [vmem:[%s6723_s25 + $0x68] sm:$0xff]  ;;  %v6641_v6 = vld [vmem:[%s6723_s25 + $0x70] sm:$0xff] }
 0x495   : > { %v5219_v0 = vmul.f32 %v6626_v13, %v5185_v39  ;;  %v5220_v31 = vmul.f32 %v6626_v13, %v5186_v15  ;;  %v5221_v9 = vmul.f32 %v6626_v13, %v5187_v36  ;;  %v5222_v59 = vmul.f32 %v6626_v13, %v5188_v50  ;;  %v6642_v36 = vld [vmem:[%s6723_s25 + $0x78] sm:$0xff] }
 0x496   : > { %v5223_v4 = vmul.f32 %v6626_v13, %v5189_v35  ;;  %v5224_v41 = vmul.f32 %v6626_v13, %v5190_v17  ;;  %v5225_v54 = vmul.f32 %v6626_v13, %v5191_v30  ;;  %v5226_v57 = vmul.f32 %v6626_v13, %v5192_v16  ;;  %v6627_v17 = vld [vmem:[%s6723_s25] sm:$0xff]  ;;  %v6628_v16 = vld [vmem:[%s6723_s25 + $0x8] sm:$0xff] }
 0x497   : > { %v5227_v29 = vmul.f32 %v6626_v13, %v5193_v49  ;;  %v5228_v38 = vmul.f32 %v6626_v13, %v5194_v33  ;;  %v5229_v23 = vmul.f32 %v6626_v13, %v5195_v47  ;;  %v5230_v11 = vmul.f32 %v6626_v13, %v5196_v3  ;;  %v6629_v33 = vld [vmem:[%s6723_s25 + $0x10] sm:$0xff]  ;;  %v6630_v3 = vld [vmem:[%s6723_s25 + $0x18] sm:$0xff] }
 0x498   : > { %v10424_v46 = vmul.f32 %v6626_v13, %v5197_v28  ;;  %v10426_v55 = vmul.f32 %v6626_v13, %v5198_v44  ;;  %v10428_v22 = vmul.f32 %v6626_v13, %v5199_v48  ;;  %v10430_v26 = vmul.f32 %v6626_v13, %v5200_v20  ;;  %v6631_v44 = vld [vmem:[%s6723_s25 + $0x20] sm:$0xff]  ;;  %v6632_v20 = vld [vmem:[%s6723_s25 + $0x28] sm:$0xff] }
 0x499   : > { %v10432_v24 = vmul.f32 %v6626_v13, %v5201_v1  ;;  %v10434_v43 = vmul.f32 %v6626_v13, %v5202_v19  ;;  %v10436_v27 = vmul.f32 %v6626_v13, %v5203_v34  ;;  %v10438_v61 = vmul.f32 %v6626_v13, %v5204_v8  ;;  %v6633_v19 = vld [vmem:[%s6723_s25 + $0x30] sm:$0xff]  ;;  %v6634_v8 = vld [vmem:[%s6723_s25 + $0x38] sm:$0xff] }
 0x49a   : > { %v10447_v37 = vmul.f32 %v6626_v13, %v5205_v12  ;;  %v10449_v15 = vmul.f32 %v6626_v13, %v5206_v14  ;;  %v10451_v35 = vmul.f32 %v6626_v13, %v5207_v32  ;;  %v10453_v56 = vmul.f32 %v6626_v13, %v5208_v58  ;;  %v6635_v14 = vld [vmem:[%s6723_s25 + $0x40] sm:$0xff]  ;;  %v6636_v58 = vld [vmem:[%s6723_s25 + $0x48] sm:$0xff] }
 0x49b   : > { %v5243_v30 = vadd.f32 %v6627_v17, %v5211_v40  ;;  %v5244_v49 = vadd.f32 %v6628_v16, %v5212_v53  ;;  %v5245_v47 = vadd.f32 %v6629_v33, %v5213_v63  ;;  %v5246_v28 = vadd.f32 %v6630_v3, %v5214_v5  ;;  %v6643_v40 = vld [vmem:[%s6723_s25 + $0x80] sm:$0xff]  ;;  %v6644_v63 = vld [vmem:[%s6723_s25 + $0x88] sm:$0xff]  ;;  %v6657_v17 = vld [vmem:[%s6723_s25 + $0xf0] sm:$0xff] }
 0x49c   : > { %v5247_v48 = vadd.f32 %v6631_v44, %v5215_v10  ;;  %v5248_v1 = vadd.f32 %v6632_v20, %v5216_v62  ;;  %v5249_v34 = vadd.f32 %v6633_v19, %v5217_v60  ;;  %v5250_v12 = vadd.f32 %v6634_v8, %v5218_v21  ;;  %v6645_v10 = vld [vmem:[%s6723_s25 + $0x90] sm:$0xff]  ;;  %v6646_v60 = vld [vmem:[%s6723_s25 + $0x98] sm:$0xff] }
 0x49d   : > { %v5251_v32 = vadd.f32 %v6635_v14, %v5219_v0  ;;  %v5252_v2 = vadd.f32 %v6636_v58, %v5220_v31  ;;  %v5253_v7 = vadd.f32 %v6637_v25, %v5221_v9  ;;  %v5254_v45 = vadd.f32 %v6638_v18, %v5222_v59  ;;  %5275 = vst.msk [vmem:[%s10445_s6] sm:$0xff] %vm604_vm1, %v5243_v30  ;;  %v6647_v0 = vld [vmem:[%s6723_s25 + $0xa0] sm:$0xff]  ;;  %v6648_v9 = vld [vmem:[%s6723_s25 + $0xa8] sm:$0xff]  ;;  %v6658_v16 = vld [vmem:[%s6723_s25 + $0xf8] sm:$0xff] }
 0x49e   : > { %5276 = vst.msk [vmem:[%s10445_s6 + $0x8] sm:$0xff] %vm604_vm1, %v5244_v49  ;;  %5277 = vst.msk [vmem:[%s10445_s6 + $0x10] sm:$0xff] %vm604_vm1, %v5245_v47  ;;  %v5255_v51 = vadd.f32 %v6639_v52, %v5223_v4  ;;  %v5256_v13 = vadd.f32 %v6640_v42, %v5224_v41  ;;  %v5257_v39 = vadd.f32 %v6641_v6, %v5225_v54  ;;  %v6649_v4 = vld [vmem:[%s6723_s25 + $0xb0] sm:$0xff]  ;;  %v6650_v54 = vld [vmem:[%s6723_s25 + $0xb8] sm:$0xff] }
 0x49f   : > { %5278 = vst.msk [vmem:[%s10445_s6 + $0x18] sm:$0xff] %vm604_vm1, %v5246_v28  ;;  %v5258_v50 = vadd.f32 %v6642_v36, %v5226_v57  ;;  %5279 = vst.msk [vmem:[%s10445_s6 + $0x20] sm:$0xff] %vm604_vm1, %v5247_v48  ;;  %v5259_v53 = vadd.f32 %v6643_v40, %v5227_v29  ;;  %v5260_v5 = vadd.f32 %v6644_v63, %v5228_v38  ;;  %v6651_v29 = vld [vmem:[%s6723_s25 + $0xc0] sm:$0xff] }
 0x4a0   : > { %5280 = vst.msk [vmem:[%s10445_s6 + $0x28] sm:$0xff] %vm604_vm1, %v5248_v1  ;;  %5281 = vst.msk [vmem:[%s10445_s6 + $0x30] sm:$0xff] %vm604_vm1, %v5249_v34  ;;  %v5261_v62 = vadd.f32 %v6645_v10, %v5229_v23  ;;  %v5262_v21 = vadd.f32 %v6646_v60, %v5230_v11  ;;  %v5263_v31 = vadd.f32 %v6647_v0, %v10424_v46  ;;  %v6652_v23 = vld [vmem:[%s6723_s25 + $0xc8] sm:$0xff]  ;;  %v6653_v46 = vld [vmem:[%s6723_s25 + $0xd0] sm:$0xff] }
 0x4a1   : > { %5282 = vst.msk [vmem:[%s10445_s6 + $0x38] sm:$0xff] %vm604_vm1, %v5250_v12  ;;  %5283 = vst.msk [vmem:[%s10445_s6 + $0x40] sm:$0xff] %vm604_vm1, %v5251_v32  ;;  %v5264_v59 = vadd.f32 %v6648_v9, %v10426_v55  ;;  %v5265_v41 = vadd.f32 %v6649_v4, %v10428_v22  ;;  %v5266_v57 = vadd.f32 %v6650_v54, %v10430_v26  ;;  %v6654_v22 = vld [vmem:[%s6723_s25 + $0xd8] sm:$0xff] }
 0x4a2   : > { %5284 = vst.msk [vmem:[%s10445_s6 + $0x48] sm:$0xff] %vm604_vm1, %v5252_v2  ;;  %5285 = vst.msk [vmem:[%s10445_s6 + $0x50] sm:$0xff] %vm604_vm1, %v5253_v7  ;;  %v5267_v38 = vadd.f32 %v6651_v29, %v10432_v24  ;;  %v5268_v11 = vadd.f32 %v6652_v23, %v10434_v43  ;;  %v5269_v55 = vadd.f32 %v6653_v46, %v10436_v27  ;;  %v6655_v24 = vld [vmem:[%s6723_s25 + $0xe0] sm:$0xff]  ;;  %v6656_v27 = vld [vmem:[%s6723_s25 + $0xe8] sm:$0xff] }
 0x4a3   : > { %5286 = vst.msk [vmem:[%s10445_s6 + $0x58] sm:$0xff] %vm604_vm1, %v5254_v45  ;;  %5287 = vst.msk [vmem:[%s10445_s6 + $0x60] sm:$0xff] %vm604_vm1, %v5255_v51  ;;  %v5270_v26 = vadd.f32 %v6654_v22, %v10438_v61  ;;  %v5271_v43 = vadd.f32 %v6655_v24, %v10447_v37  ;;  %v5272_v61 = vadd.f32 %v6656_v27, %v10449_v15 }
 0x4a4   : > { %5288 = vst.msk [vmem:[%s10445_s6 + $0x68] sm:$0xff] %vm604_vm1, %v5256_v13  ;;  %5289 = vst.msk [vmem:[%s10445_s6 + $0x70] sm:$0xff] %vm604_vm1, %v5257_v39  ;;  %v5273_v30 = vadd.f32 %v6657_v17, %v10451_v35  ;;  %v5274_v49 = vadd.f32 %v6658_v16, %v10453_v56 }
 0x4a5   : > { %5290 = vst.msk [vmem:[%s10445_s6 + $0x78] sm:$0xff] %vm604_vm1, %v5258_v50  ;;  %5291 = vst.msk [vmem:[%s10445_s6 + $0x80] sm:$0xff] %vm604_vm1, %v5259_v53 }
 0x4a6   : > { %5292 = vst.msk [vmem:[%s10445_s6 + $0x88] sm:$0xff] %vm604_vm1, %v5260_v5  ;;  %5293 = vst.msk [vmem:[%s10445_s6 + $0x90] sm:$0xff] %vm604_vm1, %v5261_v62 }
 0x4a7   : > { %5294 = vst.msk [vmem:[%s10445_s6 + $0x98] sm:$0xff] %vm604_vm1, %v5262_v21  ;;  %5295 = vst.msk [vmem:[%s10445_s6 + $0xa0] sm:$0xff] %vm604_vm1, %v5263_v31 }
 0x4a8   : > { %5296 = vst.msk [vmem:[%s10445_s6 + $0xa8] sm:$0xff] %vm604_vm1, %v5264_v59  ;;  %5297 = vst.msk [vmem:[%s10445_s6 + $0xb0] sm:$0xff] %vm604_vm1, %v5265_v41 }
 0x4a9   : > { %5298 = vst.msk [vmem:[%s10445_s6 + $0xb8] sm:$0xff] %vm604_vm1, %v5266_v57  ;;  %5299 = vst.msk [vmem:[%s10445_s6 + $0xc0] sm:$0xff] %vm604_vm1, %v5267_v38 }
 0x4aa   : > { %5300 = vst.msk [vmem:[%s10445_s6 + $0xc8] sm:$0xff] %vm604_vm1, %v5268_v11  ;;  %5301 = vst.msk [vmem:[%s10445_s6 + $0xd0] sm:$0xff] %vm604_vm1, %v5269_v55 }
 0x4ab   : > { %5302 = vst.msk [vmem:[%s10445_s6 + $0xd8] sm:$0xff] %vm604_vm1, %v5270_v26  ;;  %5303 = vst.msk [vmem:[%s10445_s6 + $0xe0] sm:$0xff] %vm604_vm1, %v5271_v43 }
 0x4ac   : > { %5304 = vst.msk [vmem:[%s10445_s6 + $0xe8] sm:$0xff] %vm604_vm1, %v5272_v61  ;;  %5305 = vst.msk [vmem:[%s10445_s6 + $0xf0] sm:$0xff] %vm604_vm1, %v5273_v30 }
 0x4ad   : > { %5306 = vst.msk [vmem:[%s10445_s6 + $0xf8] sm:$0xff] %vm604_vm1, %v5274_v49 }
 0x4ae PF: > { %s13_s12 = sadd.s32 1, %s6665_s12  }
 0x4af   : > { %p10_p4 = scmp.ge.s32.totalorder %s13_s12, 4  }
 0x4b1   :  { %12 = sbr.rel (!%p10_p4) target bundleno = 1 (0x1), region = 78 }

</bundles_post_ra>
